<compile_context>
chip_gen: v7x
topology: tpu7x:2x2x1
jax: 0.10.0
libtpu: 0.0.40
codegen_flags: <defaults>
</compile_context>

<pallas_src>
import functools

import jax
import jax.numpy as jnp
from jax import lax
from jax.experimental import pallas as pl
from jax.experimental.pallas import tpu as pltpu

F32 = jnp.float32
BF16 = jnp.bfloat16


def _vmem_limit_bytes():
    # ~80% of physical VMEM: ~102 MiB on v5e/v6e (128 MiB), ~51 MiB on v7x (64 MiB).
    try:
        cap = int(pltpu.get_tpu_info().vmem_capacity_bytes)
        return max(32 * 1024 * 1024, (cap * 4) // 5)
    except Exception:
        return 48 * 1024 * 1024


_VMEM_LIMIT = _vmem_limit_bytes()


def _cparams(dims=None):
    return pltpu.CompilerParams(dimension_semantics=dims,
                                vmem_limit_bytes=_VMEM_LIMIT)


def _tile(n, cap):
    """Whole extent when small, capped tile otherwise (caps are 8/16/128-aligned)."""
    return n if n <= cap else cap


# --------------------------------------------------------------------------- fused 4-layer MLP
def mlp4_kernel(x_ref, w1, b1, w2, b2, w3, b3, w4, b4, o_ref):
    """AE encoder / decoder: LeakyReLU(0.2) after the first three layers.
    MXU in bf16 with f32 accumulation; bias / activation in f32."""
    def layer(h, w_ref, b_ref):
        return jnp.dot(h.astype(BF16), w_ref[...].astype(BF16),
                       preferred_element_type=F32) + b_ref[...]

    def lrelu(y):
        return jnp.where(y >= 0.0, y, 0.2 * y)

    h = x_ref[...]
    h = lrelu(layer(h, w1, b1))
    h = lrelu(layer(h, w2, b2))
    h = lrelu(layer(h, w3, b3))
    o_ref[...] = layer(h, w4, b4)


def mlp4(x, layers):
    """layers: list of 4 (w, b); w: (din, dout), b: (1, dout). Row-parallel grid."""
    n, din = x.shape
    dout = layers[-1][0].shape[1]
    tm = _tile(n, 512)

    in_specs = [pl.BlockSpec((tm, din), lambda i: (i, 0))]
    args = [x]
    for w, b in layers:
        in_specs.append(pl.BlockSpec(w.shape, lambda i: (0, 0)))   # resident, not re-fetched
        in_specs.append(pl.BlockSpec(b.shape, lambda i: (0, 0)))
        args.extend([w, b])

    return pl.pallas_call(
        mlp4_kernel,
        out_shape=jax.ShapeDtypeStruct((n, dout), F32),
        grid=(pl.cdiv(n, tm),),
        in_specs=in_specs,
        out_specs=pl.BlockSpec((tm, dout), lambda i: (i, 0)),
        compiler_params=_cparams(("parallel",)),
    )(*args)


# --------------------------------------------------------------------------- tiled GNN layer
def gnn_layer_kernel(adj_ref, h_ref, w_ref, o_ref, acc_ref, *, n, tk, mask):
    k = pl.program_id(1)

    @pl.when(k == 0)
    def _():
        acc_ref[...] = jnp.zeros_like(acc_ref)

    adj_blk = adj_ref[...]                       # (tm, tk) bf16
    h_blk = h_ref[...]                           # (tk, din) f32
    if mask:  # last reduction tile may extend past N: zero out padded rows/cols
        rids = k * tk + lax.broadcasted_iota(jnp.int32, (tk, 1), 0)
        h_blk = jnp.where(rids < n, h_blk, 0.0)
        cids = k * tk + lax.broadcasted_iota(jnp.int32, adj_blk.shape, 1)
        adj_blk = jnp.where(cids < n, adj_blk, jnp.zeros_like(adj_blk))

    # support = h @ W (tiny, recomputed once per row tile), then adj @ support.
    support = jnp.dot(h_blk.astype(BF16), w_ref[...].astype(BF16),
                      preferred_element_type=F32)
    acc_ref[...] += jnp.dot(adj_blk, support.astype(BF16),
                            preferred_element_type=F32)

    @pl.when(k == pl.num_programs(1) - 1)
    def _():
        o_ref[...] = acc_ref[...]


def gnn_layer(h, adj_bf, w):
    """One GNNLayer: adj @ (h @ W) (no activation, as in the reference forward)."""
    n, din = h.shape
    dout = w.shape[1]
    tm = _tile(n, 256)
    tk = _tile(n, 512)
    kernel = functools.partial(gnn_layer_kernel, n=n, tk=tk, mask=(n % tk != 0))
    return pl.pallas_call(
        kernel,
        out_shape=jax.ShapeDtypeStruct((n, dout), F32),
        grid=(pl.cdiv(n, tm), pl.cdiv(n, tk)),
        in_specs=[pl.BlockSpec((tm, tk), lambda i, k: (i, k)),    # adj (bf16)
                  pl.BlockSpec((tk, din), lambda i, k: (k, 0)),   # h
                  pl.BlockSpec((din, dout), lambda i, k: (0, 0))],
        out_specs=pl.BlockSpec((tm, dout), lambda i, k: (i, 0)),
        scratch_shapes=[pltpu.VMEM((tm, dout), F32)],
        compiler_params=_cparams(("parallel", "arbitrary")),
    )(adj_bf, h, w)


def gnn3(h, adj_bf, weights):
    # TODO(synk): when adj fits VMEM (small N) a fused 3-layer kernel would load adj
    # from HBM once instead of 3x; kept per-layer so the kernels scale with N.
    for w in weights:
        h = gnn_layer(h, adj_bf, w)
    return h


# --------------------------------------------------------------------------- z_l = adj @ (a*z_ae + (1-a)*z_sgae)
def zl_kernel(adj_ref, zae_ref, zsg_ref, a_ref, o_ref, acc_ref, *, n, tk, mask):
    k = pl.program_id(1)

    @pl.when(k == 0)
    def _():
        acc_ref[...] = jnp.zeros_like(acc_ref)

    a = a_ref[...]
    z_i = a * zae_ref[...] + (1.0 - a) * zsg_ref[...]     # (tk, nz) f32
    adj_blk = adj_ref[...]
    if mask:
        rids = k * tk + lax.broadcasted_iota(jnp.int32, (tk, 1), 0)
        z_i = jnp.where(rids < n, z_i, 0.0)
        cids = k * tk + lax.broadcasted_iota(jnp.int32, adj_blk.shape, 1)
        adj_blk = jnp.where(cids < n, adj_blk, jnp.zeros_like(adj_blk))
    acc_ref[...] += jnp.dot(adj_blk, z_i.astype(BF16), preferred_element_type=F32)

    @pl.when(k == pl.num_programs(1) - 1)
    def _():
        o_ref[...] = acc_ref[...]


def compute_zl(z_ae, z_sgae, a, adj_bf):
    n, nz = z_ae.shape
    tm = _tile(n, 256)
    tk = _tile(n, 512)
    kernel = functools.partial(zl_kernel, n=n, tk=tk, mask=(n % tk != 0))
    return pl.pallas_call(
        kernel,
        out_shape=jax.ShapeDtypeStruct((n, nz), F32),
        grid=(pl.cdiv(n, tm), pl.cdiv(n, tk)),
        in_specs=[pl.BlockSpec((tm, tk), lambda i, k: (i, k)),
                  pl.BlockSpec((tk, nz), lambda i, k: (k, 0)),
                  pl.BlockSpec((tk, nz), lambda i, k: (k, 0)),
                  pl.BlockSpec((tk, nz), lambda i, k: (k, 0))],
        out_specs=pl.BlockSpec((tm, nz), lambda i, k: (i, 0)),
        scratch_shapes=[pltpu.VMEM((tm, nz), F32)],
        compiler_params=_cparams(("parallel", "arbitrary")),
    )(adj_bf, z_ae, z_sgae, a)


# --------------------------------------------------------------------------- fusion softmax + student-t (fused)
def fuse_q_kernel(zlq_ref, zae_ref, zsg_ref, zlkv_ref, gamma_ref, c_ref,
                  zt_ref, q_ref, q1_ref, q2_ref, *, v, n, tkv, mask):
    """Per query-row tile: flash-style softmax over z_l kv chunks
    (s = softmax(z_l z_l^T, axis=1), z_g = s @ z_l), z_tilde = gamma*z_g + z_l,
    then the three student-t soft assignments (exact division)."""
    zq = zlq_ref[...]                            # (tm, nz) f32
    tm, nz = zq.shape
    zq_b = zq.astype(BF16)
    n_chunks = zlkv_ref.shape[0] // tkv

    def step(j, m, l, acc):
        kv = zlkv_ref[pl.ds(j * tkv, tkv), :].astype(BF16)            # (tkv, nz)
        s = lax.dot_general(zq_b, kv, (((1,), (1,)), ((), ())),
                            preferred_element_type=F32)               # (tm, tkv)
        if mask:  # padded kv rows -> -inf before the row max / exp
            cids = j * tkv + lax.broadcasted_iota(jnp.int32, s.shape, 1)
            s = jnp.where(cids < n, s, -jnp.inf)
        m_new = jnp.maximum(m, jnp.max(s, axis=1, keepdims=True))
        alpha = jnp.exp(m - m_new)
        p = jnp.exp(s - m_new)
        l = alpha * l + jnp.sum(p, axis=1, keepdims=True)
        acc = alpha * acc + lax.dot_general(p.astype(BF16), kv,
                                            (((1,), (0,)), ((), ())),
                                            preferred_element_type=F32)
        return m_new, l, acc

    m = jnp.full((tm, 1), -jnp.inf, F32)
    l = jnp.zeros((tm, 1), F32)
    acc = jnp.zeros((tm, nz), F32)
    if n_chunks <= 8:                      # short: unroll for LLO scheduler visibility
        for j in range(n_chunks):
            m, l, acc = step(j, m, l, acc)
    else:
        m, l, acc = lax.fori_loop(0, n_chunks, lambda j, c: step(j, *c), (m, l, acc))

    z_tilde = gamma_ref[...] * (acc / l) + zq            # gamma is (1,1), broadcasts
    zt_ref[...] = z_tilde

    # Student-t soft assignments for (z_tilde, z_ae, z_sgae): one stacked contraction.
    c = c_ref[...]                                                    # (K, nz) f32
    z_all = jnp.concatenate([z_tilde, zae_ref[...], zsg_ref[...]], axis=0)  # (3tm, nz)
    zz = jnp.sum(z_all * z_all, axis=1, keepdims=True)                # (3tm, 1)
    # ||c_j||^2 as a lane-dense (1, K) row via the MXU (no cross-lane reduce/transpose).
    cc = lax.dot_general(jnp.ones((1, nz), F32), c * c, (((1,), (1,)), ((), ())),
                         preferred_element_type=F32)                  # (1, K)
    cross = lax.dot_general(z_all, c, (((1,), (1,)), ((), ())),
                            preferred_element_type=F32)               # (3tm, K)
    d2 = jnp.maximum(zz + cc - 2.0 * cross, 0.0)
    qv = 1.0 / (1.0 + d2 * (1.0 / v))                                 # exact (feeds KL)
    if v != 1.0:  # compile-time specialization: for v == 1.0 the exponent is exactly 1
        qv = qv ** ((v + 1.0) / 2.0)
    qv = qv / jnp.sum(qv, axis=1, keepdims=True)                      # exact row norm
    q_ref[...] = qv[0:tm]
    q1_ref[...] = qv[tm:2 * tm]
    q2_ref[...] = qv[2 * tm:3 * tm]


def fuse_q(z_l, z_ae, z_sgae, gamma, clusters, v):
    n, nz = z_l.shape
    k = clusters.shape[0]
    tm = _tile(n, 256)
    tkv = _tile(n, 512)
    n_pad = pl.cdiv(n, tkv) * tkv
    z_l_kv = z_l if n_pad == n else jnp.concatenate(
        [z_l, jnp.zeros((n_pad - n, nz), F32)], axis=0)
    kernel = functools.partial(fuse_q_kernel, v=float(v), n=n, tkv=tkv,
                               mask=(n_pad != n))
    return pl.pallas_call(
        kernel,
        out_shape=(jax.ShapeDtypeStruct((n, nz), F32),
                   jax.ShapeDtypeStruct((n, k), F32),
                   jax.ShapeDtypeStruct((n, k), F32),
                   jax.ShapeDtypeStruct((n, k), F32)),
        grid=(pl.cdiv(n, tm),),
        in_specs=[pl.BlockSpec((tm, nz), lambda i: (i, 0)),       # z_l (query rows)
                  pl.BlockSpec((tm, nz), lambda i: (i, 0)),       # z_ae rows
                  pl.BlockSpec((tm, nz), lambda i: (i, 0)),       # z_sgae rows
                  pl.BlockSpec((n_pad, nz), lambda i: (0, 0)),    # z_l (resident kv copy)
                  pl.BlockSpec((1, 1), lambda i: (0, 0)),         # gamma
                  pl.BlockSpec((k, nz), lambda i: (0, 0))],       # cluster centers
        out_specs=(pl.BlockSpec((tm, nz), lambda i: (i, 0)),
                   pl.BlockSpec((tm, k), lambda i: (i, 0)),
                   pl.BlockSpec((tm, k), lambda i: (i, 0)),
                   pl.BlockSpec((tm, k), lambda i: (i, 0))),
        compiler_params=_cparams(("parallel",)),
    )(z_l, z_ae, z_sgae, z_l_kv, gamma.reshape(1, 1), clusters)


# --------------------------------------------------------------------------- adjacency reconstruction
def adj_recon_kernel(z1r_ref, z2r_ref, z1c_ref, z2c_ref, o_ref):
    """(tm, tn) tile of adj_hat = sigmoid(z_sgae z_sgae^T) + sigmoid(z_hat z_hat^T)."""
    dn = (((1,), (1,)), ((), ()))
    s1 = lax.dot_general(z1r_ref[...].astype(BF16), z1c_ref[...].astype(BF16), dn,
                         preferred_element_type=F32)
    s2 = lax.dot_general(z2r_ref[...].astype(BF16), z2c_ref[...].astype(BF16), dn,
                         preferred_element_type=F32)
    # TODO(synk): the 2*N^2 sigmoids make this EUP-bound; emitting logits for a fused
    # BCE-with-logits loss would remove them, but the module returns probabilities.
    o_ref[...] = jax.nn.sigmoid(s1) + jax.nn.sigmoid(s2)


def adj_recon(z_sgae, z_hat):
    n, d1 = z_sgae.shape
    d2 = z_hat.shape[1]
    tm = _tile(n, 256)
    tn = _tile(n, 1024)
    return pl.pallas_call(
        adj_recon_kernel,
        out_shape=jax.ShapeDtypeStruct((n, n), F32),
        grid=(pl.cdiv(n, tm), pl.cdiv(n, tn)),
        in_specs=[pl.BlockSpec((tm, d1), lambda i, j: (i, 0)),
                  pl.BlockSpec((tm, d2), lambda i, j: (i, 0)),
                  pl.BlockSpec((tn, d1), lambda i, j: (j, 0)),
                  pl.BlockSpec((tn, d2), lambda i, j: (j, 0))],
        out_specs=pl.BlockSpec((tm, tn), lambda i, j: (i, j)),
        compiler_params=_cparams(("parallel", "parallel")),
    )(z_sgae, z_hat, z_sgae, z_hat)


# --------------------------------------------------------------------------- params
def init_params(key, *, n_input, n_z, n_node, n_clusters,
                ae_enc, ae_dec, gae_enc, gae_dec):
    ks = iter(jax.random.split(key, 64))

    def lin(din, dout):
        bound = 1.0 / jnp.sqrt(din)
        w = jax.random.uniform(next(ks), (din, dout), F32, -bound, bound)
        b = jax.random.uniform(next(ks), (1, dout), F32, -bound, bound)
        return w, b

    def xav_u(din, dout):
        lim = jnp.sqrt(6.0 / (din + dout))
        return jax.random.uniform(next(ks), (din, dout), F32, -lim, lim)

    p = {}
    dims = [n_input] + list(ae_enc) + [n_z]
    p["ae_enc"] = [lin(dims[i], dims[i + 1]) for i in range(4)]
    dims = [n_z] + list(ae_dec) + [n_input]
    p["ae_dec"] = [lin(dims[i], dims[i + 1]) for i in range(4)]
    dims = [n_input] + list(gae_enc)
    p["gae_enc"] = [xav_u(dims[i], dims[i + 1]) for i in range(3)]
    dims = list(gae_dec) + [n_input]
    p["gae_dec"] = [xav_u(dims[i], dims[i + 1]) for i in range(3)]
    p["a"] = jnp.full((n_node, n_z), 0.5, F32)
    std = jnp.sqrt(2.0 / (n_clusters + n_z))
    p["cluster"] = std * jax.random.normal(next(ks), (n_clusters, n_z), F32)
    p["gamma"] = jnp.zeros((1,), F32)
    return p


# --------------------------------------------------------------------------- forward
def sclgf_forward(params, x, adj, v=1.0):
    adj_bf = adj.astype(BF16)                        # stream adj in bf16 (halves HBM/VMEM)
    z_ae = mlp4(x, params["ae_enc"])                 # AE encoder (4 linears fused)
    z_sgae = gnn3(x, adj_bf, params["gae_enc"])      # SGAE encoder (3 tiled GNN layers)
    z_l = compute_zl(z_ae, z_sgae, params["a"], adj_bf)
    z_tilde, q, q1, q2 = fuse_q(z_l, z_ae, z_sgae, params["gamma"],
                                params["cluster"], v)
    x_hat = mlp4(z_tilde, params["ae_dec"])          # AE decoder (4 linears fused)
    z_hat = gnn3(z_tilde, adj_bf, params["gae_dec"])  # SGAE decoder (3 tiled GNN layers)
    adj_hat = adj_recon(z_sgae, z_hat)               # both sigmoids + add, 2-D tiled
    return x_hat, z_hat, adj_hat, z_ae, z_sgae, q, q1, q2, z_tilde


# --------------------------------------------------------------------------- pure-JAX reference
def reference_forward(params, x, adj, v=1.0):
    def lrelu(y):
        return jnp.where(y >= 0.0, y, 0.2 * y)

    def mlp(h, layers):
        for idx, (w, b) in enumerate(layers):
            h = h @ w + b
            if idx < len(layers) - 1:
                h = lrelu(h)
        return h

    def gnn(h, ws):
        for w in ws:
            h = adj @ (h @ w)
        return h

    def st(z):
        d2 = jnp.sum((z[:, None, :] - params["cluster"][None, :, :]) ** 2, axis=2)
        qv = 1.0 / (1.0 + d2 / v)
        qv = qv ** ((v + 1.0) / 2.0)
        return qv / jnp.sum(qv, axis=1, keepdims=True)

    z_ae = mlp(x, params["ae_enc"])
    z_sgae = gnn(x, params["gae_enc"])
    a = params["a"]
    z_i = a * z_ae + (1.0 - a) * z_sgae
    z_l = adj @ z_i
    s = jax.nn.softmax(z_l @ z_l.T, axis=1)
    z_g = s @ z_l
    z_tilde = params["gamma"][0] * z_g + z_l
    x_hat = mlp(z_tilde, params["ae_dec"])
    z_hat = gnn(z_tilde, params["gae_dec"])
    adj_hat = jax.nn.sigmoid(z_sgae @ z_sgae.T) + jax.nn.sigmoid(z_hat @ z_hat.T)
    return x_hat, z_hat, adj_hat, z_ae, z_sgae, st(z_tilde), st(z_ae), st(z_sgae), z_tilde


# --------------------------------------------------------------------------- main
if __name__ == "__main__":
    N = 32            # n_node
    N_INPUT = 64
    N_Z = 16
    N_CLUSTERS = 8
    AE_ENC = (32, 32, 32)
    AE_DEC = (32, 32, 32)
    GAE_ENC = (32, 32, N_Z)      # gae_n_enc_3 == n_z (fused with z_ae)
    GAE_DEC = (N_Z, 32, 32)      # gae_n_dec_1 == n_z (decoder takes z_tilde)

    key = jax.random.PRNGKey(0)
    kx, kadj, kp = jax.random.split(key, 3)

    x = jax.random.normal(kx, (N, N_INPUT), F32)

    # symmetric, self-looped, row-normalized adjacency
    a_raw = (jax.random.uniform(kadj, (N, N)) > 0.7).astype(F32)
    a_raw = jnp.maximum(a_raw, a_raw.T) + jnp.eye(N, dtype=F32)
    adj = a_raw / jnp.sum(a_raw, axis=1, keepdims=True)

    params = init_params(
        kp, n_input=N_INPUT, n_z=N_Z, n_node=N, n_clusters=N_CLUSTERS,
        ae_enc=AE_ENC, ae_dec=AE_DEC, gae_enc=GAE_ENC, gae_dec=GAE_DEC)

    fwd = jax.jit(lambda p, xx, aa: sclgf_forward(p, xx, aa, v=1.0))
    outs = jax.block_until_ready(fwd(params, x, adj))
    refs = reference_forward(params, x, adj, v=1.0)

    names = ["x_hat", "z_hat", "adj_hat", "z_ae", "z_sgae", "q", "q1", "q2", "z_tilde"]
    expected = {
        "x_hat": (N, N_INPUT), "z_hat": (N, N_INPUT), "adj_hat": (N, N),
        "z_ae": (N, N_Z), "z_sgae": (N, N_Z), "q": (N, N_CLUSTERS),
        "q1": (N, N_CLUSTERS), "q2": (N, N_CLUSTERS), "z_tilde": (N, N_Z),
    }
    for name, o, r in zip(names, outs, refs):
        assert o.shape == expected[name], (name, o.shape)
        assert bool(jnp.all(jnp.isfinite(o))), name
        err = float(jnp.max(jnp.abs(o - r)))
        assert err < 0.25, (name, err)   # generous bound: bf16 MXU vs f32 reference
    # soft-assignment rows sum to 1 (exact division in-kernel)
    assert bool(jnp.allclose(jnp.sum(outs[5], axis=1), 1.0, atol=1e-4))

    print("KERNEL_OK")
</pallas_src>

<mosaic_0001>
module attributes {stable_mosaic.version = 11 : i64} {
  func.func @mlp4_kernel(%arg0: i32, %arg1: memref<32x64xf32, #tpu.memory_space<vmem>>, %arg2: memref<64x32xf32, #tpu.memory_space<vmem>>, %arg3: memref<1x32xf32, #tpu.memory_space<vmem>>, %arg4: memref<32x32xf32, #tpu.memory_space<vmem>>, %arg5: memref<1x32xf32, #tpu.memory_space<vmem>>, %arg6: memref<32x32xf32, #tpu.memory_space<vmem>>, %arg7: memref<1x32xf32, #tpu.memory_space<vmem>>, %arg8: memref<32x16xf32, #tpu.memory_space<vmem>>, %arg9: memref<1x16xf32, #tpu.memory_space<vmem>>, %arg10: memref<32x16xf32, #tpu.memory_space<vmem>>) attributes {dimension_semantics = [#tpu.dimension_semantics<parallel>], iteration_bounds = array<i64: 1>, scalar_prefetch = 0 : i64, scratch_operands = 0 : i64, tpu.core_type = #tpu.core_type<tc>, window_params = [{transform_indices = @transform_0, window_bounds = array<i64: 32, 64>}, {pipeline_mode = #tpu.pipeline_mode<synchronous>, transform_indices = @transform_1, window_bounds = array<i64: 64, 32>}, {pipeline_mode = #tpu.pipeline_mode<synchronous>, transform_indices = @transform_2, window_bounds = array<i64: 1, 32>}, {pipeline_mode = #tpu.pipeline_mode<synchronous>, transform_indices = @transform_3, window_bounds = array<i64: 32, 32>}, {pipeline_mode = #tpu.pipeline_mode<synchronous>, transform_indices = @transform_4, window_bounds = array<i64: 1, 32>}, {pipeline_mode = #tpu.pipeline_mode<synchronous>, transform_indices = @transform_5, window_bounds = array<i64: 32, 32>}, {pipeline_mode = #tpu.pipeline_mode<synchronous>, transform_indices = @transform_6, window_bounds = array<i64: 1, 32>}, {pipeline_mode = #tpu.pipeline_mode<synchronous>, transform_indices = @transform_7, window_bounds = array<i64: 32, 16>}, {pipeline_mode = #tpu.pipeline_mode<synchronous>, transform_indices = @transform_8, window_bounds = array<i64: 1, 16>}, {transform_indices = @transform_9, window_bounds = array<i64: 32, 16>}]} {
    %c0 = arith.constant 0 : index
    %c0_0 = arith.constant 0 : index
    %0 = vector.load %arg1[%c0, %c0_0] : memref<32x64xf32, #tpu.memory_space<vmem>>, vector<32x64xf32>
    %1 = arith.truncf %0 : vector<32x64xf32> to vector<32x64xbf16>
    %c0_1 = arith.constant 0 : index
    %c0_2 = arith.constant 0 : index
    %2 = vector.load %arg2[%c0_1, %c0_2] : memref<64x32xf32, #tpu.memory_space<vmem>>, vector<64x32xf32>
    %3 = arith.truncf %2 : vector<64x32xf32> to vector<64x32xbf16>
    %cst = arith.constant dense<0.000000e+00> : vector<32x32xf32>
    %4 = tpu.matmul %1, %3, %cst {dimension_numbers = #tpu.dot_dimension_numbers<[1], [0], [0], [1], [0, 0, 1, 1], [], []>} : vector<32x64xbf16>, vector<64x32xbf16>, vector<32x32xf32> -> vector<32x32xf32>
    %c0_3 = arith.constant 0 : index
    %c0_4 = arith.constant 0 : index
    %5 = vector.load %arg3[%c0_3, %c0_4] : memref<1x32xf32, #tpu.memory_space<vmem>>, vector<1x32xf32>
    %6 = vector.broadcast %5 : vector<1x32xf32> to vector<32x32xf32>
    %7 = arith.addf %4, %6 : vector<32x32xf32>
    %cst_5 = arith.constant 0.000000e+00 : f32
    %8 = vector.broadcast %cst_5 : f32 to vector<32x32xf32>
    %9 = arith.cmpf oge, %7, %8 : vector<32x32xf32>
    %cst_6 = arith.constant 2.000000e-01 : f32
    %10 = vector.broadcast %cst_6 : f32 to vector<32x32xf32>
    %11 = arith.mulf %10, %7 : vector<32x32xf32>
    %12 = arith.select %9, %7, %11 : vector<32x32xi1>, vector<32x32xf32>
    %13 = arith.truncf %12 : vector<32x32xf32> to vector<32x32xbf16>
    %c0_7 = arith.constant 0 : index
    %c0_8 = arith.constant 0 : index
    %14 = vector.load %arg4[%c0_7, %c0_8] : memref<32x32xf32, #tpu.memory_space<vmem>>, vector<32x32xf32>
    %15 = arith.truncf %14 : vector<32x32xf32> to vector<32x32xbf16>
    %cst_9 = arith.constant dense<0.000000e+00> : vector<32x32xf32>
    %16 = tpu.matmul %13, %15, %cst_9 {dimension_numbers = #tpu.dot_dimension_numbers<[1], [0], [0], [1], [0, 0, 1, 1], [], []>} : vector<32x32xbf16>, vector<32x32xbf16>, vector<32x32xf32> -> vector<32x32xf32>
    %c0_10 = arith.constant 0 : index
    %c0_11 = arith.constant 0 : index
    %17 = vector.load %arg5[%c0_10, %c0_11] : memref<1x32xf32, #tpu.memory_space<vmem>>, vector<1x32xf32>
    %18 = vector.broadcast %17 : vector<1x32xf32> to vector<32x32xf32>
    %19 = arith.addf %16, %18 : vector<32x32xf32>
    %cst_12 = arith.constant 0.000000e+00 : f32
    %20 = vector.broadcast %cst_12 : f32 to vector<32x32xf32>
    %21 = arith.cmpf oge, %19, %20 : vector<32x32xf32>
    %cst_13 = arith.constant 2.000000e-01 : f32
    %22 = vector.broadcast %cst_13 : f32 to vector<32x32xf32>
    %23 = arith.mulf %22, %19 : vector<32x32xf32>
    %24 = arith.select %21, %19, %23 : vector<32x32xi1>, vector<32x32xf32>
    %25 = arith.truncf %24 : vector<32x32xf32> to vector<32x32xbf16>
    %c0_14 = arith.constant 0 : index
    %c0_15 = arith.constant 0 : index
    %26 = vector.load %arg6[%c0_14, %c0_15] : memref<32x32xf32, #tpu.memory_space<vmem>>, vector<32x32xf32>
    %27 = arith.truncf %26 : vector<32x32xf32> to vector<32x32xbf16>
    %cst_16 = arith.constant dense<0.000000e+00> : vector<32x32xf32>
    %28 = tpu.matmul %25, %27, %cst_16 {dimension_numbers = #tpu.dot_dimension_numbers<[1], [0], [0], [1], [0, 0, 1, 1], [], []>} : vector<32x32xbf16>, vector<32x32xbf16>, vector<32x32xf32> -> vector<32x32xf32>
    %c0_17 = arith.constant 0 : index
    %c0_18 = arith.constant 0 : index
    %29 = vector.load %arg7[%c0_17, %c0_18] : memref<1x32xf32, #tpu.memory_space<vmem>>, vector<1x32xf32>
    %30 = vector.broadcast %29 : vector<1x32xf32> to vector<32x32xf32>
    %31 = arith.addf %28, %30 : vector<32x32xf32>
    %cst_19 = arith.constant 0.000000e+00 : f32
    %32 = vector.broadcast %cst_19 : f32 to vector<32x32xf32>
    %33 = arith.cmpf oge, %31, %32 : vector<32x32xf32>
    %cst_20 = arith.constant 2.000000e-01 : f32
    %34 = vector.broadcast %cst_20 : f32 to vector<32x32xf32>
    %35 = arith.mulf %34, %31 : vector<32x32xf32>
    %36 = arith.select %33, %31, %35 : vector<32x32xi1>, vector<32x32xf32>
    %37 = arith.truncf %36 : vector<32x32xf32> to vector<32x32xbf16>
    %c0_21 = arith.constant 0 : index
    %c0_22 = arith.constant 0 : index
    %38 = vector.load %arg8[%c0_21, %c0_22] : memref<32x16xf32, #tpu.memory_space<vmem>>, vector<32x16xf32>
    %39 = arith.truncf %38 : vector<32x16xf32> to vector<32x16xbf16>
    %cst_23 = arith.constant dense<0.000000e+00> : vector<32x16xf32>
    %40 = tpu.matmul %37, %39, %cst_23 {dimension_numbers = #tpu.dot_dimension_numbers<[1], [0], [0], [1], [0, 0, 1, 1], [], []>} : vector<32x32xbf16>, vector<32x16xbf16>, vector<32x16xf32> -> vector<32x16xf32>
    %c0_24 = arith.constant 0 : index
    %c0_25 = arith.constant 0 : index
    %41 = vector.load %arg9[%c0_24, %c0_25] : memref<1x16xf32, #tpu.memory_space<vmem>>, vector<1x16xf32>
    %42 = vector.broadcast %41 : vector<1x16xf32> to vector<32x16xf32>
    %43 = arith.addf %40, %42 : vector<32x16xf32>
    %c0_26 = arith.constant 0 : index
    %c0_27 = arith.constant 0 : index
    %44 = vector.load %arg10[%c0_26, %c0_27] : memref<32x16xf32, #tpu.memory_space<vmem>>, vector<32x16xf32>
    tpu.vector_store %arg10[%c0_26, %c0_27], %43 {strides = array<i32>} : memref<32x16xf32, #tpu.memory_space<vmem>>, vector<32x16xf32>,
    return
  }
  func.func @transform_0(%arg0: i32) -> (i32, i32) {
    %c0_i32 = arith.constant 0 : i32
    %c0_i32_0 = arith.constant 0 : i32
    return %arg0, %c0_i32 : i32, i32
  }
  func.func @transform_1(%arg0: i32) -> (i32, i32) {
    %c0_i32 = arith.constant 0 : i32
    %c0_i32_0 = arith.constant 0 : i32
    %c0_i32_1 = arith.constant 0 : i32
    return %c0_i32, %c0_i32_0 : i32, i32
  }
  func.func @transform_2(%arg0: i32) -> (i32, i32) {
    %c0_i32 = arith.constant 0 : i32
    %c0_i32_0 = arith.constant 0 : i32
    %c0_i32_1 = arith.constant 0 : i32
    return %c0_i32, %c0_i32_0 : i32, i32
  }
  func.func @transform_3(%arg0: i32) -> (i32, i32) {
    %c0_i32 = arith.constant 0 : i32
    %c0_i32_0 = arith.constant 0 : i32
    %c0_i32_1 = arith.constant 0 : i32
    return %c0_i32, %c0_i32_0 : i32, i32
  }
  func.func @transform_4(%arg0: i32) -> (i32, i32) {
    %c0_i32 = arith.constant 0 : i32
    %c0_i32_0 = arith.constant 0 : i32
    %c0_i32_1 = arith.constant 0 : i32
    return %c0_i32, %c0_i32_0 : i32, i32
  }
  func.func @transform_5(%arg0: i32) -> (i32, i32) {
    %c0_i32 = arith.constant 0 : i32
    %c0_i32_0 = arith.constant 0 : i32
    %c0_i32_1 = arith.constant 0 : i32
    return %c0_i32, %c0_i32_0 : i32, i32
  }
  func.func @transform_6(%arg0: i32) -> (i32, i32) {
    %c0_i32 = arith.constant 0 : i32
    %c0_i32_0 = arith.constant 0 : i32
    %c0_i32_1 = arith.constant 0 : i32
    return %c0_i32, %c0_i32_0 : i32, i32
  }
  func.func @transform_7(%arg0: i32) -> (i32, i32) {
    %c0_i32 = arith.constant 0 : i32
    %c0_i32_0 = arith.constant 0 : i32
    %c0_i32_1 = arith.constant 0 : i32
    return %c0_i32, %c0_i32_0 : i32, i32
  }
  func.func @transform_8(%arg0: i32) -> (i32, i32) {
    %c0_i32 = arith.constant 0 : i32
    %c0_i32_0 = arith.constant 0 : i32
    %c0_i32_1 = arith.constant 0 : i32
    return %c0_i32, %c0_i32_0 : i32, i32
  }
  func.func @transform_9(%arg0: i32) -> (i32, i32) {
    %c0_i32 = arith.constant 0 : i32
    %c0_i32_0 = arith.constant 0 : i32
    return %arg0, %c0_i32 : i32, i32
  }
}

module attributes {stable_mosaic.version = 11 : i64} {
  func.func @gnn_layer_kernel(%arg0: i32, %arg1: i32, %arg2: memref<32x32xbf16, #tpu.memory_space<vmem>>, %arg3: memref<32x32xf32, #tpu.memory_space<vmem>>, %arg4: memref<32x32xf32, #tpu.memory_space<vmem>>, %arg5: memref<32x32xf32, #tpu.memory_space<vmem>>, %arg6: memref<32x32xf32, #tpu.memory_space<vmem>>) attributes {dimension_semantics = [#tpu.dimension_semantics<parallel>, #tpu.dimension_semantics<arbitrary>], iteration_bounds = array<i64: 1, 1>, scalar_prefetch = 0 : i64, scratch_operands = 1 : i64, tpu.core_type = #tpu.core_type<tc>, window_params = [{transform_indices = @transform_0, window_bounds = array<i64: 32, 32>}, {transform_indices = @transform_1, window_bounds = array<i64: 32, 32>}, {pipeline_mode = #tpu.pipeline_mode<synchronous>, transform_indices = @transform_2, window_bounds = array<i64: 32, 32>}, {transform_indices = @transform_3, window_bounds = array<i64: 32, 32>}]} {
    %c0_i32 = arith.constant 0 : i32
    %0 = arith.cmpi eq, %arg1, %c0_i32 : i32
    %1 = arith.extui %0 : i1 to i32
    %c0_i32_0 = arith.constant 0 : i32
    %2 = arith.cmpi ne, %1, %c0_i32_0 : i32
    scf.if %2 {
      %cst_13 = arith.constant 0.000000e+00 : f32
      %17 = vector.broadcast %cst_13 : f32 to vector<32x32xf32>
      %c0_14 = arith.constant 0 : index
      %c0_15 = arith.constant 0 : index
      %18 = vector.load %arg6[%c0_14, %c0_15] : memref<32x32xf32, #tpu.memory_space<vmem>>, vector<32x32xf32>
      tpu.vector_store %arg6[%c0_14, %c0_15], %17 {strides = array<i32>} : memref<32x32xf32, #tpu.memory_space<vmem>>, vector<32x32xf32>,
    } else {
    }
    %c0 = arith.constant 0 : index
    %c0_1 = arith.constant 0 : index
    %3 = vector.load %arg2[%c0, %c0_1] : memref<32x32xbf16, #tpu.memory_space<vmem>>, vector<32x32xbf16>
    %c0_2 = arith.constant 0 : index
    %c0_3 = arith.constant 0 : index
    %4 = vector.load %arg3[%c0_2, %c0_3] : memref<32x32xf32, #tpu.memory_space<vmem>>, vector<32x32xf32>
    %5 = arith.truncf %4 : vector<32x32xf32> to vector<32x32xbf16>
    %c0_4 = arith.constant 0 : index
    %c0_5 = arith.constant 0 : index
    %6 = vector.load %arg4[%c0_4, %c0_5] : memref<32x32xf32, #tpu.memory_space<vmem>>, vector<32x32xf32>
    %7 = arith.truncf %6 : vector<32x32xf32> to vector<32x32xbf16>
    %cst = arith.constant dense<0.000000e+00> : vector<32x32xf32>
    %8 = tpu.matmul %5, %7, %cst {dimension_numbers = #tpu.dot_dimension_numbers<[1], [0], [0], [1], [0, 0, 1, 1], [], []>} : vector<32x32xbf16>, vector<32x32xbf16>, vector<32x32xf32> -> vector<32x32xf32>
    %c0_6 = arith.constant 0 : index
    %c0_7 = arith.constant 0 : index
    %9 = vector.load %arg6[%c0_6, %c0_7] : memref<32x32xf32, #tpu.memory_space<vmem>>, vector<32x32xf32>
    %10 = arith.truncf %8 : vector<32x32xf32> to vector<32x32xbf16>
    %cst_8 = arith.constant dense<0.000000e+00> : vector<32x32xf32>
    %11 = tpu.matmul %3, %10, %cst_8 {dimension_numbers = #tpu.dot_dimension_numbers<[1], [0], [0], [1], [0, 0, 1, 1], [], []>} : vector<32x32xbf16>, vector<32x32xbf16>, vector<32x32xf32> -> vector<32x32xf32>
    %12 = arith.addf %9, %11 : vector<32x32xf32>
    %c0_9 = arith.constant 0 : index
    %c0_10 = arith.constant 0 : index
    %13 = vector.load %arg6[%c0_9, %c0_10] : memref<32x32xf32, #tpu.memory_space<vmem>>, vector<32x32xf32>
    tpu.vector_store %arg6[%c0_9, %c0_10], %12 {strides = array<i32>} : memref<32x32xf32, #tpu.memory_space<vmem>>, vector<32x32xf32>,
    %c0_i32_11 = arith.constant 0 : i32
    %14 = arith.cmpi eq, %arg1, %c0_i32_11 : i32
    %15 = arith.extui %14 : i1 to i32
    %c0_i32_12 = arith.constant 0 : i32
    %16 = arith.cmpi ne, %15, %c0_i32_12 : i32
    scf.if %16 {
      %c0_13 = arith.constant 0 : index
      %c0_14 = arith.constant 0 : index
      %17 = vector.load %arg6[%c0_13, %c0_14] : memref<32x32xf32, #tpu.memory_space<vmem>>, vector<32x32xf32>
      %c0_15 = arith.constant 0 : index
      %c0_16 = arith.constant 0 : index
      %18 = vector.load %arg5[%c0_15, %c0_16] : memref<32x32xf32, #tpu.memory_space<vmem>>, vector<32x32xf32>
      tpu.vector_store %arg5[%c0_15, %c0_16], %17 {strides = array<i32>} : memref<32x32xf32, #tpu.memory_space<vmem>>, vector<32x32xf32>,
    } else {
    }
    return
  }
  func.func @transform_0(%arg0: i32, %arg1: i32) -> (i32, i32) {
    %c0_i32 = arith.constant 0 : i32
    return %arg0, %arg1 : i32, i32
  }
  func.func @transform_1(%arg0: i32, %arg1: i32) -> (i32, i32) {
    %c0_i32 = arith.constant 0 : i32
    %c0_i32_0 = arith.constant 0 : i32
    return %arg1, %c0_i32 : i32, i32
  }
  func.func @transform_2(%arg0: i32, %arg1: i32) -> (i32, i32) {
    %c0_i32 = arith.constant 0 : i32
    %c0_i32_0 = arith.constant 0 : i32
    %c0_i32_1 = arith.constant 0 : i32
    return %c0_i32, %c0_i32_0 : i32, i32
  }
  func.func @transform_3(%arg0: i32, %arg1: i32) -> (i32, i32) {
    %c0_i32 = arith.constant 0 : i32
    %c0_i32_0 = arith.constant 0 : i32
    return %arg0, %c0_i32 : i32, i32
  }
}

module attributes {stable_mosaic.version = 11 : i64} {
  func.func @gnn_layer_kernel(%arg0: i32, %arg1: i32, %arg2: memref<32x32xbf16, #tpu.memory_space<vmem>>, %arg3: memref<32x32xf32, #tpu.memory_space<vmem>>, %arg4: memref<32x16xf32, #tpu.memory_space<vmem>>, %arg5: memref<32x16xf32, #tpu.memory_space<vmem>>, %arg6: memref<32x16xf32, #tpu.memory_space<vmem>>) attributes {dimension_semantics = [#tpu.dimension_semantics<parallel>, #tpu.dimension_semantics<arbitrary>], iteration_bounds = array<i64: 1, 1>, scalar_prefetch = 0 : i64, scratch_operands = 1 : i64, tpu.core_type = #tpu.core_type<tc>, window_params = [{transform_indices = @transform_0, window_bounds = array<i64: 32, 32>}, {transform_indices = @transform_1, window_bounds = array<i64: 32, 32>}, {pipeline_mode = #tpu.pipeline_mode<synchronous>, transform_indices = @transform_2, window_bounds = array<i64: 32, 16>}, {transform_indices = @transform_3, window_bounds = array<i64: 32, 16>}]} {
    %c0_i32 = arith.constant 0 : i32
    %0 = arith.cmpi eq, %arg1, %c0_i32 : i32
    %1 = arith.extui %0 : i1 to i32
    %c0_i32_0 = arith.constant 0 : i32
    %2 = arith.cmpi ne, %1, %c0_i32_0 : i32
    scf.if %2 {
      %cst_13 = arith.constant 0.000000e+00 : f32
      %17 = vector.broadcast %cst_13 : f32 to vector<32x16xf32>
      %c0_14 = arith.constant 0 : index
      %c0_15 = arith.constant 0 : index
      %18 = vector.load %arg6[%c0_14, %c0_15] : memref<32x16xf32, #tpu.memory_space<vmem>>, vector<32x16xf32>
      tpu.vector_store %arg6[%c0_14, %c0_15], %17 {strides = array<i32>} : memref<32x16xf32, #tpu.memory_space<vmem>>, vector<32x16xf32>,
    } else {
    }
    %c0 = arith.constant 0 : index
    %c0_1 = arith.constant 0 : index
    %3 = vector.load %arg2[%c0, %c0_1] : memref<32x32xbf16, #tpu.memory_space<vmem>>, vector<32x32xbf16>
    %c0_2 = arith.constant 0 : index
    %c0_3 = arith.constant 0 : index
    %4 = vector.load %arg3[%c0_2, %c0_3] : memref<32x32xf32, #tpu.memory_space<vmem>>, vector<32x32xf32>
    %5 = arith.truncf %4 : vector<32x32xf32> to vector<32x32xbf16>
    %c0_4 = arith.constant 0 : index
    %c0_5 = arith.constant 0 : index
    %6 = vector.load %arg4[%c0_4, %c0_5] : memref<32x16xf32, #tpu.memory_space<vmem>>, vector<32x16xf32>
    %7 = arith.truncf %6 : vector<32x16xf32> to vector<32x16xbf16>
    %cst = arith.constant dense<0.000000e+00> : vector<32x16xf32>
    %8 = tpu.matmul %5, %7, %cst {dimension_numbers = #tpu.dot_dimension_numbers<[1], [0], [0], [1], [0, 0, 1, 1], [], []>} : vector<32x32xbf16>, vector<32x16xbf16>, vector<32x16xf32> -> vector<32x16xf32>
    %c0_6 = arith.constant 0 : index
    %c0_7 = arith.constant 0 : index
    %9 = vector.load %arg6[%c0_6, %c0_7] : memref<32x16xf32, #tpu.memory_space<vmem>>, vector<32x16xf32>
    %10 = arith.truncf %8 : vector<32x16xf32> to vector<32x16xbf16>
    %cst_8 = arith.constant dense<0.000000e+00> : vector<32x16xf32>
    %11 = tpu.matmul %3, %10, %cst_8 {dimension_numbers = #tpu.dot_dimension_numbers<[1], [0], [0], [1], [0, 0, 1, 1], [], []>} : vector<32x32xbf16>, vector<32x16xbf16>, vector<32x16xf32> -> vector<32x16xf32>
    %12 = arith.addf %9, %11 : vector<32x16xf32>
    %c0_9 = arith.constant 0 : index
    %c0_10 = arith.constant 0 : index
    %13 = vector.load %arg6[%c0_9, %c0_10] : memref<32x16xf32, #tpu.memory_space<vmem>>, vector<32x16xf32>
    tpu.vector_store %arg6[%c0_9, %c0_10], %12 {strides = array<i32>} : memref<32x16xf32, #tpu.memory_space<vmem>>, vector<32x16xf32>,
    %c0_i32_11 = arith.constant 0 : i32
    %14 = arith.cmpi eq, %arg1, %c0_i32_11 : i32
    %15 = arith.extui %14 : i1 to i32
    %c0_i32_12 = arith.constant 0 : i32
    %16 = arith.cmpi ne, %15, %c0_i32_12 : i32
    scf.if %16 {
      %c0_13 = arith.constant 0 : index
      %c0_14 = arith.constant 0 : index
      %17 = vector.load %arg6[%c0_13, %c0_14] : memref<32x16xf32, #tpu.memory_space<vmem>>, vector<32x16xf32>
      %c0_15 = arith.constant 0 : index
      %c0_16 = arith.constant 0 : index
      %18 = vector.load %arg5[%c0_15, %c0_16] : memref<32x16xf32, #tpu.memory_space<vmem>>, vector<32x16xf32>
      tpu.vector_store %arg5[%c0_15, %c0_16], %17 {strides = array<i32>} : memref<32x16xf32, #tpu.memory_space<vmem>>, vector<32x16xf32>,
    } else {
    }
    return
  }
  func.func @transform_0(%arg0: i32, %arg1: i32) -> (i32, i32) {
    %c0_i32 = arith.constant 0 : i32
    return %arg0, %arg1 : i32, i32
  }
  func.func @transform_1(%arg0: i32, %arg1: i32) -> (i32, i32) {
    %c0_i32 = arith.constant 0 : i32
    %c0_i32_0 = arith.constant 0 : i32
    return %arg1, %c0_i32 : i32, i32
  }
  func.func @transform_2(%arg0: i32, %arg1: i32) -> (i32, i32) {
    %c0_i32 = arith.constant 0 : i32
    %c0_i32_0 = arith.constant 0 : i32
    %c0_i32_1 = arith.constant 0 : i32
    return %c0_i32, %c0_i32_0 : i32, i32
  }
  func.func @transform_3(%arg0: i32, %arg1: i32) -> (i32, i32) {
    %c0_i32 = arith.constant 0 : i32
    %c0_i32_0 = arith.constant 0 : i32
    return %arg0, %c0_i32 : i32, i32
  }
}

module attributes {stable_mosaic.version = 11 : i64} {
  func.func @gnn_layer_kernel(%arg0: i32, %arg1: i32, %arg2: memref<32x32xbf16, #tpu.memory_space<vmem>>, %arg3: memref<32x64xf32, #tpu.memory_space<vmem>>, %arg4: memref<64x32xf32, #tpu.memory_space<vmem>>, %arg5: memref<32x32xf32, #tpu.memory_space<vmem>>, %arg6: memref<32x32xf32, #tpu.memory_space<vmem>>) attributes {dimension_semantics = [#tpu.dimension_semantics<parallel>, #tpu.dimension_semantics<arbitrary>], iteration_bounds = array<i64: 1, 1>, scalar_prefetch = 0 : i64, scratch_operands = 1 : i64, tpu.core_type = #tpu.core_type<tc>, window_params = [{transform_indices = @transform_0, window_bounds = array<i64: 32, 32>}, {transform_indices = @transform_1, window_bounds = array<i64: 32, 64>}, {pipeline_mode = #tpu.pipeline_mode<synchronous>, transform_indices = @transform_2, window_bounds = array<i64: 64, 32>}, {transform_indices = @transform_3, window_bounds = array<i64: 32, 32>}]} {
    %c0_i32 = arith.constant 0 : i32
    %0 = arith.cmpi eq, %arg1, %c0_i32 : i32
    %1 = arith.extui %0 : i1 to i32
    %c0_i32_0 = arith.constant 0 : i32
    %2 = arith.cmpi ne, %1, %c0_i32_0 : i32
    scf.if %2 {
      %cst_13 = arith.constant 0.000000e+00 : f32
      %17 = vector.broadcast %cst_13 : f32 to vector<32x32xf32>
      %c0_14 = arith.constant 0 : index
      %c0_15 = arith.constant 0 : index
      %18 = vector.load %arg6[%c0_14, %c0_15] : memref<32x32xf32, #tpu.memory_space<vmem>>, vector<32x32xf32>
      tpu.vector_store %arg6[%c0_14, %c0_15], %17 {strides = array<i32>} : memref<32x32xf32, #tpu.memory_space<vmem>>, vector<32x32xf32>,
    } else {
    }
    %c0 = arith.constant 0 : index
    %c0_1 = arith.constant 0 : index
    %3 = vector.load %arg2[%c0, %c0_1] : memref<32x32xbf16, #tpu.memory_space<vmem>>, vector<32x32xbf16>
    %c0_2 = arith.constant 0 : index
    %c0_3 = arith.constant 0 : index
    %4 = vector.load %arg3[%c0_2, %c0_3] : memref<32x64xf32, #tpu.memory_space<vmem>>, vector<32x64xf32>
    %5 = arith.truncf %4 : vector<32x64xf32> to vector<32x64xbf16>
    %c0_4 = arith.constant 0 : index
    %c0_5 = arith.constant 0 : index
    %6 = vector.load %arg4[%c0_4, %c0_5] : memref<64x32xf32, #tpu.memory_space<vmem>>, vector<64x32xf32>
    %7 = arith.truncf %6 : vector<64x32xf32> to vector<64x32xbf16>
    %cst = arith.constant dense<0.000000e+00> : vector<32x32xf32>
    %8 = tpu.matmul %5, %7, %cst {dimension_numbers = #tpu.dot_dimension_numbers<[1], [0], [0], [1], [0, 0, 1, 1], [], []>} : vector<32x64xbf16>, vector<64x32xbf16>, vector<32x32xf32> -> vector<32x32xf32>
    %c0_6 = arith.constant 0 : index
    %c0_7 = arith.constant 0 : index
    %9 = vector.load %arg6[%c0_6, %c0_7] : memref<32x32xf32, #tpu.memory_space<vmem>>, vector<32x32xf32>
    %10 = arith.truncf %8 : vector<32x32xf32> to vector<32x32xbf16>
    %cst_8 = arith.constant dense<0.000000e+00> : vector<32x32xf32>
    %11 = tpu.matmul %3, %10, %cst_8 {dimension_numbers = #tpu.dot_dimension_numbers<[1], [0], [0], [1], [0, 0, 1, 1], [], []>} : vector<32x32xbf16>, vector<32x32xbf16>, vector<32x32xf32> -> vector<32x32xf32>
    %12 = arith.addf %9, %11 : vector<32x32xf32>
    %c0_9 = arith.constant 0 : index
    %c0_10 = arith.constant 0 : index
    %13 = vector.load %arg6[%c0_9, %c0_10] : memref<32x32xf32, #tpu.memory_space<vmem>>, vector<32x32xf32>
    tpu.vector_store %arg6[%c0_9, %c0_10], %12 {strides = array<i32>} : memref<32x32xf32, #tpu.memory_space<vmem>>, vector<32x32xf32>,
    %c0_i32_11 = arith.constant 0 : i32
    %14 = arith.cmpi eq, %arg1, %c0_i32_11 : i32
    %15 = arith.extui %14 : i1 to i32
    %c0_i32_12 = arith.constant 0 : i32
    %16 = arith.cmpi ne, %15, %c0_i32_12 : i32
    scf.if %16 {
      %c0_13 = arith.constant 0 : index
      %c0_14 = arith.constant 0 : index
      %17 = vector.load %arg6[%c0_13, %c0_14] : memref<32x32xf32, #tpu.memory_space<vmem>>, vector<32x32xf32>
      %c0_15 = arith.constant 0 : index
      %c0_16 = arith.constant 0 : index
      %18 = vector.load %arg5[%c0_15, %c0_16] : memref<32x32xf32, #tpu.memory_space<vmem>>, vector<32x32xf32>
      tpu.vector_store %arg5[%c0_15, %c0_16], %17 {strides = array<i32>} : memref<32x32xf32, #tpu.memory_space<vmem>>, vector<32x32xf32>,
    } else {
    }
    return
  }
  func.func @transform_0(%arg0: i32, %arg1: i32) -> (i32, i32) {
    %c0_i32 = arith.constant 0 : i32
    return %arg0, %arg1 : i32, i32
  }
  func.func @transform_1(%arg0: i32, %arg1: i32) -> (i32, i32) {
    %c0_i32 = arith.constant 0 : i32
    %c0_i32_0 = arith.constant 0 : i32
    return %arg1, %c0_i32 : i32, i32
  }
  func.func @transform_2(%arg0: i32, %arg1: i32) -> (i32, i32) {
    %c0_i32 = arith.constant 0 : i32
    %c0_i32_0 = arith.constant 0 : i32
    %c0_i32_1 = arith.constant 0 : i32
    return %c0_i32, %c0_i32_0 : i32, i32
  }
  func.func @transform_3(%arg0: i32, %arg1: i32) -> (i32, i32) {
    %c0_i32 = arith.constant 0 : i32
    %c0_i32_0 = arith.constant 0 : i32
    return %arg0, %c0_i32 : i32, i32
  }
}

module attributes {stable_mosaic.version = 11 : i64} {
  func.func @zl_kernel(%arg0: i32, %arg1: i32, %arg2: memref<32x32xbf16, #tpu.memory_space<vmem>>, %arg3: memref<32x16xf32, #tpu.memory_space<vmem>>, %arg4: memref<32x16xf32, #tpu.memory_space<vmem>>, %arg5: memref<32x16xf32, #tpu.memory_space<vmem>>, %arg6: memref<32x16xf32, #tpu.memory_space<vmem>>, %arg7: memref<32x16xf32, #tpu.memory_space<vmem>>) attributes {dimension_semantics = [#tpu.dimension_semantics<parallel>, #tpu.dimension_semantics<arbitrary>], iteration_bounds = array<i64: 1, 1>, scalar_prefetch = 0 : i64, scratch_operands = 1 : i64, tpu.core_type = #tpu.core_type<tc>, window_params = [{transform_indices = @transform_0, window_bounds = array<i64: 32, 32>}, {transform_indices = @transform_1, window_bounds = array<i64: 32, 16>}, {transform_indices = @transform_2, window_bounds = array<i64: 32, 16>}, {transform_indices = @transform_3, window_bounds = array<i64: 32, 16>}, {transform_indices = @transform_4, window_bounds = array<i64: 32, 16>}]} {
    %c0_i32 = arith.constant 0 : i32
    %0 = arith.cmpi eq, %arg1, %c0_i32 : i32
    %1 = arith.extui %0 : i1 to i32
    %c0_i32_0 = arith.constant 0 : i32
    %2 = arith.cmpi ne, %1, %c0_i32_0 : i32
    scf.if %2 {
      %cst_15 = arith.constant 0.000000e+00 : f32
      %20 = vector.broadcast %cst_15 : f32 to vector<32x16xf32>
      %c0_16 = arith.constant 0 : index
      %c0_17 = arith.constant 0 : index
      %21 = vector.load %arg7[%c0_16, %c0_17] : memref<32x16xf32, #tpu.memory_space<vmem>>, vector<32x16xf32>
      tpu.vector_store %arg7[%c0_16, %c0_17], %20 {strides = array<i32>} : memref<32x16xf32, #tpu.memory_space<vmem>>, vector<32x16xf32>,
    } else {
    }
    %c0 = arith.constant 0 : index
    %c0_1 = arith.constant 0 : index
    %3 = vector.load %arg5[%c0, %c0_1] : memref<32x16xf32, #tpu.memory_space<vmem>>, vector<32x16xf32>
    %c0_2 = arith.constant 0 : index
    %c0_3 = arith.constant 0 : index
    %4 = vector.load %arg3[%c0_2, %c0_3] : memref<32x16xf32, #tpu.memory_space<vmem>>, vector<32x16xf32>
    %5 = arith.mulf %3, %4 : vector<32x16xf32>
    %cst = arith.constant 1.000000e+00 : f32
    %6 = vector.broadcast %cst : f32 to vector<32x16xf32>
    %7 = arith.subf %6, %3 : vector<32x16xf32>
    %c0_4 = arith.constant 0 : index
    %c0_5 = arith.constant 0 : index
    %8 = vector.load %arg4[%c0_4, %c0_5] : memref<32x16xf32, #tpu.memory_space<vmem>>, vector<32x16xf32>
    %9 = arith.mulf %7, %8 : vector<32x16xf32>
    %10 = arith.addf %5, %9 : vector<32x16xf32>
    %c0_6 = arith.constant 0 : index
    %c0_7 = arith.constant 0 : index
    %11 = vector.load %arg2[%c0_6, %c0_7] : memref<32x32xbf16, #tpu.memory_space<vmem>>, vector<32x32xbf16>
    %c0_8 = arith.constant 0 : index
    %c0_9 = arith.constant 0 : index
    %12 = vector.load %arg7[%c0_8, %c0_9] : memref<32x16xf32, #tpu.memory_space<vmem>>, vector<32x16xf32>
    %13 = arith.truncf %10 : vector<32x16xf32> to vector<32x16xbf16>
    %cst_10 = arith.constant dense<0.000000e+00> : vector<32x16xf32>
    %14 = tpu.matmul %11, %13, %cst_10 {dimension_numbers = #tpu.dot_dimension_numbers<[1], [0], [0], [1], [0, 0, 1, 1], [], []>} : vector<32x32xbf16>, vector<32x16xbf16>, vector<32x16xf32> -> vector<32x16xf32>
    %15 = arith.addf %12, %14 : vector<32x16xf32>
    %c0_11 = arith.constant 0 : index
    %c0_12 = arith.constant 0 : index
    %16 = vector.load %arg7[%c0_11, %c0_12] : memref<32x16xf32, #tpu.memory_space<vmem>>, vector<32x16xf32>
    tpu.vector_store %arg7[%c0_11, %c0_12], %15 {strides = array<i32>} : memref<32x16xf32, #tpu.memory_space<vmem>>, vector<32x16xf32>,
    %c0_i32_13 = arith.constant 0 : i32
    %17 = arith.cmpi eq, %arg1, %c0_i32_13 : i32
    %18 = arith.extui %17 : i1 to i32
    %c0_i32_14 = arith.constant 0 : i32
    %19 = arith.cmpi ne, %18, %c0_i32_14 : i32
    scf.if %19 {
      %c0_15 = arith.constant 0 : index
      %c0_16 = arith.constant 0 : index
      %20 = vector.load %arg7[%c0_15, %c0_16] : memref<32x16xf32, #tpu.memory_space<vmem>>, vector<32x16xf32>
      %c0_17 = arith.constant 0 : index
      %c0_18 = arith.constant 0 : index
      %21 = vector.load %arg6[%c0_17, %c0_18] : memref<32x16xf32, #tpu.memory_space<vmem>>, vector<32x16xf32>
      tpu.vector_store %arg6[%c0_17, %c0_18], %20 {strides = array<i32>} : memref<32x16xf32, #tpu.memory_space<vmem>>, vector<32x16xf32>,
    } else {
    }
    return
  }
  func.func @transform_0(%arg0: i32, %arg1: i32) -> (i32, i32) {
    %c0_i32 = arith.constant 0 : i32
    return %arg0, %arg1 : i32, i32
  }
  func.func @transform_1(%arg0: i32, %arg1: i32) -> (i32, i32) {
    %c0_i32 = arith.constant 0 : i32
    %c0_i32_0 = arith.constant 0 : i32
    return %arg1, %c0_i32 : i32, i32
  }
  func.func @transform_2(%arg0: i32, %arg1: i32) -> (i32, i32) {
    %c0_i32 = arith.constant 0 : i32
    %c0_i32_0 = arith.constant 0 : i32
    return %arg1, %c0_i32 : i32, i32
  }
  func.func @transform_3(%arg0: i32, %arg1: i32) -> (i32, i32) {
    %c0_i32 = arith.constant 0 : i32
    %c0_i32_0 = arith.constant 0 : i32
    return %arg1, %c0_i32 : i32, i32
  }
  func.func @transform_4(%arg0: i32, %arg1: i32) -> (i32, i32) {
    %c0_i32 = arith.constant 0 : i32
    %c0_i32_0 = arith.constant 0 : i32
    return %arg0, %c0_i32 : i32, i32
  }
}

module attributes {stable_mosaic.version = 11 : i64} {
  func.func @fuse_q_kernel(%arg0: i32, %arg1: memref<32x16xf32, #tpu.memory_space<vmem>>, %arg2: memref<32x16xf32, #tpu.memory_space<vmem>>, %arg3: memref<32x16xf32, #tpu.memory_space<vmem>>, %arg4: memref<32x16xf32, #tpu.memory_space<vmem>>, %arg5: memref<1x1xf32, #tpu.memory_space<vmem>>, %arg6: memref<8x16xf32, #tpu.memory_space<vmem>>, %arg7: memref<32x16xf32, #tpu.memory_space<vmem>>, %arg8: memref<32x8xf32, #tpu.memory_space<vmem>>, %arg9: memref<32x8xf32, #tpu.memory_space<vmem>>, %arg10: memref<32x8xf32, #tpu.memory_space<vmem>>) attributes {dimension_semantics = [#tpu.dimension_semantics<parallel>], iteration_bounds = array<i64: 1>, scalar_prefetch = 0 : i64, scratch_operands = 0 : i64, tpu.core_type = #tpu.core_type<tc>, window_params = [{transform_indices = @transform_0, window_bounds = array<i64: 32, 16>}, {transform_indices = @transform_1, window_bounds = array<i64: 32, 16>}, {transform_indices = @transform_2, window_bounds = array<i64: 32, 16>}, {pipeline_mode = #tpu.pipeline_mode<synchronous>, transform_indices = @transform_3, window_bounds = array<i64: 32, 16>}, {pipeline_mode = #tpu.pipeline_mode<synchronous>, transform_indices = @transform_4, window_bounds = array<i64: 1, 1>}, {pipeline_mode = #tpu.pipeline_mode<synchronous>, transform_indices = @transform_5, window_bounds = array<i64: 8, 16>}, {transform_indices = @transform_6, window_bounds = array<i64: 32, 16>}, {transform_indices = @transform_7, window_bounds = array<i64: 32, 8>}, {transform_indices = @transform_8, window_bounds = array<i64: 32, 8>}, {transform_indices = @transform_9, window_bounds = array<i64: 32, 8>}]} {
    %c0 = arith.constant 0 : index
    %c0_0 = arith.constant 0 : index
    %0 = vector.load %arg1[%c0, %c0_0] : memref<32x16xf32, #tpu.memory_space<vmem>>, vector<32x16xf32>
    %1 = arith.truncf %0 : vector<32x16xf32> to vector<32x16xbf16>
    %cst = arith.constant 0xFF800000 : f32
    %2 = vector.broadcast %cst : f32 to vector<32x1xf32>
    %cst_1 = arith.constant 0.000000e+00 : f32
    %3 = vector.broadcast %cst_1 : f32 to vector<32x1xf32>
    %cst_2 = arith.constant 0.000000e+00 : f32
    %4 = vector.broadcast %cst_2 : f32 to vector<32x16xf32>
    %c0_3 = arith.constant 0 : index
    %c0_4 = arith.constant 0 : index
    %5 = vector.load %arg4[%c0_3, %c0_4] : memref<32x16xf32, #tpu.memory_space<vmem>>, vector<32x16xf32>
    %6 = arith.truncf %5 : vector<32x16xf32> to vector<32x16xbf16>
    %cst_5 = arith.constant dense<0.000000e+00> : vector<32x32xf32>
    %7 = tpu.matmul %1, %6, %cst_5 {dimension_numbers = #tpu.dot_dimension_numbers<[1], [1], [0], [0], [0, 0, 1, 0], [], []>} : vector<32x16xbf16>, vector<32x16xbf16>, vector<32x32xf32> -> vector<32x32xf32>
    %cst_6 = arith.constant dense<0xFF800000> : vector<32xf32>
    %8 = vector.multi_reduction <maximumf>, %7, %cst_6 [1] : vector<32x32xf32> to vector<32xf32>
    %9 = vector.shape_cast %8 : vector<32xf32> to vector<32x1xf32>
    %10 = arith.maximumf %2, %9 : vector<32x1xf32>
    %11 = arith.subf %2, %10 : vector<32x1xf32>
    %12 = math.exp %11 : vector<32x1xf32>
    %13 = vector.broadcast %10 : vector<32x1xf32> to vector<32x32xf32>
    %14 = arith.subf %7, %13 : vector<32x32xf32>
    %15 = math.exp %14 : vector<32x32xf32>
    %16 = arith.mulf %12, %3 : vector<32x1xf32>
    %cst_7 = arith.constant dense<0.000000e+00> : vector<32xf32>
    %17 = vector.multi_reduction <add>, %15, %cst_7 [1] : vector<32x32xf32> to vector<32xf32>
    %18 = vector.shape_cast %17 : vector<32xf32> to vector<32x1xf32>
    %19 = arith.addf %16, %18 : vector<32x1xf32>
    %20 = vector.broadcast %12 : vector<32x1xf32> to vector<32x16xf32>
    %21 = arith.mulf %20, %4 : vector<32x16xf32>
    %22 = arith.truncf %15 : vector<32x32xf32> to vector<32x32xbf16>
    %cst_8 = arith.constant dense<0.000000e+00> : vector<32x16xf32>
    %23 = tpu.matmul %22, %6, %cst_8 {dimension_numbers = #tpu.dot_dimension_numbers<[1], [0], [0], [1], [0, 0, 1, 1], [], []>} : vector<32x32xbf16>, vector<32x16xbf16>, vector<32x16xf32> -> vector<32x16xf32>
    %24 = arith.addf %21, %23 : vector<32x16xf32>
    %c0_9 = arith.constant 0 : index
    %c0_10 = arith.constant 0 : index
    %25 = vector.load %arg5[%c0_9, %c0_10] : memref<1x1xf32, #tpu.memory_space<vmem>>, vector<1x1xf32>
    %26 = vector.broadcast %19 : vector<32x1xf32> to vector<32x16xf32>
    %27 = arith.divf %24, %26 : vector<32x16xf32>
    %28 = vector.broadcast %25 : vector<1x1xf32> to vector<32x16xf32>
    %29 = arith.mulf %28, %27 : vector<32x16xf32>
    %30 = arith.addf %29, %0 : vector<32x16xf32>
    %c0_11 = arith.constant 0 : index
    %c0_12 = arith.constant 0 : index
    %31 = vector.load %arg7[%c0_11, %c0_12] : memref<32x16xf32, #tpu.memory_space<vmem>>, vector<32x16xf32>
    tpu.vector_store %arg7[%c0_11, %c0_12], %30 {strides = array<i32>} : memref<32x16xf32, #tpu.memory_space<vmem>>, vector<32x16xf32>,
    %c0_13 = arith.constant 0 : index
    %c0_14 = arith.constant 0 : index
    %32 = vector.load %arg6[%c0_13, %c0_14] : memref<8x16xf32, #tpu.memory_space<vmem>>, vector<8x16xf32>
    %c0_15 = arith.constant 0 : index
    %c0_16 = arith.constant 0 : index
    %33 = vector.load %arg2[%c0_15, %c0_16] : memref<32x16xf32, #tpu.memory_space<vmem>>, vector<32x16xf32>
    %c0_17 = arith.constant 0 : index
    %c0_18 = arith.constant 0 : index
    %34 = vector.load %arg3[%c0_17, %c0_18] : memref<32x16xf32, #tpu.memory_space<vmem>>, vector<32x16xf32>
    %35 = tpu.concatenate %30, %33, %34 in 0 : vector<32x16xf32>, vector<32x16xf32>, vector<32x16xf32> -> vector<96x16xf32>
    %36 = arith.mulf %35, %35 : vector<96x16xf32>
    %cst_19 = arith.constant dense<0.000000e+00> : vector<96xf32>
    %37 = vector.multi_reduction <add>, %36, %cst_19 [1] : vector<96x16xf32> to vector<96xf32>
    %38 = vector.shape_cast %37 : vector<96xf32> to vector<96x1xf32>
    %cst_20 = arith.constant 1.000000e+00 : f32
    %39 = vector.broadcast %cst_20 : f32 to vector<1x16xf32>
    %40 = arith.mulf %32, %32 : vector<8x16xf32>
    %cst_21 = arith.constant dense<0.000000e+00> : vector<1x8xf32>
    %41 = tpu.matmul %39, %40, %cst_21 {dimension_numbers = #tpu.dot_dimension_numbers<[1], [1], [0], [0], [0, 0, 1, 0], [], []>} : vector<1x16xf32>, vector<8x16xf32>, vector<1x8xf32> -> vector<1x8xf32>
    %cst_22 = arith.constant dense<0.000000e+00> : vector<96x8xf32>
    %42 = tpu.matmul %35, %32, %cst_22 {dimension_numbers = #tpu.dot_dimension_numbers<[1], [1], [0], [0], [0, 0, 1, 0], [], []>} : vector<96x16xf32>, vector<8x16xf32>, vector<96x8xf32> -> vector<96x8xf32>
    %43 = vector.broadcast %38 : vector<96x1xf32> to vector<96x8xf32>
    %44 = vector.broadcast %41 : vector<1x8xf32> to vector<96x8xf32>
    %45 = arith.addf %43, %44 : vector<96x8xf32>
    %cst_23 = arith.constant 2.000000e+00 : f32
    %46 = vector.broadcast %cst_23 : f32 to vector<96x8xf32>
    %47 = arith.mulf %46, %42 : vector<96x8xf32>
    %48 = arith.subf %45, %47 : vector<96x8xf32>
    %cst_24 = arith.constant 0.000000e+00 : f32
    %49 = vector.broadcast %cst_24 : f32 to vector<96x8xf32>
    %50 = arith.maximumf %48, %49 : vector<96x8xf32>
    %cst_25 = arith.constant 1.000000e+00 : f32
    %51 = vector.broadcast %cst_25 : f32 to vector<96x8xf32>
    %52 = arith.mulf %50, %51 : vector<96x8xf32>
    %cst_26 = arith.constant 1.000000e+00 : f32
    %53 = vector.broadcast %cst_26 : f32 to vector<96x8xf32>
    %54 = arith.addf %53, %52 : vector<96x8xf32>
    %cst_27 = arith.constant 1.000000e+00 : f32
    %55 = vector.broadcast %cst_27 : f32 to vector<96x8xf32>
    %56 = arith.divf %55, %54 : vector<96x8xf32>
    %cst_28 = arith.constant dense<0.000000e+00> : vector<96xf32>
    %57 = vector.multi_reduction <add>, %56, %cst_28 [1] : vector<96x8xf32> to vector<96xf32>
    %58 = vector.shape_cast %57 : vector<96xf32> to vector<96x1xf32>
    %59 = vector.broadcast %58 : vector<96x1xf32> to vector<96x8xf32>
    %60 = arith.divf %56, %59 : vector<96x8xf32>
    %61 = vector.extract_strided_slice %60 {offsets = [0, 0], sizes = [32, 8], strides = [1, 1]} : vector<96x8xf32> to vector<32x8xf32>
    %c0_29 = arith.constant 0 : index
    %c0_30 = arith.constant 0 : index
    %62 = vector.load %arg8[%c0_29, %c0_30] : memref<32x8xf32, #tpu.memory_space<vmem>>, vector<32x8xf32>
    tpu.vector_store %arg8[%c0_29, %c0_30], %61 {strides = array<i32>} : memref<32x8xf32, #tpu.memory_space<vmem>>, vector<32x8xf32>,
    %63 = vector.extract_strided_slice %60 {offsets = [32, 0], sizes = [32, 8], strides = [1, 1]} : vector<96x8xf32> to vector<32x8xf32>
    %c0_31 = arith.constant 0 : index
    %c0_32 = arith.constant 0 : index
    %64 = vector.load %arg9[%c0_31, %c0_32] : memref<32x8xf32, #tpu.memory_space<vmem>>, vector<32x8xf32>
    tpu.vector_store %arg9[%c0_31, %c0_32], %63 {strides = array<i32>} : memref<32x8xf32, #tpu.memory_space<vmem>>, vector<32x8xf32>,
    %65 = vector.extract_strided_slice %60 {offsets = [64, 0], sizes = [32, 8], strides = [1, 1]} : vector<96x8xf32> to vector<32x8xf32>
    %c0_33 = arith.constant 0 : index
    %c0_34 = arith.constant 0 : index
    %66 = vector.load %arg10[%c0_33, %c0_34] : memref<32x8xf32, #tpu.memory_space<vmem>>, vector<32x8xf32>
    tpu.vector_store %arg10[%c0_33, %c0_34], %65 {strides = array<i32>} : memref<32x8xf32, #tpu.memory_space<vmem>>, vector<32x8xf32>,
    return
  }
  func.func @transform_0(%arg0: i32) -> (i32, i32) {
    %c0_i32 = arith.constant 0 : i32
    %c0_i32_0 = arith.constant 0 : i32
    return %arg0, %c0_i32 : i32, i32
  }
  func.func @transform_1(%arg0: i32) -> (i32, i32) {
    %c0_i32 = arith.constant 0 : i32
    %c0_i32_0 = arith.constant 0 : i32
    return %arg0, %c0_i32 : i32, i32
  }
  func.func @transform_2(%arg0: i32) -> (i32, i32) {
    %c0_i32 = arith.constant 0 : i32
    %c0_i32_0 = arith.constant 0 : i32
    return %arg0, %c0_i32 : i32, i32
  }
  func.func @transform_3(%arg0: i32) -> (i32, i32) {
    %c0_i32 = arith.constant 0 : i32
    %c0_i32_0 = arith.constant 0 : i32
    %c0_i32_1 = arith.constant 0 : i32
    return %c0_i32, %c0_i32_0 : i32, i32
  }
  func.func @transform_4(%arg0: i32) -> (i32, i32) {
    %c0_i32 = arith.constant 0 : i32
    %c0_i32_0 = arith.constant 0 : i32
    %c0_i32_1 = arith.constant 0 : i32
    return %c0_i32, %c0_i32_0 : i32, i32
  }
  func.func @transform_5(%arg0: i32) -> (i32, i32) {
    %c0_i32 = arith.constant 0 : i32
    %c0_i32_0 = arith.constant 0 : i32
    %c0_i32_1 = arith.constant 0 : i32
    return %c0_i32, %c0_i32_0 : i32, i32
  }
  func.func @transform_6(%arg0: i32) -> (i32, i32) {
    %c0_i32 = arith.constant 0 : i32
    %c0_i32_0 = arith.constant 0 : i32
    return %arg0, %c0_i32 : i32, i32
  }
  func.func @transform_7(%arg0: i32) -> (i32, i32) {
    %c0_i32 = arith.constant 0 : i32
    %c0_i32_0 = arith.constant 0 : i32
    return %arg0, %c0_i32 : i32, i32
  }
  func.func @transform_8(%arg0: i32) -> (i32, i32) {
    %c0_i32 = arith.constant 0 : i32
    %c0_i32_0 = arith.constant 0 : i32
    return %arg0, %c0_i32 : i32, i32
  }
  func.func @transform_9(%arg0: i32) -> (i32, i32) {
    %c0_i32 = arith.constant 0 : i32
    %c0_i32_0 = arith.constant 0 : i32
    return %arg0, %c0_i32 : i32, i32
  }
}

module attributes {stable_mosaic.version = 11 : i64} {
  func.func @gnn_layer_kernel(%arg0: i32, %arg1: i32, %arg2: memref<32x32xbf16, #tpu.memory_space<vmem>>, %arg3: memref<32x16xf32, #tpu.memory_space<vmem>>, %arg4: memref<16x32xf32, #tpu.memory_space<vmem>>, %arg5: memref<32x32xf32, #tpu.memory_space<vmem>>, %arg6: memref<32x32xf32, #tpu.memory_space<vmem>>) attributes {dimension_semantics = [#tpu.dimension_semantics<parallel>, #tpu.dimension_semantics<arbitrary>], iteration_bounds = array<i64: 1, 1>, scalar_prefetch = 0 : i64, scratch_operands = 1 : i64, tpu.core_type = #tpu.core_type<tc>, window_params = [{transform_indices = @transform_0, window_bounds = array<i64: 32, 32>}, {transform_indices = @transform_1, window_bounds = array<i64: 32, 16>}, {pipeline_mode = #tpu.pipeline_mode<synchronous>, transform_indices = @transform_2, window_bounds = array<i64: 16, 32>}, {transform_indices = @transform_3, window_bounds = array<i64: 32, 32>}]} {
    %c0_i32 = arith.constant 0 : i32
    %0 = arith.cmpi eq, %arg1, %c0_i32 : i32
    %1 = arith.extui %0 : i1 to i32
    %c0_i32_0 = arith.constant 0 : i32
    %2 = arith.cmpi ne, %1, %c0_i32_0 : i32
    scf.if %2 {
      %cst_13 = arith.constant 0.000000e+00 : f32
      %17 = vector.broadcast %cst_13 : f32 to vector<32x32xf32>
      %c0_14 = arith.constant 0 : index
      %c0_15 = arith.constant 0 : index
      %18 = vector.load %arg6[%c0_14, %c0_15] : memref<32x32xf32, #tpu.memory_space<vmem>>, vector<32x32xf32>
      tpu.vector_store %arg6[%c0_14, %c0_15], %17 {strides = array<i32>} : memref<32x32xf32, #tpu.memory_space<vmem>>, vector<32x32xf32>,
    } else {
    }
    %c0 = arith.constant 0 : index
    %c0_1 = arith.constant 0 : index
    %3 = vector.load %arg2[%c0, %c0_1] : memref<32x32xbf16, #tpu.memory_space<vmem>>, vector<32x32xbf16>
    %c0_2 = arith.constant 0 : index
    %c0_3 = arith.constant 0 : index
    %4 = vector.load %arg3[%c0_2, %c0_3] : memref<32x16xf32, #tpu.memory_space<vmem>>, vector<32x16xf32>
    %5 = arith.truncf %4 : vector<32x16xf32> to vector<32x16xbf16>
    %c0_4 = arith.constant 0 : index
    %c0_5 = arith.constant 0 : index
    %6 = vector.load %arg4[%c0_4, %c0_5] : memref<16x32xf32, #tpu.memory_space<vmem>>, vector<16x32xf32>
    %7 = arith.truncf %6 : vector<16x32xf32> to vector<16x32xbf16>
    %cst = arith.constant dense<0.000000e+00> : vector<32x32xf32>
    %8 = tpu.matmul %5, %7, %cst {dimension_numbers = #tpu.dot_dimension_numbers<[1], [0], [0], [1], [0, 0, 1, 1], [], []>} : vector<32x16xbf16>, vector<16x32xbf16>, vector<32x32xf32> -> vector<32x32xf32>
    %c0_6 = arith.constant 0 : index
    %c0_7 = arith.constant 0 : index
    %9 = vector.load %arg6[%c0_6, %c0_7] : memref<32x32xf32, #tpu.memory_space<vmem>>, vector<32x32xf32>
    %10 = arith.truncf %8 : vector<32x32xf32> to vector<32x32xbf16>
    %cst_8 = arith.constant dense<0.000000e+00> : vector<32x32xf32>
    %11 = tpu.matmul %3, %10, %cst_8 {dimension_numbers = #tpu.dot_dimension_numbers<[1], [0], [0], [1], [0, 0, 1, 1], [], []>} : vector<32x32xbf16>, vector<32x32xbf16>, vector<32x32xf32> -> vector<32x32xf32>
    %12 = arith.addf %9, %11 : vector<32x32xf32>
    %c0_9 = arith.constant 0 : index
    %c0_10 = arith.constant 0 : index
    %13 = vector.load %arg6[%c0_9, %c0_10] : memref<32x32xf32, #tpu.memory_space<vmem>>, vector<32x32xf32>
    tpu.vector_store %arg6[%c0_9, %c0_10], %12 {strides = array<i32>} : memref<32x32xf32, #tpu.memory_space<vmem>>, vector<32x32xf32>,
    %c0_i32_11 = arith.constant 0 : i32
    %14 = arith.cmpi eq, %arg1, %c0_i32_11 : i32
    %15 = arith.extui %14 : i1 to i32
    %c0_i32_12 = arith.constant 0 : i32
    %16 = arith.cmpi ne, %15, %c0_i32_12 : i32
    scf.if %16 {
      %c0_13 = arith.constant 0 : index
      %c0_14 = arith.constant 0 : index
      %17 = vector.load %arg6[%c0_13, %c0_14] : memref<32x32xf32, #tpu.memory_space<vmem>>, vector<32x32xf32>
      %c0_15 = arith.constant 0 : index
      %c0_16 = arith.constant 0 : index
      %18 = vector.load %arg5[%c0_15, %c0_16] : memref<32x32xf32, #tpu.memory_space<vmem>>, vector<32x32xf32>
      tpu.vector_store %arg5[%c0_15, %c0_16], %17 {strides = array<i32>} : memref<32x32xf32, #tpu.memory_space<vmem>>, vector<32x32xf32>,
    } else {
    }
    return
  }
  func.func @transform_0(%arg0: i32, %arg1: i32) -> (i32, i32) {
    %c0_i32 = arith.constant 0 : i32
    return %arg0, %arg1 : i32, i32
  }
  func.func @transform_1(%arg0: i32, %arg1: i32) -> (i32, i32) {
    %c0_i32 = arith.constant 0 : i32
    %c0_i32_0 = arith.constant 0 : i32
    return %arg1, %c0_i32 : i32, i32
  }
  func.func @transform_2(%arg0: i32, %arg1: i32) -> (i32, i32) {
    %c0_i32 = arith.constant 0 : i32
    %c0_i32_0 = arith.constant 0 : i32
    %c0_i32_1 = arith.constant 0 : i32
    return %c0_i32, %c0_i32_0 : i32, i32
  }
  func.func @transform_3(%arg0: i32, %arg1: i32) -> (i32, i32) {
    %c0_i32 = arith.constant 0 : i32
    %c0_i32_0 = arith.constant 0 : i32
    return %arg0, %c0_i32 : i32, i32
  }
}

module attributes {stable_mosaic.version = 11 : i64} {
  func.func @mlp4_kernel(%arg0: i32, %arg1: memref<32x16xf32, #tpu.memory_space<vmem>>, %arg2: memref<16x32xf32, #tpu.memory_space<vmem>>, %arg3: memref<1x32xf32, #tpu.memory_space<vmem>>, %arg4: memref<32x32xf32, #tpu.memory_space<vmem>>, %arg5: memref<1x32xf32, #tpu.memory_space<vmem>>, %arg6: memref<32x32xf32, #tpu.memory_space<vmem>>, %arg7: memref<1x32xf32, #tpu.memory_space<vmem>>, %arg8: memref<32x64xf32, #tpu.memory_space<vmem>>, %arg9: memref<1x64xf32, #tpu.memory_space<vmem>>, %arg10: memref<32x64xf32, #tpu.memory_space<vmem>>) attributes {dimension_semantics = [#tpu.dimension_semantics<parallel>], iteration_bounds = array<i64: 1>, scalar_prefetch = 0 : i64, scratch_operands = 0 : i64, tpu.core_type = #tpu.core_type<tc>, window_params = [{transform_indices = @transform_0, window_bounds = array<i64: 32, 16>}, {pipeline_mode = #tpu.pipeline_mode<synchronous>, transform_indices = @transform_1, window_bounds = array<i64: 16, 32>}, {pipeline_mode = #tpu.pipeline_mode<synchronous>, transform_indices = @transform_2, window_bounds = array<i64: 1, 32>}, {pipeline_mode = #tpu.pipeline_mode<synchronous>, transform_indices = @transform_3, window_bounds = array<i64: 32, 32>}, {pipeline_mode = #tpu.pipeline_mode<synchronous>, transform_indices = @transform_4, window_bounds = array<i64: 1, 32>}, {pipeline_mode = #tpu.pipeline_mode<synchronous>, transform_indices = @transform_5, window_bounds = array<i64: 32, 32>}, {pipeline_mode = #tpu.pipeline_mode<synchronous>, transform_indices = @transform_6, window_bounds = array<i64: 1, 32>}, {pipeline_mode = #tpu.pipeline_mode<synchronous>, transform_indices = @transform_7, window_bounds = array<i64: 32, 64>}, {pipeline_mode = #tpu.pipeline_mode<synchronous>, transform_indices = @transform_8, window_bounds = array<i64: 1, 64>}, {transform_indices = @transform_9, window_bounds = array<i64: 32, 64>}]} {
    %c0 = arith.constant 0 : index
    %c0_0 = arith.constant 0 : index
    %0 = vector.load %arg1[%c0, %c0_0] : memref<32x16xf32, #tpu.memory_space<vmem>>, vector<32x16xf32>
    %1 = arith.truncf %0 : vector<32x16xf32> to vector<32x16xbf16>
    %c0_1 = arith.constant 0 : index
    %c0_2 = arith.constant 0 : index
    %2 = vector.load %arg2[%c0_1, %c0_2] : memref<16x32xf32, #tpu.memory_space<vmem>>, vector<16x32xf32>
    %3 = arith.truncf %2 : vector<16x32xf32> to vector<16x32xbf16>
    %cst = arith.constant dense<0.000000e+00> : vector<32x32xf32>
    %4 = tpu.matmul %1, %3, %cst {dimension_numbers = #tpu.dot_dimension_numbers<[1], [0], [0], [1], [0, 0, 1, 1], [], []>} : vector<32x16xbf16>, vector<16x32xbf16>, vector<32x32xf32> -> vector<32x32xf32>
    %c0_3 = arith.constant 0 : index
    %c0_4 = arith.constant 0 : index
    %5 = vector.load %arg3[%c0_3, %c0_4] : memref<1x32xf32, #tpu.memory_space<vmem>>, vector<1x32xf32>
    %6 = vector.broadcast %5 : vector<1x32xf32> to vector<32x32xf32>
    %7 = arith.addf %4, %6 : vector<32x32xf32>
    %cst_5 = arith.constant 0.000000e+00 : f32
    %8 = vector.broadcast %cst_5 : f32 to vector<32x32xf32>
    %9 = arith.cmpf oge, %7, %8 : vector<32x32xf32>
    %cst_6 = arith.constant 2.000000e-01 : f32
    %10 = vector.broadcast %cst_6 : f32 to vector<32x32xf32>
    %11 = arith.mulf %10, %7 : vector<32x32xf32>
    %12 = arith.select %9, %7, %11 : vector<32x32xi1>, vector<32x32xf32>
    %13 = arith.truncf %12 : vector<32x32xf32> to vector<32x32xbf16>
    %c0_7 = arith.constant 0 : index
    %c0_8 = arith.constant 0 : index
    %14 = vector.load %arg4[%c0_7, %c0_8] : memref<32x32xf32, #tpu.memory_space<vmem>>, vector<32x32xf32>
    %15 = arith.truncf %14 : vector<32x32xf32> to vector<32x32xbf16>
    %cst_9 = arith.constant dense<0.000000e+00> : vector<32x32xf32>
    %16 = tpu.matmul %13, %15, %cst_9 {dimension_numbers = #tpu.dot_dimension_numbers<[1], [0], [0], [1], [0, 0, 1, 1], [], []>} : vector<32x32xbf16>, vector<32x32xbf16>, vector<32x32xf32> -> vector<32x32xf32>
    %c0_10 = arith.constant 0 : index
    %c0_11 = arith.constant 0 : index
    %17 = vector.load %arg5[%c0_10, %c0_11] : memref<1x32xf32, #tpu.memory_space<vmem>>, vector<1x32xf32>
    %18 = vector.broadcast %17 : vector<1x32xf32> to vector<32x32xf32>
    %19 = arith.addf %16, %18 : vector<32x32xf32>
    %cst_12 = arith.constant 0.000000e+00 : f32
    %20 = vector.broadcast %cst_12 : f32 to vector<32x32xf32>
    %21 = arith.cmpf oge, %19, %20 : vector<32x32xf32>
    %cst_13 = arith.constant 2.000000e-01 : f32
    %22 = vector.broadcast %cst_13 : f32 to vector<32x32xf32>
    %23 = arith.mulf %22, %19 : vector<32x32xf32>
    %24 = arith.select %21, %19, %23 : vector<32x32xi1>, vector<32x32xf32>
    %25 = arith.truncf %24 : vector<32x32xf32> to vector<32x32xbf16>
    %c0_14 = arith.constant 0 : index
    %c0_15 = arith.constant 0 : index
    %26 = vector.load %arg6[%c0_14, %c0_15] : memref<32x32xf32, #tpu.memory_space<vmem>>, vector<32x32xf32>
    %27 = arith.truncf %26 : vector<32x32xf32> to vector<32x32xbf16>
    %cst_16 = arith.constant dense<0.000000e+00> : vector<32x32xf32>
    %28 = tpu.matmul %25, %27, %cst_16 {dimension_numbers = #tpu.dot_dimension_numbers<[1], [0], [0], [1], [0, 0, 1, 1], [], []>} : vector<32x32xbf16>, vector<32x32xbf16>, vector<32x32xf32> -> vector<32x32xf32>
    %c0_17 = arith.constant 0 : index
    %c0_18 = arith.constant 0 : index
    %29 = vector.load %arg7[%c0_17, %c0_18] : memref<1x32xf32, #tpu.memory_space<vmem>>, vector<1x32xf32>
    %30 = vector.broadcast %29 : vector<1x32xf32> to vector<32x32xf32>
    %31 = arith.addf %28, %30 : vector<32x32xf32>
    %cst_19 = arith.constant 0.000000e+00 : f32
    %32 = vector.broadcast %cst_19 : f32 to vector<32x32xf32>
    %33 = arith.cmpf oge, %31, %32 : vector<32x32xf32>
    %cst_20 = arith.constant 2.000000e-01 : f32
    %34 = vector.broadcast %cst_20 : f32 to vector<32x32xf32>
    %35 = arith.mulf %34, %31 : vector<32x32xf32>
    %36 = arith.select %33, %31, %35 : vector<32x32xi1>, vector<32x32xf32>
    %37 = arith.truncf %36 : vector<32x32xf32> to vector<32x32xbf16>
    %c0_21 = arith.constant 0 : index
    %c0_22 = arith.constant 0 : index
    %38 = vector.load %arg8[%c0_21, %c0_22] : memref<32x64xf32, #tpu.memory_space<vmem>>, vector<32x64xf32>
    %39 = arith.truncf %38 : vector<32x64xf32> to vector<32x64xbf16>
    %cst_23 = arith.constant dense<0.000000e+00> : vector<32x64xf32>
    %40 = tpu.matmul %37, %39, %cst_23 {dimension_numbers = #tpu.dot_dimension_numbers<[1], [0], [0], [1], [0, 0, 1, 1], [], []>} : vector<32x32xbf16>, vector<32x64xbf16>, vector<32x64xf32> -> vector<32x64xf32>
    %c0_24 = arith.constant 0 : index
    %c0_25 = arith.constant 0 : index
    %41 = vector.load %arg9[%c0_24, %c0_25] : memref<1x64xf32, #tpu.memory_space<vmem>>, vector<1x64xf32>
    %42 = vector.broadcast %41 : vector<1x64xf32> to vector<32x64xf32>
    %43 = arith.addf %40, %42 : vector<32x64xf32>
    %c0_26 = arith.constant 0 : index
    %c0_27 = arith.constant 0 : index
    %44 = vector.load %arg10[%c0_26, %c0_27] : memref<32x64xf32, #tpu.memory_space<vmem>>, vector<32x64xf32>
    tpu.vector_store %arg10[%c0_26, %c0_27], %43 {strides = array<i32>} : memref<32x64xf32, #tpu.memory_space<vmem>>, vector<32x64xf32>,
    return
  }
  func.func @transform_0(%arg0: i32) -> (i32, i32) {
    %c0_i32 = arith.constant 0 : i32
    %c0_i32_0 = arith.constant 0 : i32
    return %arg0, %c0_i32 : i32, i32
  }
  func.func @transform_1(%arg0: i32) -> (i32, i32) {
    %c0_i32 = arith.constant 0 : i32
    %c0_i32_0 = arith.constant 0 : i32
    %c0_i32_1 = arith.constant 0 : i32
    return %c0_i32, %c0_i32_0 : i32, i32
  }
  func.func @transform_2(%arg0: i32) -> (i32, i32) {
    %c0_i32 = arith.constant 0 : i32
    %c0_i32_0 = arith.constant 0 : i32
    %c0_i32_1 = arith.constant 0 : i32
    return %c0_i32, %c0_i32_0 : i32, i32
  }
  func.func @transform_3(%arg0: i32) -> (i32, i32) {
    %c0_i32 = arith.constant 0 : i32
    %c0_i32_0 = arith.constant 0 : i32
    %c0_i32_1 = arith.constant 0 : i32
    return %c0_i32, %c0_i32_0 : i32, i32
  }
  func.func @transform_4(%arg0: i32) -> (i32, i32) {
    %c0_i32 = arith.constant 0 : i32
    %c0_i32_0 = arith.constant 0 : i32
    %c0_i32_1 = arith.constant 0 : i32
    return %c0_i32, %c0_i32_0 : i32, i32
  }
  func.func @transform_5(%arg0: i32) -> (i32, i32) {
    %c0_i32 = arith.constant 0 : i32
    %c0_i32_0 = arith.constant 0 : i32
    %c0_i32_1 = arith.constant 0 : i32
    return %c0_i32, %c0_i32_0 : i32, i32
  }
  func.func @transform_6(%arg0: i32) -> (i32, i32) {
    %c0_i32 = arith.constant 0 : i32
    %c0_i32_0 = arith.constant 0 : i32
    %c0_i32_1 = arith.constant 0 : i32
    return %c0_i32, %c0_i32_0 : i32, i32
  }
  func.func @transform_7(%arg0: i32) -> (i32, i32) {
    %c0_i32 = arith.constant 0 : i32
    %c0_i32_0 = arith.constant 0 : i32
    %c0_i32_1 = arith.constant 0 : i32
    return %c0_i32, %c0_i32_0 : i32, i32
  }
  func.func @transform_8(%arg0: i32) -> (i32, i32) {
    %c0_i32 = arith.constant 0 : i32
    %c0_i32_0 = arith.constant 0 : i32
    %c0_i32_1 = arith.constant 0 : i32
    return %c0_i32, %c0_i32_0 : i32, i32
  }
  func.func @transform_9(%arg0: i32) -> (i32, i32) {
    %c0_i32 = arith.constant 0 : i32
    %c0_i32_0 = arith.constant 0 : i32
    return %arg0, %c0_i32 : i32, i32
  }
}

module attributes {stable_mosaic.version = 11 : i64} {
  func.func @gnn_layer_kernel(%arg0: i32, %arg1: i32, %arg2: memref<32x32xbf16, #tpu.memory_space<vmem>>, %arg3: memref<32x32xf32, #tpu.memory_space<vmem>>, %arg4: memref<32x64xf32, #tpu.memory_space<vmem>>, %arg5: memref<32x64xf32, #tpu.memory_space<vmem>>, %arg6: memref<32x64xf32, #tpu.memory_space<vmem>>) attributes {dimension_semantics = [#tpu.dimension_semantics<parallel>, #tpu.dimension_semantics<arbitrary>], iteration_bounds = array<i64: 1, 1>, scalar_prefetch = 0 : i64, scratch_operands = 1 : i64, tpu.core_type = #tpu.core_type<tc>, window_params = [{transform_indices = @transform_0, window_bounds = array<i64: 32, 32>}, {transform_indices = @transform_1, window_bounds = array<i64: 32, 32>}, {pipeline_mode = #tpu.pipeline_mode<synchronous>, transform_indices = @transform_2, window_bounds = array<i64: 32, 64>}, {transform_indices = @transform_3, window_bounds = array<i64: 32, 64>}]} {
    %c0_i32 = arith.constant 0 : i32
    %0 = arith.cmpi eq, %arg1, %c0_i32 : i32
    %1 = arith.extui %0 : i1 to i32
    %c0_i32_0 = arith.constant 0 : i32
    %2 = arith.cmpi ne, %1, %c0_i32_0 : i32
    scf.if %2 {
      %cst_13 = arith.constant 0.000000e+00 : f32
      %17 = vector.broadcast %cst_13 : f32 to vector<32x64xf32>
      %c0_14 = arith.constant 0 : index
      %c0_15 = arith.constant 0 : index
      %18 = vector.load %arg6[%c0_14, %c0_15] : memref<32x64xf32, #tpu.memory_space<vmem>>, vector<32x64xf32>
      tpu.vector_store %arg6[%c0_14, %c0_15], %17 {strides = array<i32>} : memref<32x64xf32, #tpu.memory_space<vmem>>, vector<32x64xf32>,
    } else {
    }
    %c0 = arith.constant 0 : index
    %c0_1 = arith.constant 0 : index
    %3 = vector.load %arg2[%c0, %c0_1] : memref<32x32xbf16, #tpu.memory_space<vmem>>, vector<32x32xbf16>
    %c0_2 = arith.constant 0 : index
    %c0_3 = arith.constant 0 : index
    %4 = vector.load %arg3[%c0_2, %c0_3] : memref<32x32xf32, #tpu.memory_space<vmem>>, vector<32x32xf32>
    %5 = arith.truncf %4 : vector<32x32xf32> to vector<32x32xbf16>
    %c0_4 = arith.constant 0 : index
    %c0_5 = arith.constant 0 : index
    %6 = vector.load %arg4[%c0_4, %c0_5] : memref<32x64xf32, #tpu.memory_space<vmem>>, vector<32x64xf32>
    %7 = arith.truncf %6 : vector<32x64xf32> to vector<32x64xbf16>
    %cst = arith.constant dense<0.000000e+00> : vector<32x64xf32>
    %8 = tpu.matmul %5, %7, %cst {dimension_numbers = #tpu.dot_dimension_numbers<[1], [0], [0], [1], [0, 0, 1, 1], [], []>} : vector<32x32xbf16>, vector<32x64xbf16>, vector<32x64xf32> -> vector<32x64xf32>
    %c0_6 = arith.constant 0 : index
    %c0_7 = arith.constant 0 : index
    %9 = vector.load %arg6[%c0_6, %c0_7] : memref<32x64xf32, #tpu.memory_space<vmem>>, vector<32x64xf32>
    %10 = arith.truncf %8 : vector<32x64xf32> to vector<32x64xbf16>
    %cst_8 = arith.constant dense<0.000000e+00> : vector<32x64xf32>
    %11 = tpu.matmul %3, %10, %cst_8 {dimension_numbers = #tpu.dot_dimension_numbers<[1], [0], [0], [1], [0, 0, 1, 1], [], []>} : vector<32x32xbf16>, vector<32x64xbf16>, vector<32x64xf32> -> vector<32x64xf32>
    %12 = arith.addf %9, %11 : vector<32x64xf32>
    %c0_9 = arith.constant 0 : index
    %c0_10 = arith.constant 0 : index
    %13 = vector.load %arg6[%c0_9, %c0_10] : memref<32x64xf32, #tpu.memory_space<vmem>>, vector<32x64xf32>
    tpu.vector_store %arg6[%c0_9, %c0_10], %12 {strides = array<i32>} : memref<32x64xf32, #tpu.memory_space<vmem>>, vector<32x64xf32>,
    %c0_i32_11 = arith.constant 0 : i32
    %14 = arith.cmpi eq, %arg1, %c0_i32_11 : i32
    %15 = arith.extui %14 : i1 to i32
    %c0_i32_12 = arith.constant 0 : i32
    %16 = arith.cmpi ne, %15, %c0_i32_12 : i32
    scf.if %16 {
      %c0_13 = arith.constant 0 : index
      %c0_14 = arith.constant 0 : index
      %17 = vector.load %arg6[%c0_13, %c0_14] : memref<32x64xf32, #tpu.memory_space<vmem>>, vector<32x64xf32>
      %c0_15 = arith.constant 0 : index
      %c0_16 = arith.constant 0 : index
      %18 = vector.load %arg5[%c0_15, %c0_16] : memref<32x64xf32, #tpu.memory_space<vmem>>, vector<32x64xf32>
      tpu.vector_store %arg5[%c0_15, %c0_16], %17 {strides = array<i32>} : memref<32x64xf32, #tpu.memory_space<vmem>>, vector<32x64xf32>,
    } else {
    }
    return
  }
  func.func @transform_0(%arg0: i32, %arg1: i32) -> (i32, i32) {
    %c0_i32 = arith.constant 0 : i32
    return %arg0, %arg1 : i32, i32
  }
  func.func @transform_1(%arg0: i32, %arg1: i32) -> (i32, i32) {
    %c0_i32 = arith.constant 0 : i32
    %c0_i32_0 = arith.constant 0 : i32
    return %arg1, %c0_i32 : i32, i32
  }
  func.func @transform_2(%arg0: i32, %arg1: i32) -> (i32, i32) {
    %c0_i32 = arith.constant 0 : i32
    %c0_i32_0 = arith.constant 0 : i32
    %c0_i32_1 = arith.constant 0 : i32
    return %c0_i32, %c0_i32_0 : i32, i32
  }
  func.func @transform_3(%arg0: i32, %arg1: i32) -> (i32, i32) {
    %c0_i32 = arith.constant 0 : i32
    %c0_i32_0 = arith.constant 0 : i32
    return %arg0, %c0_i32 : i32, i32
  }
}

module attributes {stable_mosaic.version = 11 : i64} {
  func.func @adj_recon_kernel(%arg0: i32, %arg1: i32, %arg2: memref<32x16xf32, #tpu.memory_space<vmem>>, %arg3: memref<32x64xf32, #tpu.memory_space<vmem>>, %arg4: memref<32x16xf32, #tpu.memory_space<vmem>>, %arg5: memref<32x64xf32, #tpu.memory_space<vmem>>, %arg6: memref<32x32xf32, #tpu.memory_space<vmem>>) attributes {dimension_semantics = [#tpu.dimension_semantics<parallel>, #tpu.dimension_semantics<parallel>], iteration_bounds = array<i64: 1, 1>, scalar_prefetch = 0 : i64, scratch_operands = 0 : i64, tpu.core_type = #tpu.core_type<tc>, window_params = [{transform_indices = @transform_0, window_bounds = array<i64: 32, 16>}, {transform_indices = @transform_1, window_bounds = array<i64: 32, 64>}, {transform_indices = @transform_2, window_bounds = array<i64: 32, 16>}, {transform_indices = @transform_3, window_bounds = array<i64: 32, 64>}, {transform_indices = @transform_4, window_bounds = array<i64: 32, 32>}]} {
    %c0 = arith.constant 0 : index
    %c0_0 = arith.constant 0 : index
    %0 = vector.load %arg2[%c0, %c0_0] : memref<32x16xf32, #tpu.memory_space<vmem>>, vector<32x16xf32>
    %1 = arith.truncf %0 : vector<32x16xf32> to vector<32x16xbf16>
    %c0_1 = arith.constant 0 : index
    %c0_2 = arith.constant 0 : index
    %2 = vector.load %arg4[%c0_1, %c0_2] : memref<32x16xf32, #tpu.memory_space<vmem>>, vector<32x16xf32>
    %3 = arith.truncf %2 : vector<32x16xf32> to vector<32x16xbf16>
    %cst = arith.constant dense<0.000000e+00> : vector<32x32xf32>
    %4 = tpu.matmul %1, %3, %cst {dimension_numbers = #tpu.dot_dimension_numbers<[1], [1], [0], [0], [0, 0, 1, 0], [], []>} : vector<32x16xbf16>, vector<32x16xbf16>, vector<32x32xf32> -> vector<32x32xf32>
    %c0_3 = arith.constant 0 : index
    %c0_4 = arith.constant 0 : index
    %5 = vector.load %arg3[%c0_3, %c0_4] : memref<32x64xf32, #tpu.memory_space<vmem>>, vector<32x64xf32>
    %6 = arith.truncf %5 : vector<32x64xf32> to vector<32x64xbf16>
    %c0_5 = arith.constant 0 : index
    %c0_6 = arith.constant 0 : index
    %7 = vector.load %arg5[%c0_5, %c0_6] : memref<32x64xf32, #tpu.memory_space<vmem>>, vector<32x64xf32>
    %8 = arith.truncf %7 : vector<32x64xf32> to vector<32x64xbf16>
    %cst_7 = arith.constant dense<0.000000e+00> : vector<32x32xf32>
    %9 = tpu.matmul %6, %8, %cst_7 {dimension_numbers = #tpu.dot_dimension_numbers<[1], [1], [0], [0], [0, 0, 1, 0], [], []>} : vector<32x64xbf16>, vector<32x64xbf16>, vector<32x32xf32> -> vector<32x32xf32>
    %10 = arith.negf %4 : vector<32x32xf32>
    %11 = math.exp %10 : vector<32x32xf32>
    %cst_8 = arith.constant 1.000000e+00 : f32
    %12 = vector.broadcast %cst_8 : f32 to vector<32x32xf32>
    %13 = arith.addf %12, %11 : vector<32x32xf32>
    %14 = arith.divf %12, %13 : vector<32x32xf32>
    %15 = arith.negf %9 : vector<32x32xf32>
    %16 = math.exp %15 : vector<32x32xf32>
    %cst_9 = arith.constant 1.000000e+00 : f32
    %17 = vector.broadcast %cst_9 : f32 to vector<32x32xf32>
    %18 = arith.addf %17, %16 : vector<32x32xf32>
    %19 = arith.divf %17, %18 : vector<32x32xf32>
    %20 = arith.addf %14, %19 : vector<32x32xf32>
    %c0_10 = arith.constant 0 : index
    %c0_11 = arith.constant 0 : index
    %21 = vector.load %arg6[%c0_10, %c0_11] : memref<32x32xf32, #tpu.memory_space<vmem>>, vector<32x32xf32>
    tpu.vector_store %arg6[%c0_10, %c0_11], %20 {strides = array<i32>} : memref<32x32xf32, #tpu.memory_space<vmem>>, vector<32x32xf32>,
    return
  }
  func.func @transform_0(%arg0: i32, %arg1: i32) -> (i32, i32) {
    %c0_i32 = arith.constant 0 : i32
    %c0_i32_0 = arith.constant 0 : i32
    return %arg0, %c0_i32 : i32, i32
  }
  func.func @transform_1(%arg0: i32, %arg1: i32) -> (i32, i32) {
    %c0_i32 = arith.constant 0 : i32
    %c0_i32_0 = arith.constant 0 : i32
    return %arg0, %c0_i32 : i32, i32
  }
  func.func @transform_2(%arg0: i32, %arg1: i32) -> (i32, i32) {
    %c0_i32 = arith.constant 0 : i32
    %c0_i32_0 = arith.constant 0 : i32
    return %arg1, %c0_i32 : i32, i32
  }
  func.func @transform_3(%arg0: i32, %arg1: i32) -> (i32, i32) {
    %c0_i32 = arith.constant 0 : i32
    %c0_i32_0 = arith.constant 0 : i32
    return %arg1, %c0_i32 : i32, i32
  }
  func.func @transform_4(%arg0: i32, %arg1: i32) -> (i32, i32) {
    %c0_i32 = arith.constant 0 : i32
    return %arg0, %arg1 : i32, i32
  }
}

</mosaic_0001>

<bundles_post_ra>
// kernel: _lambda_.11
= control target key start
LH: loop header
LB: loop body
LE: loop exit
PB: predicated region body
PF: predicated region fallthrough
CT: control target
= control target key end

     0   :  { %vm58_vm0 = vcmask 523264   ;;  %vm141_vm5 = vcmask 261120   ;;  %vm361_vm14 = vcmask 130048   ;;  %s590_s1 = inlined_call_operand.vmem [shape: f32[64,32], index: 1, kind: input, shape index: {}]   ;;  %s591_s0 = inlined_call_operand.vmem [shape: f32[32,64], index: 0, kind: input, shape index: {}]   ;;  %s592_s3 = inlined_call_operand.vmem [shape: f32[32,32], index: 3, kind: input, shape index: {}]   ;;  %s593_s2 = inlined_call_operand.vmem [shape: f32[1,32], index: 2, kind: input, shape index: {}]   ;;  %s594_s5 = inlined_call_operand.vmem [shape: f32[32,32], index: 5, kind: input, shape index: {}]   ;;  %s595_s4 = inlined_call_operand.vmem [shape: f32[1,32], index: 4, kind: input, shape index: {}]   ;;  %s596_s7 = inlined_call_operand.vmem [shape: f32[32,16], index: 7, kind: input, shape index: {}]   ;;  %s597_s6 = inlined_call_operand.vmem [shape: f32[1,32], index: 6, kind: input, shape index: {}]   ;;  %s598_s8 = inlined_call_operand.vmem [shape: f32[1,16], index: 8, kind: input, shape index: {}]   ;;  %s599_s9 = inlined_call_operand.vmem [shape: f32[32,16], index: 9, kind: output, shape index: {}]  }
   0x1   :  { %v39_v0 = vld [vmem:[%s590_s1] sm:$0xff]  ;;  %v40_v1 = vld [vmem:[%s590_s1 + $0x8] sm:$0xff]  ;;  %v41_v2 = vld [vmem:[%s590_s1 + $0x10] sm:$0xff] }
   0x2   :  { %v47_v3 = vpack.c.bf16 %v40_v1, %v39_v0  ;;  %v42_v4 = vld [vmem:[%s590_s1 + $0x18] sm:$0xff]  ;;  %v43_v6 = vld [vmem:[%s590_s1 + $0x20] sm:$0xff]  ;;  %v44_v7 = vld [vmem:[%s590_s1 + $0x28] sm:$0xff] }
   0x3   :  { %v48_v5 = vpack.c.bf16 %v42_v4, %v41_v2  ;;  %v33_v8 = vld [vmem:[%s591_s0] sm:$0xff]  ;;  %v34_v9 = vld [vmem:[%s591_s0 + $0x8] sm:$0xff]  ;;  %v49_v11 = vpack.c.bf16 %v44_v7, %v43_v6  ;;  %v45_v12 = vld [vmem:[%s590_s1 + $0x30] sm:$0xff] }
   0x4   :  { %400 = vmatprep.subr.bf16.mxu0 %v47_v3  ;;  %v37_v10 = vpack.c.bf16 %v34_v9, %v33_v8  ;;  %v46_v13 = vld [vmem:[%s590_s1 + $0x38] sm:$0xff]  ;;  %v35_v15 = vld [vmem:[%s591_s0 + $0x10] sm:$0xff]  ;;  %v128_v18 = vld [vmem:[%s592_s3] sm:$0xff] }
   0x5   :  { %401 = vmatpush3.bf16.msra.mxu0 %v47_v3  ;;  %v50_v14 = vpack.c.bf16 %v46_v13, %v45_v12  ;;  %v36_v16 = vld [vmem:[%s591_s0 + $0x18] sm:$0xff]  ;;  %v129_v19 = vld [vmem:[%s592_s3 + $0x8] sm:$0xff]  ;;  %v130_v21 = vld [vmem:[%s592_s3 + $0x10] sm:$0xff] }
   0x6   :  { %402 = vmatprep.subr.bf16.mxu0 %v48_v5  ;;  %408 = vmatprep.mubr.msk.bf16.mxu0 %vm58_vm0, %v37_v10  ;;  %v38_v17 = vpack.c.bf16 %v36_v16, %v35_v15  ;;  %v132_v20 = vpack.c.bf16 %v129_v19, %v128_v18  ;;  %v131_v22 = vld [vmem:[%s592_s3 + $0x18] sm:$0xff]  ;;  %v370_v24 = vld [vmem:[%s593_s2] ss:$0 sm:$0xff]  ;;  %v212_v44 = vld [vmem:[%s594_s5 + $0x8] sm:$0xff] }
   0x7   :  { %v133_v23 = vpack.c.bf16 %v131_v22, %v130_v21  ;;  %v211_v43 = vld [vmem:[%s594_s5] sm:$0xff]  ;;  %v213_v46 = vld [vmem:[%s594_s5 + $0x10] sm:$0xff]  ;;  %v214_v47 = vld [vmem:[%s594_s5 + $0x18] sm:$0xff] }
   0x8   :  { %412 = vmatprep.subr.bf16.mxu1 %v132_v20  ;;  %v215_v45 = vpack.c.bf16 %v212_v44, %v211_v43  ;;  %v216_v48 = vpack.c.bf16 %v214_v47, %v213_v46  ;;  %v373_v49 = vld [vmem:[%s595_s4] ss:$0 sm:$0xff]  ;;  %v295_v7 = vld [vmem:[%s596_s7 + $0x10] sm:$0xff]  ;;  %v296_v8 = vld [vmem:[%s596_s7 + $0x18] sm:$0xff] }
   0x9   :  { %403 = vmatpush3.bf16.msra.mxu0 %v48_v5  ;;  %413 = vmatpush3.bf16.msra.mxu1 %v132_v20  ;;  %v293_v4 = vld [vmem:[%s596_s7] sm:$0xff]  ;;  %v294_v5 = vld [vmem:[%s596_s7 + $0x8] sm:$0xff]  ;;  %v298_v9 = vpack.c.bf16 %v296_v8, %v295_v7 }
   0xa   :  { %404 = vmatprep.subr.bf16.mxu0 %v49_v11  ;;  %414 = vmatprep.subr.bf16.mxu1 %v133_v23  ;;  %v297_v6 = vpack.c.bf16 %v294_v5, %v293_v4  ;;  %v376_v10 = vld [vmem:[%s597_s6] ss:$0 sm:$0xff] }
   0xd   :  { %405 = vmatpush3.bf16.msra.mxu0 %v49_v11  ;;  %415 = vmatpush3.bf16.msra.mxu1 %v133_v23 }
   0xe   :  { %406 = vmatprep.subr.bf16.mxu0 %v50_v14  ;;  %420 = vmatprep.subr.bf16.mxu1 %v215_v45 }
  0x11   :  { %407 = vmatpush3.bf16.msra.mxu0 %v50_v14 }
  0x12   :  { %428 = vmatprep.subr.bf16.mxu0 %v297_v6 }
  0x14   :  { %409 = vmatmul.mubr.msk.bf16.vlgmr.msra.gmra.mrb[0].mxu0 %vm58_vm0, %v38_v17 }
  0x15   :  { %429 = vmatpush3.bf16.msra.mxu0 %v297_v6 }
  0x16   :  { %430 = vmatprep.subr.bf16.mxu0 %v298_v9 }
  0x19   :  { %431 = vmatpush3.bf16.msra.mxu0 %v298_v9 }
  0xe7   :  { %v410_v25 = vpop.f32.mrb[0].mxu0 }
  0xe8   :  { %v108_v26 = vadd.f32 %v410_v25, %v370_v24  ;;  %v99_v27 = vpop.f32.mrb[1].mxu0 }
  0xe9   :  { %v100_v28 = vadd.f32 %v370_v24, %v99_v27  ;;  %v411_v29 = vpop.f32.mrb[2].mxu0 }
  0xea   :  { %v120_v30 = vmul.f32 0.2, %v108_v26  ;;  %v111_v31 = vadd.f32 %v411_v29, %v370_v24  ;;  %v102_v32 = vpop.f32.mrb[3].mxu0  ;;  %vm116_vm1 = vcmp.ge.f32.partialorder %v108_v26, 0.0  ;;  %v379_v29 = vld [vmem:[%s598_s8] ss:$0 sm:$0xff] }
  0xeb   :  { %v118_v33 = vmul.f32 0.2, %v100_v28  ;;  %v103_v34 = vadd.f32 %v370_v24, %v102_v32  ;;  %vm114_vm3 = vcmp.ge.f32.partialorder %v100_v28, 0.0 }
  0xec   :  { %vm117_vm2 = vcmp.ge.f32.partialorder %v111_v31, 0.0  ;;  %v121_v35 = vmul.f32 0.2, %v111_v31  ;;  %v124_v37 = vsel %vm116_vm1, %v108_v26, %v120_v30 }
  0xed   :  { %v119_v36 = vmul.f32 0.2, %v103_v34  ;;  %vm115_vm4 = vcmp.ge.f32.partialorder %v103_v34, 0.0  ;;  %v122_v40 = vsel %vm114_vm3, %v100_v28, %v118_v33 }
  0xee   :  { %v125_v38 = vsel %vm117_vm2, %v111_v31, %v121_v35 }
  0xef   :  { %v127_v39 = vpack.c.bf16 %v125_v38, %v124_v37  ;;  %v123_v41 = vsel %vm115_vm4, %v103_v34, %v119_v36 }
  0xf0   :  { %v126_v42 = vpack.c.bf16 %v123_v41, %v122_v40 }
  0xf2   :  { %416 = vmatprep.mubr.msk.bf16.mxu1 %vm141_vm5, %v126_v42 }
  0xf3   :  { %417 = vmatmul.mubr.msk.bf16.vlgmr.msra.gmra.mrb[0].mxu1 %vm141_vm5, %v127_v39 }
  0xf4   :  { %421 = vmatpush3.bf16.msra.mxu1 %v215_v45 }
  0xf5   :  { %422 = vmatprep.subr.bf16.mxu1 %v216_v48 }
  0xf8   :  { %423 = vmatpush3.bf16.msra.mxu1 %v216_v48 }
 0x1c6   :  { %v418_v50 = vpop.f32.mrb[0].mxu1 }
 0x1c7   :  { %v191_v51 = vadd.f32 %v418_v50, %v373_v49  ;;  %v182_v52 = vpop.f32.mrb[1].mxu1 }
 0x1c8   :  { %v183_v53 = vadd.f32 %v373_v49, %v182_v52  ;;  %v419_v54 = vpop.f32.mrb[2].mxu1 }
 0x1c9   :  { %v203_v55 = vmul.f32 0.2, %v191_v51  ;;  %v194_v56 = vadd.f32 %v419_v54, %v373_v49  ;;  %v185_v57 = vpop.f32.mrb[3].mxu1  ;;  %vm199_vm6 = vcmp.ge.f32.partialorder %v191_v51, 0.0 }
 0x1ca   :  { %v201_v58 = vmul.f32 0.2, %v183_v53  ;;  %v186_v59 = vadd.f32 %v373_v49, %v185_v57  ;;  %vm197_vm7 = vcmp.ge.f32.partialorder %v183_v53, 0.0 }
 0x1cb   :  { %vm200_vm8 = vcmp.ge.f32.partialorder %v194_v56, 0.0  ;;  %v204_v60 = vmul.f32 0.2, %v194_v56  ;;  %v207_v62 = vsel %vm199_vm6, %v191_v51, %v203_v55 }
 0x1cc   :  { %vm198_vm9 = vcmp.ge.f32.partialorder %v186_v59, 0.0  ;;  %v202_v61 = vmul.f32 0.2, %v186_v59  ;;  %v205_v0 = vsel %vm197_vm7, %v183_v53, %v201_v58 }
 0x1cd   :  { %v208_v63 = vsel %vm200_vm8, %v194_v56, %v204_v60 }
 0x1ce   :  { %v210_v1 = vpack.c.bf16 %v208_v63, %v207_v62  ;;  %v206_v2 = vsel %vm198_vm9, %v186_v59, %v202_v61 }
 0x1cf   :  { %v209_v3 = vpack.c.bf16 %v206_v2, %v205_v0 }
 0x1d1   :  { %424 = vmatprep.mubr.msk.bf16.mxu1 %vm141_vm5, %v209_v3 }
 0x1d2   :  { %425 = vmatmul.mubr.msk.bf16.vlgmr.msra.gmra.mrb[4].mxu1 %vm141_vm5, %v210_v1 }
 0x2a5   :  { %v426_v11 = vpop.f32.mrb[4].mxu1 }
 0x2a6   :  { %v273_v12 = vadd.f32 %v426_v11, %v376_v10  ;;  %v264_v13 = vpop.f32.mrb[5].mxu1 }
 0x2a7   :  { %v265_v14 = vadd.f32 %v376_v10, %v264_v13  ;;  %v427_v15 = vpop.f32.mrb[6].mxu1 }
 0x2a8   :  { %v285_v16 = vmul.f32 0.2, %v273_v12  ;;  %v276_v17 = vadd.f32 %v427_v15, %v376_v10  ;;  %v267_v18 = vpop.f32.mrb[7].mxu1  ;;  %vm281_vm10 = vcmp.ge.f32.partialorder %v273_v12, 0.0 }
 0x2a9   :  { %v283_v19 = vmul.f32 0.2, %v265_v14  ;;  %v268_v20 = vadd.f32 %v376_v10, %v267_v18  ;;  %vm279_vm11 = vcmp.ge.f32.partialorder %v265_v14, 0.0 }
 0x2aa   :  { %vm282_vm12 = vcmp.ge.f32.partialorder %v276_v17, 0.0  ;;  %v286_v21 = vmul.f32 0.2, %v276_v17  ;;  %v289_v23 = vsel %vm281_vm10, %v273_v12, %v285_v16 }
 0x2ab   :  { %vm280_vm13 = vcmp.ge.f32.partialorder %v268_v20, 0.0  ;;  %v284_v22 = vmul.f32 0.2, %v268_v20  ;;  %v287_v25 = vsel %vm279_vm11, %v265_v14, %v283_v19 }
 0x2ac   :  { %v290_v24 = vsel %vm282_vm12, %v276_v17, %v286_v21 }
 0x2ad   :  { %v292_v26 = vpack.c.bf16 %v290_v24, %v289_v23  ;;  %v288_v27 = vsel %vm280_vm13, %v268_v20, %v284_v22 }
 0x2ae   :  { %v291_v28 = vpack.c.bf16 %v288_v27, %v287_v25 }
 0x2b0   :  { %432 = vmatprep.mubr.msk.bf16.mxu0 %vm141_vm5, %v291_v28 }
 0x2b1   :  { %433 = vmatmul.mubr.msk.bf16.vlgmr.msra.gmra.mrb[4].mxu0 %vm141_vm5, %v292_v26 }
 0x384   :  { %v434_v30 = vpop.f32.mrb[4].mxu0 }
 0x385   :  { %v355_v31 = vadd.f32 %v434_v30, %v379_v29  ;;  %v346_v32 = vpop.f32.mrb[5].mxu0 }
 0x386   :  { %v347_v33 = vadd.f32 %v379_v29, %v346_v32  ;;  %v435_v34 = vpop.f32.mrb[6].mxu0 }
 0x387   :  { %364 = vst.msk [vmem:[%s599_s9 + $0x10] sm:$0xff] %vm361_vm14, %v355_v31  ;;  %v358_v35 = vadd.f32 %v435_v34, %v379_v29  ;;  %v349_v36 = vpop.f32.mrb[7].mxu0 }
 0x388   :  { %362 = vst.msk [vmem:[%s599_s9] sm:$0xff] %vm361_vm14, %v347_v33  ;;  %v350_v37 = vadd.f32 %v379_v29, %v349_v36 }
 0x389   :  { %365 = vst.msk [vmem:[%s599_s9 + $0x18] sm:$0xff] %vm361_vm14, %v358_v35 }
 0x38a   :  { %363 = vst.msk [vmem:[%s599_s9 + $0x8] sm:$0xff] %vm361_vm14, %v350_v37 }

// kernel: _lambda_.14
= control target key start
LH: loop header
LB: loop body
LE: loop exit
PB: predicated region body
PF: predicated region fallthrough
CT: control target
= control target key end

     0   :  { %vm40_vm0 = vcmask 261120   ;;  %vm19_vm1 = vcmask 130048   ;;  %v224_v13 = vmov 0.0   ;;  %s303_s2 = inlined_call_operand.vmem [shape: f32[32,16], index: 2, kind: input, shape index: {}]   ;;  %s304_s1 = inlined_call_operand.vmem [shape: f32[32,32], index: 1, kind: input, shape index: {}]   ;;  %s305_s0 = inlined_call_operand.vmem [shape: bf16[32,32], index: 0, kind: input, shape index: {}]   ;;  %s306_s3 = inlined_call_operand.vmem [shape: f32[32,16], index: 3, kind: output, shape index: {}]  }
   0x1   :  { %v34_v0 = vld [vmem:[%s303_s2] sm:$0xff]  ;;  %v35_v1 = vld [vmem:[%s303_s2 + $0x8] sm:$0xff]  ;;  %v36_v2 = vld [vmem:[%s303_s2 + $0x10] sm:$0xff]  ;;  %22 = vst.msk [vmem:[#allocation2 + $0x10] sm:$0xff] %vm19_vm1, %v224_v13 }
   0x2   :  { %v38_v3 = vpack.c.bf16 %v35_v1, %v34_v0  ;;  %v37_v4 = vld [vmem:[%s303_s2 + $0x18] sm:$0xff]  ;;  %v28_v5 = vld [vmem:[%s304_s1] sm:$0xff]  ;;  %v29_v6 = vld [vmem:[%s304_s1 + $0x8] sm:$0xff]  ;;  %20 = vst.msk [vmem:[#allocation2] sm:$0xff] %vm19_vm1, %v224_v13 }
   0x3   :  { %v39_v7 = vpack.c.bf16 %v37_v4, %v36_v2  ;;  %v32_v8 = vpack.c.bf16 %v29_v6, %v28_v5  ;;  %v30_v9 = vld [vmem:[%s304_s1 + $0x10] sm:$0xff]  ;;  %v31_v10 = vld [vmem:[%s304_s1 + $0x18] sm:$0xff]  ;;  %v222_v12 = vld [vmem:[%s305_s0] sm:$0xff]   ;;  %21 = vst.msk [vmem:[#allocation2 + $0x8] sm:$0xff] %vm19_vm1, %v224_v13 }
   0x4   :  { %205 = vmatprep.subr.bf16.mxu0 %v38_v3  ;;  %v33_v11 = vpack.c.bf16 %v31_v10, %v30_v9  ;;  %217 = vmatprep.mubr.msk.bf16.mxu1 %vm40_vm0, %v222_v12  ;;  %23 = vst.msk [vmem:[#allocation2 + $0x18] sm:$0xff] %vm19_vm1, %v224_v13  ;;  %v223_v20 = vld [vmem:[%s305_s0 + $0x8] sm:$0xff]  }
   0x5   :  { %206 = vmatpush3.bf16.msra.mxu0 %v38_v3  ;;  %209 = vmatprep.mubr.msk.bf16.mxu0 %vm40_vm0, %v32_v8 }
   0x6   :  { %207 = vmatprep.subr.bf16.mxu0 %v39_v7 }
   0x8   :  { %v98_v21 = vld [vmem:[#allocation2 + $0x10] sm:$0xff] }
   0x9   :  { %208 = vmatpush3.bf16.msra.mxu0 %v39_v7  ;;  %v96_v22 = vld [vmem:[#allocation2] sm:$0xff] }
   0xa   :  { %v97_v27 = vld [vmem:[#allocation2 + $0x8] sm:$0xff] }
   0xb   :  { %v99_v24 = vld [vmem:[#allocation2 + $0x18] sm:$0xff] }
   0xc   :  { %210 = vmatmul.mubr.msk.bf16.vlgmr.msra.gmra.mrb[0].mxu0 %vm40_vm0, %v33_v11 }
  0xdf   :  { %v211_v14 = vpop.f32.mrb[0].mxu0 }
  0xe0   :  { %v81_v15 = vpop.f32.mrb[1].mxu0 }
  0xe1   :  { %v212_v16 = vpop.f32.mrb[2].mxu0 }
  0xe2   :  { %v101_v17 = vpack.c.bf16 %v212_v16, %v211_v14  ;;  %v84_v18 = vpop.f32.mrb[3].mxu0 }
  0xe3   :  { %v100_v19 = vpack.c.bf16 %v84_v18, %v81_v15 }
  0xe5   :  { %213 = vmatprep.subr.bf16.mxu1 %v100_v19 }
  0xe6   :  { %214 = vmatpush3.bf16.msra.mxu1 %v100_v19 }
  0xe7   :  { %215 = vmatprep.subr.bf16.mxu1 %v101_v17 }
  0xea   :  { %216 = vmatpush3.bf16.msra.mxu1 %v101_v17 }
  0xed   :  { %218 = vmatmul.mubr.msk.bf16.vlgmr.msra.gmra.mrb[0].mxu1 %vm40_vm0, %v223_v20 }
 0x1c0   :  { %v219_v23 = vpop.f32.mrb[0].mxu1 }
 0x1c1   :  { %v169_v25 = vadd.f32 %v219_v23, %v98_v21  ;;  %v152_v26 = vpop.f32.mrb[1].mxu1 }
 0x1c2   :  { %v167_v28 = vadd.f32 %v152_v26, %v96_v22  ;;  %v220_v29 = vpop.f32.mrb[2].mxu1 }
 0x1c3   :  { %174 = vst.msk [vmem:[#allocation2 + $0x10] sm:$0xff] %vm19_vm1, %v169_v25  ;;  %v170_v30 = vadd.f32 %v220_v29, %v99_v24  ;;  %v155_v31 = vpop.f32.mrb[3].mxu1 }
 0x1c4   :  { %172 = vst.msk [vmem:[#allocation2] sm:$0xff] %vm19_vm1, %v167_v28  ;;  %v168_v32 = vadd.f32 %v155_v31, %v97_v27 }
 0x1c5   :  { %175 = vst.msk [vmem:[#allocation2 + $0x18] sm:$0xff] %vm19_vm1, %v170_v30 }
 0x1c6   :  { %173 = vst.msk [vmem:[#allocation2 + $0x8] sm:$0xff] %vm19_vm1, %v168_v32 }
 0x1ca   :  { %v181_v33 = vld [vmem:[#allocation2 + $0x10] sm:$0xff] }
 0x1cb   :  { %185 = vst.msk [vmem:[%s306_s3 + $0x10] sm:$0xff] %vm19_vm1, %v181_v33  ;;  %v179_v34 = vld [vmem:[#allocation2] sm:$0xff] }
 0x1cc   :  { %183 = vst.msk [vmem:[%s306_s3] sm:$0xff] %vm19_vm1, %v179_v34  ;;  %v182_v35 = vld [vmem:[#allocation2 + $0x18] sm:$0xff] }
 0x1cd   :  { %186 = vst.msk [vmem:[%s306_s3 + $0x18] sm:$0xff] %vm19_vm1, %v182_v35  ;;  %v180_v36 = vld [vmem:[#allocation2 + $0x8] sm:$0xff] }
 0x1ce   :  { %184 = vst.msk [vmem:[%s306_s3 + $0x8] sm:$0xff] %vm19_vm1, %v180_v36 }

// kernel: _lambda_.13
= control target key start
LH: loop header
LB: loop body
LE: loop exit
PB: predicated region body
PF: predicated region fallthrough
CT: control target
= control target key end

     0   :  { %vm19_vm0 = vcmask 261120   ;;  %v223_v13 = vmov 0.0   ;;  %s302_s2 = inlined_call_operand.vmem [shape: f32[32,32], index: 2, kind: input, shape index: {}]   ;;  %s303_s1 = inlined_call_operand.vmem [shape: f32[32,32], index: 1, kind: input, shape index: {}]   ;;  %s304_s0 = inlined_call_operand.vmem [shape: bf16[32,32], index: 0, kind: input, shape index: {}]   ;;  %s305_s3 = inlined_call_operand.vmem [shape: f32[32,32], index: 3, kind: output, shape index: {}]  }
   0x1   :  { %v34_v0 = vld [vmem:[%s302_s2] sm:$0xff]  ;;  %v35_v1 = vld [vmem:[%s302_s2 + $0x8] sm:$0xff]  ;;  %v36_v2 = vld [vmem:[%s302_s2 + $0x10] sm:$0xff]  ;;  %22 = vst.msk [vmem:[#allocation2 + $0x10] sm:$0xff] %vm19_vm0, %v223_v13 }
   0x2   :  { %v38_v3 = vpack.c.bf16 %v35_v1, %v34_v0  ;;  %v37_v4 = vld [vmem:[%s302_s2 + $0x18] sm:$0xff]  ;;  %v28_v5 = vld [vmem:[%s303_s1] sm:$0xff]  ;;  %v29_v6 = vld [vmem:[%s303_s1 + $0x8] sm:$0xff]  ;;  %20 = vst.msk [vmem:[#allocation2] sm:$0xff] %vm19_vm0, %v223_v13 }
   0x3   :  { %v39_v7 = vpack.c.bf16 %v37_v4, %v36_v2  ;;  %v32_v8 = vpack.c.bf16 %v29_v6, %v28_v5  ;;  %v30_v9 = vld [vmem:[%s303_s1 + $0x10] sm:$0xff]  ;;  %v31_v10 = vld [vmem:[%s303_s1 + $0x18] sm:$0xff]  ;;  %v221_v12 = vld [vmem:[%s304_s0] sm:$0xff]   ;;  %21 = vst.msk [vmem:[#allocation2 + $0x8] sm:$0xff] %vm19_vm0, %v223_v13 }
   0x4   :  { %204 = vmatprep.subr.bf16.mxu0 %v38_v3  ;;  %v33_v11 = vpack.c.bf16 %v31_v10, %v30_v9  ;;  %216 = vmatprep.mubr.msk.bf16.mxu1 %vm19_vm0, %v221_v12  ;;  %23 = vst.msk [vmem:[#allocation2 + $0x18] sm:$0xff] %vm19_vm0, %v223_v13  ;;  %v222_v20 = vld [vmem:[%s304_s0 + $0x8] sm:$0xff]  }
   0x5   :  { %205 = vmatpush3.bf16.msra.mxu0 %v38_v3  ;;  %208 = vmatprep.mubr.msk.bf16.mxu0 %vm19_vm0, %v32_v8 }
   0x6   :  { %206 = vmatprep.subr.bf16.mxu0 %v39_v7 }
   0x8   :  { %v98_v21 = vld [vmem:[#allocation2 + $0x10] sm:$0xff] }
   0x9   :  { %207 = vmatpush3.bf16.msra.mxu0 %v39_v7  ;;  %v96_v22 = vld [vmem:[#allocation2] sm:$0xff] }
   0xa   :  { %v97_v27 = vld [vmem:[#allocation2 + $0x8] sm:$0xff] }
   0xb   :  { %v99_v24 = vld [vmem:[#allocation2 + $0x18] sm:$0xff] }
   0xc   :  { %209 = vmatmul.mubr.msk.bf16.vlgmr.msra.gmra.mrb[0].mxu0 %vm19_vm0, %v33_v11 }
  0xdf   :  { %v210_v14 = vpop.f32.mrb[0].mxu0 }
  0xe0   :  { %v81_v15 = vpop.f32.mrb[1].mxu0 }
  0xe1   :  { %v211_v16 = vpop.f32.mrb[2].mxu0 }
  0xe2   :  { %v101_v17 = vpack.c.bf16 %v211_v16, %v210_v14  ;;  %v84_v18 = vpop.f32.mrb[3].mxu0 }
  0xe3   :  { %v100_v19 = vpack.c.bf16 %v84_v18, %v81_v15 }
  0xe5   :  { %212 = vmatprep.subr.bf16.mxu1 %v100_v19 }
  0xe6   :  { %213 = vmatpush3.bf16.msra.mxu1 %v100_v19 }
  0xe7   :  { %214 = vmatprep.subr.bf16.mxu1 %v101_v17 }
  0xea   :  { %215 = vmatpush3.bf16.msra.mxu1 %v101_v17 }
  0xed   :  { %217 = vmatmul.mubr.msk.bf16.vlgmr.msra.gmra.mrb[0].mxu1 %vm19_vm0, %v222_v20 }
 0x1c0   :  { %v218_v23 = vpop.f32.mrb[0].mxu1 }
 0x1c1   :  { %v169_v25 = vadd.f32 %v218_v23, %v98_v21  ;;  %v152_v26 = vpop.f32.mrb[1].mxu1 }
 0x1c2   :  { %v167_v28 = vadd.f32 %v152_v26, %v96_v22  ;;  %v219_v29 = vpop.f32.mrb[2].mxu1 }
 0x1c3   :  { %173 = vst.msk [vmem:[#allocation2 + $0x10] sm:$0xff] %vm19_vm0, %v169_v25  ;;  %v170_v30 = vadd.f32 %v219_v29, %v99_v24  ;;  %v155_v31 = vpop.f32.mrb[3].mxu1 }
 0x1c4   :  { %171 = vst.msk [vmem:[#allocation2] sm:$0xff] %vm19_vm0, %v167_v28  ;;  %v168_v32 = vadd.f32 %v155_v31, %v97_v27 }
 0x1c5   :  { %174 = vst.msk [vmem:[#allocation2 + $0x18] sm:$0xff] %vm19_vm0, %v170_v30 }
 0x1c6   :  { %172 = vst.msk [vmem:[#allocation2 + $0x8] sm:$0xff] %vm19_vm0, %v168_v32 }
 0x1ca   :  { %v180_v33 = vld [vmem:[#allocation2 + $0x10] sm:$0xff] }
 0x1cb   :  { %184 = vst.msk [vmem:[%s305_s3 + $0x10] sm:$0xff] %vm19_vm0, %v180_v33  ;;  %v178_v34 = vld [vmem:[#allocation2] sm:$0xff] }
 0x1cc   :  { %182 = vst.msk [vmem:[%s305_s3] sm:$0xff] %vm19_vm0, %v178_v34  ;;  %v181_v35 = vld [vmem:[#allocation2 + $0x18] sm:$0xff] }
 0x1cd   :  { %185 = vst.msk [vmem:[%s305_s3 + $0x18] sm:$0xff] %vm19_vm0, %v181_v35  ;;  %v179_v36 = vld [vmem:[#allocation2 + $0x8] sm:$0xff] }
 0x1ce   :  { %183 = vst.msk [vmem:[%s305_s3 + $0x8] sm:$0xff] %vm19_vm0, %v179_v36 }

// kernel: _lambda_.12
= control target key start
LH: loop header
LB: loop body
LE: loop exit
PB: predicated region body
PF: predicated region fallthrough
CT: control target
= control target key end

     0   :  { %vm46_vm0 = vcmask 523264   ;;  %vm19_vm1 = vcmask 261120   ;;  %v236_v19 = vmov 0.0   ;;  %s327_s2 = inlined_call_operand.vmem [shape: f32[64,32], index: 2, kind: input, shape index: {}]   ;;  %s328_s1 = inlined_call_operand.vmem [shape: f32[32,64], index: 1, kind: input, shape index: {}]   ;;  %s329_s0 = inlined_call_operand.vmem [shape: bf16[32,32], index: 0, kind: input, shape index: {}]   ;;  %s330_s3 = inlined_call_operand.vmem [shape: f32[32,32], index: 3, kind: output, shape index: {}]  }
   0x1   :  { %v34_v0 = vld [vmem:[%s327_s2] sm:$0xff]  ;;  %v35_v1 = vld [vmem:[%s327_s2 + $0x8] sm:$0xff]  ;;  %v36_v2 = vld [vmem:[%s327_s2 + $0x10] sm:$0xff]  ;;  %22 = vst.msk [vmem:[#allocation2 + $0x10] sm:$0xff] %vm19_vm1, %v236_v19 }
   0x2   :  { %v42_v3 = vpack.c.bf16 %v35_v1, %v34_v0  ;;  %v37_v4 = vld [vmem:[%s327_s2 + $0x18] sm:$0xff]  ;;  %v38_v6 = vld [vmem:[%s327_s2 + $0x20] sm:$0xff]  ;;  %v39_v7 = vld [vmem:[%s327_s2 + $0x28] sm:$0xff]  ;;  %20 = vst.msk [vmem:[#allocation2] sm:$0xff] %vm19_vm1, %v236_v19 }
   0x3   :  { %v43_v5 = vpack.c.bf16 %v37_v4, %v36_v2  ;;  %v28_v8 = vld [vmem:[%s328_s1] sm:$0xff]  ;;  %v29_v9 = vld [vmem:[%s328_s1 + $0x8] sm:$0xff]  ;;  %v44_v11 = vpack.c.bf16 %v39_v7, %v38_v6  ;;  %v40_v12 = vld [vmem:[%s327_s2 + $0x30] sm:$0xff]  ;;  %21 = vst.msk [vmem:[#allocation2 + $0x8] sm:$0xff] %vm19_vm1, %v236_v19 }
   0x4   :  { %213 = vmatprep.subr.bf16.mxu0 %v42_v3  ;;  %v32_v10 = vpack.c.bf16 %v29_v9, %v28_v8  ;;  %v41_v13 = vld [vmem:[%s327_s2 + $0x38] sm:$0xff]  ;;  %v30_v15 = vld [vmem:[%s328_s1 + $0x10] sm:$0xff]  ;;  %v234_v18 = vld [vmem:[%s329_s0] sm:$0xff]   ;;  %23 = vst.msk [vmem:[#allocation2 + $0x18] sm:$0xff] %vm19_vm1, %v236_v19 }
   0x5   :  { %214 = vmatpush3.bf16.msra.mxu0 %v42_v3  ;;  %v45_v14 = vpack.c.bf16 %v41_v13, %v40_v12  ;;  %v31_v16 = vld [vmem:[%s328_s1 + $0x18] sm:$0xff]  ;;  %229 = vmatprep.mubr.msk.bf16.mxu1 %vm19_vm1, %v234_v18  ;;  %v235_v26 = vld [vmem:[%s329_s0 + $0x8] sm:$0xff]  }
   0x6   :  { %215 = vmatprep.subr.bf16.mxu0 %v43_v5  ;;  %221 = vmatprep.mubr.msk.bf16.mxu0 %vm46_vm0, %v32_v10  ;;  %v33_v17 = vpack.c.bf16 %v31_v16, %v30_v15 }
   0x8   :  { %v104_v27 = vld [vmem:[#allocation2 + $0x10] sm:$0xff] }
   0x9   :  { %216 = vmatpush3.bf16.msra.mxu0 %v43_v5  ;;  %v102_v28 = vld [vmem:[#allocation2] sm:$0xff] }
   0xa   :  { %217 = vmatprep.subr.bf16.mxu0 %v44_v11  ;;  %v103_v33 = vld [vmem:[#allocation2 + $0x8] sm:$0xff] }
   0xb   :  { %v105_v30 = vld [vmem:[#allocation2 + $0x18] sm:$0xff] }
   0xd   :  { %218 = vmatpush3.bf16.msra.mxu0 %v44_v11 }
   0xe   :  { %219 = vmatprep.subr.bf16.mxu0 %v45_v14 }
  0x11   :  { %220 = vmatpush3.bf16.msra.mxu0 %v45_v14 }
  0x14   :  { %222 = vmatmul.mubr.msk.bf16.vlgmr.msra.gmra.mrb[0].mxu0 %vm46_vm0, %v33_v17 }
  0xe7   :  { %v223_v20 = vpop.f32.mrb[0].mxu0 }
  0xe8   :  { %v87_v21 = vpop.f32.mrb[1].mxu0 }
  0xe9   :  { %v224_v22 = vpop.f32.mrb[2].mxu0 }
  0xea   :  { %v107_v23 = vpack.c.bf16 %v224_v22, %v223_v20  ;;  %v90_v24 = vpop.f32.mrb[3].mxu0 }
  0xeb   :  { %v106_v25 = vpack.c.bf16 %v90_v24, %v87_v21 }
  0xed   :  { %225 = vmatprep.subr.bf16.mxu1 %v106_v25 }
  0xee   :  { %226 = vmatpush3.bf16.msra.mxu1 %v106_v25 }
  0xef   :  { %227 = vmatprep.subr.bf16.mxu1 %v107_v23 }
  0xf2   :  { %228 = vmatpush3.bf16.msra.mxu1 %v107_v23 }
  0xf5   :  { %230 = vmatmul.mubr.msk.bf16.vlgmr.msra.gmra.mrb[0].mxu1 %vm19_vm1, %v235_v26 }
 0x1c8   :  { %v231_v29 = vpop.f32.mrb[0].mxu1 }
 0x1c9   :  { %v176_v31 = vadd.f32 %v231_v29, %v104_v27  ;;  %v159_v32 = vpop.f32.mrb[1].mxu1 }
 0x1ca   :  { %v174_v34 = vadd.f32 %v159_v32, %v102_v28  ;;  %v232_v35 = vpop.f32.mrb[2].mxu1 }
 0x1cb   :  { %180 = vst.msk [vmem:[#allocation2 + $0x10] sm:$0xff] %vm19_vm1, %v176_v31  ;;  %v177_v36 = vadd.f32 %v232_v35, %v105_v30  ;;  %v162_v37 = vpop.f32.mrb[3].mxu1 }
 0x1cc   :  { %178 = vst.msk [vmem:[#allocation2] sm:$0xff] %vm19_vm1, %v174_v34  ;;  %v175_v38 = vadd.f32 %v162_v37, %v103_v33 }
 0x1cd   :  { %181 = vst.msk [vmem:[#allocation2 + $0x18] sm:$0xff] %vm19_vm1, %v177_v36 }
 0x1ce   :  { %179 = vst.msk [vmem:[#allocation2 + $0x8] sm:$0xff] %vm19_vm1, %v175_v38 }
 0x1d2   :  { %v187_v39 = vld [vmem:[#allocation2 + $0x10] sm:$0xff] }
 0x1d3   :  { %191 = vst.msk [vmem:[%s330_s3 + $0x10] sm:$0xff] %vm19_vm1, %v187_v39  ;;  %v185_v40 = vld [vmem:[#allocation2] sm:$0xff] }
 0x1d4   :  { %189 = vst.msk [vmem:[%s330_s3] sm:$0xff] %vm19_vm1, %v185_v40  ;;  %v188_v41 = vld [vmem:[#allocation2 + $0x18] sm:$0xff] }
 0x1d5   :  { %192 = vst.msk [vmem:[%s330_s3 + $0x18] sm:$0xff] %vm19_vm1, %v188_v41  ;;  %v186_v42 = vld [vmem:[#allocation2 + $0x8] sm:$0xff] }
 0x1d6   :  { %190 = vst.msk [vmem:[%s330_s3 + $0x8] sm:$0xff] %vm19_vm1, %v186_v42 }

// kernel: _lambda_.15
= control target key start
LH: loop header
LB: loop body
LE: loop exit
PB: predicated region body
PF: predicated region fallthrough
CT: control target
= control target key end

     0   :  { %vm22_vm0 = vcmask 130048   ;;  %v174_v3 = vmov 0.0   ;;  %vm75_vm1 = vcmask 261120   ;;  %s268_s1 = inlined_call_operand.vmem [shape: f32[32,16], index: 1, kind: input, shape index: {}]   ;;  %s269_s2 = inlined_call_operand.vmem [shape: f32[32,16], index: 2, kind: input, shape index: {}]   ;;  %s270_s3 = inlined_call_operand.vmem [shape: f32[32,16], index: 3, kind: input, shape index: {}]   ;;  %s271_s0 = inlined_call_operand.vmem [shape: bf16[32,32], index: 0, kind: input, shape index: {}]   ;;  %s272_s4 = inlined_call_operand.vmem [shape: f32[32,16], index: 4, kind: output, shape index: {}]  }
   0x1   :  { %v27_v0 = vld [vmem:[%s270_s3] sm:$0xff]  ;;  %v28_v1 = vld [vmem:[%s270_s3 + $0x8] sm:$0xff]  ;;  %25 = vst.msk [vmem:[#allocation2 + $0x10] sm:$0xff] %vm22_vm0, %v174_v3  ;;  %23 = vst.msk [vmem:[#allocation2] sm:$0xff] %vm22_vm0, %v174_v3 }
   0x2   :  { %v31_v2 = vld [vmem:[%s268_s1] sm:$0xff]  ;;  %24 = vst.msk [vmem:[#allocation2 + $0x8] sm:$0xff] %vm22_vm0, %v174_v3  ;;  %26 = vst.msk [vmem:[#allocation2 + $0x18] sm:$0xff] %vm22_vm0, %v174_v3  ;;  %v32_v4 = vld [vmem:[%s268_s1 + $0x8] sm:$0xff]  ;;  %v39_v6 = vsub.f32 1.0, %v27_v0  ;;  %v40_v7 = vsub.f32 1.0, %v28_v1 }
   0x3   :  { %v35_v5 = vmul.f32 %v31_v2, %v27_v0  ;;  %v43_v8 = vld [vmem:[%s269_s2] sm:$0xff]  ;;  %v44_v9 = vld [vmem:[%s269_s2 + $0x8] sm:$0xff]  ;;  %v36_v10 = vmul.f32 %v32_v4, %v28_v1  ;;  %v29_v11 = vld [vmem:[%s270_s3 + $0x10] sm:$0xff] }
   0x4   :  { %v30_v12 = vld [vmem:[%s270_s3 + $0x18] sm:$0xff]  ;;  %v33_v13 = vld [vmem:[%s268_s1 + $0x10] sm:$0xff]  ;;  %v47_v14 = vmul.f32 %v43_v8, %v39_v6  ;;  %v48_v15 = vmul.f32 %v44_v9, %v40_v7  ;;  %v41_v18 = vsub.f32 1.0, %v29_v11  ;;  %v172_v23 = vld [vmem:[%s271_s0] sm:$0xff]  }
   0x5   :  { %v34_v16 = vld [vmem:[%s268_s1 + $0x18] sm:$0xff]  ;;  %v37_v17 = vmul.f32 %v33_v13, %v29_v11  ;;  %v45_v19 = vld [vmem:[%s269_s2 + $0x10] sm:$0xff]  ;;  %v42_v22 = vsub.f32 1.0, %v30_v12  ;;  %167 = vmatprep.mubr.msk.bf16.mxu0 %vm75_vm1, %v172_v23  ;;  %v173_v32 = vld [vmem:[%s271_s0 + $0x8] sm:$0xff]  }
   0x6   :  { %v46_v20 = vld [vmem:[%s269_s2 + $0x18] sm:$0xff]  ;;  %v38_v21 = vmul.f32 %v34_v16, %v30_v12  ;;  %v51_v24 = vadd.f32 %v47_v14, %v35_v5  ;;  %v52_v25 = vadd.f32 %v48_v15, %v36_v10  ;;  %v49_v26 = vmul.f32 %v45_v19, %v41_v18 }
   0x7   :  { %v50_v27 = vmul.f32 %v46_v20, %v42_v22 }
   0x8   :  { %v63_v28 = vpack.c.bf16 %v52_v25, %v51_v24  ;;  %v53_v29 = vadd.f32 %v49_v26, %v37_v17  ;;  %v61_v33 = vld [vmem:[#allocation2 + $0x10] sm:$0xff]  ;;  %v59_v34 = vld [vmem:[#allocation2] sm:$0xff] }
   0x9   :  { %v54_v30 = vadd.f32 %v50_v27, %v38_v21  ;;  %v62_v36 = vld [vmem:[#allocation2 + $0x18] sm:$0xff]  ;;  %v60_v39 = vld [vmem:[#allocation2 + $0x8] sm:$0xff] }
   0xa   :  { %163 = vmatprep.subr.bf16.mxu0 %v63_v28 }
   0xb   :  { %164 = vmatpush3.bf16.msra.mxu0 %v63_v28  ;;  %v64_v31 = vpack.c.bf16 %v54_v30, %v53_v29 }
   0xd   :  { %165 = vmatprep.subr.bf16.mxu0 %v64_v31 }
   0xf   :  { %166 = vmatpush3.bf16.msra.mxu0 %v64_v31 }
  0x12   :  { %168 = vmatmul.mubr.msk.bf16.vlgmr.msra.gmra.mrb[0].mxu0 %vm75_vm1, %v173_v32 }
  0xe5   :  { %v169_v35 = vpop.f32.mrb[0].mxu0 }
  0xe6   :  { %v133_v37 = vadd.f32 %v169_v35, %v61_v33  ;;  %v116_v38 = vpop.f32.mrb[1].mxu0 }
  0xe7   :  { %v131_v40 = vadd.f32 %v116_v38, %v59_v34  ;;  %v170_v41 = vpop.f32.mrb[2].mxu0 }
  0xe8   :  { %138 = vst.msk [vmem:[#allocation2 + $0x10] sm:$0xff] %vm22_vm0, %v133_v37  ;;  %v134_v42 = vadd.f32 %v170_v41, %v62_v36  ;;  %v119_v43 = vpop.f32.mrb[3].mxu0 }
  0xe9   :  { %136 = vst.msk [vmem:[#allocation2] sm:$0xff] %vm22_vm0, %v131_v40  ;;  %v132_v44 = vadd.f32 %v119_v43, %v60_v39 }
  0xea   :  { %139 = vst.msk [vmem:[#allocation2 + $0x18] sm:$0xff] %vm22_vm0, %v134_v42 }
  0xeb   :  { %137 = vst.msk [vmem:[#allocation2 + $0x8] sm:$0xff] %vm22_vm0, %v132_v44 }
  0xef   :  { %v145_v45 = vld [vmem:[#allocation2 + $0x10] sm:$0xff] }
  0xf0   :  { %149 = vst.msk [vmem:[%s272_s4 + $0x10] sm:$0xff] %vm22_vm0, %v145_v45  ;;  %v143_v46 = vld [vmem:[#allocation2] sm:$0xff] }
  0xf1   :  { %147 = vst.msk [vmem:[%s272_s4] sm:$0xff] %vm22_vm0, %v143_v46  ;;  %v146_v47 = vld [vmem:[#allocation2 + $0x18] sm:$0xff] }
  0xf2   :  { %150 = vst.msk [vmem:[%s272_s4 + $0x18] sm:$0xff] %vm22_vm0, %v146_v47  ;;  %v144_v48 = vld [vmem:[#allocation2 + $0x8] sm:$0xff] }
  0xf3   :  { %148 = vst.msk [vmem:[%s272_s4 + $0x8] sm:$0xff] %vm22_vm0, %v144_v48 }

// kernel: _lambda_.18
= control target key start
LH: loop header
LB: loop body
LE: loop exit
PB: predicated region body
PF: predicated region fallthrough
CT: control target
= control target key end

     0   :  { %vm37_vm0 = vcmask 130048   ;;  %vm19_vm1 = vcmask 261120   ;;  %v218_v10 = vmov 0.0   ;;  %s289_s2 = inlined_call_operand.vmem [shape: f32[16,32], index: 2, kind: input, shape index: {}]   ;;  %s290_s1 = inlined_call_operand.vmem [shape: f32[32,16], index: 1, kind: input, shape index: {}]   ;;  %s291_s0 = inlined_call_operand.vmem [shape: bf16[32,32], index: 0, kind: input, shape index: {}]   ;;  %s292_s3 = inlined_call_operand.vmem [shape: f32[32,32], index: 3, kind: output, shape index: {}]  }
   0x1   :  { %v34_v0 = vld [vmem:[%s289_s2] sm:$0xff]  ;;  %v35_v1 = vld [vmem:[%s289_s2 + $0x8] sm:$0xff]  ;;  %v30_v5 = vld [vmem:[%s290_s1 + $0x10] sm:$0xff]  ;;  %22 = vst.msk [vmem:[#allocation2 + $0x10] sm:$0xff] %vm19_vm1, %v218_v10 }
   0x2   :  { %v28_v2 = vld [vmem:[%s290_s1] sm:$0xff]  ;;  %v36_v3 = vpack.c.bf16 %v35_v1, %v34_v0  ;;  %v29_v4 = vld [vmem:[%s290_s1 + $0x8] sm:$0xff]  ;;  %v31_v6 = vld [vmem:[%s290_s1 + $0x18] sm:$0xff]  ;;  %20 = vst.msk [vmem:[#allocation2] sm:$0xff] %vm19_vm1, %v218_v10 }
   0x3   :  { %v32_v7 = vpack.c.bf16 %v29_v4, %v28_v2  ;;  %v33_v8 = vpack.c.bf16 %v31_v6, %v30_v5  ;;  %v216_v9 = vld [vmem:[%s291_s0] sm:$0xff]   ;;  %21 = vst.msk [vmem:[#allocation2 + $0x8] sm:$0xff] %vm19_vm1, %v218_v10  ;;  %23 = vst.msk [vmem:[#allocation2 + $0x18] sm:$0xff] %vm19_vm1, %v218_v10  ;;  %v217_v17 = vld [vmem:[%s291_s0 + $0x8] sm:$0xff]  }
   0x4   :  { %201 = vmatprep.subr.bf16.mxu0 %v36_v3  ;;  %211 = vmatprep.mubr.msk.bf16.mxu1 %vm19_vm1, %v216_v9 }
   0x5   :  { %202 = vmatpush3.bf16.msra.mxu0 %v36_v3  ;;  %203 = vmatprep.mubr.msk.bf16.mxu0 %vm37_vm0, %v32_v7 }
   0x8   :  { %204 = vmatmul.mubr.msk.bf16.vlgmr.msra.gmra.mrb[0].mxu0 %vm37_vm0, %v33_v8  ;;  %v95_v18 = vld [vmem:[#allocation2 + $0x10] sm:$0xff] }
   0x9   :  { %v93_v19 = vld [vmem:[#allocation2] sm:$0xff] }
   0xa   :  { %v96_v21 = vld [vmem:[#allocation2 + $0x18] sm:$0xff]  ;;  %v94_v24 = vld [vmem:[#allocation2 + $0x8] sm:$0xff] }
  0xdb   :  { %v205_v11 = vpop.f32.mrb[0].mxu0 }
  0xdc   :  { %v78_v12 = vpop.f32.mrb[1].mxu0 }
  0xdd   :  { %v206_v13 = vpop.f32.mrb[2].mxu0 }
  0xde   :  { %v98_v14 = vpack.c.bf16 %v206_v13, %v205_v11  ;;  %v81_v15 = vpop.f32.mrb[3].mxu0 }
  0xdf   :  { %v97_v16 = vpack.c.bf16 %v81_v15, %v78_v12 }
  0xe1   :  { %207 = vmatprep.subr.bf16.mxu1 %v97_v16 }
  0xe2   :  { %208 = vmatpush3.bf16.msra.mxu1 %v97_v16 }
  0xe3   :  { %209 = vmatprep.subr.bf16.mxu1 %v98_v14 }
  0xe6   :  { %210 = vmatpush3.bf16.msra.mxu1 %v98_v14 }
  0xe9   :  { %212 = vmatmul.mubr.msk.bf16.vlgmr.msra.gmra.mrb[0].mxu1 %vm19_vm1, %v217_v17 }
 0x1bc   :  { %v213_v20 = vpop.f32.mrb[0].mxu1 }
 0x1bd   :  { %v167_v22 = vadd.f32 %v213_v20, %v95_v18  ;;  %v150_v23 = vpop.f32.mrb[1].mxu1 }
 0x1be   :  { %v165_v25 = vadd.f32 %v150_v23, %v93_v19  ;;  %v214_v26 = vpop.f32.mrb[2].mxu1 }
 0x1bf   :  { %171 = vst.msk [vmem:[#allocation2 + $0x10] sm:$0xff] %vm19_vm1, %v167_v22  ;;  %v168_v27 = vadd.f32 %v214_v26, %v96_v21  ;;  %v153_v28 = vpop.f32.mrb[3].mxu1 }
 0x1c0   :  { %169 = vst.msk [vmem:[#allocation2] sm:$0xff] %vm19_vm1, %v165_v25  ;;  %v166_v29 = vadd.f32 %v153_v28, %v94_v24 }
 0x1c1   :  { %172 = vst.msk [vmem:[#allocation2 + $0x18] sm:$0xff] %vm19_vm1, %v168_v27 }
 0x1c2   :  { %170 = vst.msk [vmem:[#allocation2 + $0x8] sm:$0xff] %vm19_vm1, %v166_v29 }
 0x1c6   :  { %v178_v30 = vld [vmem:[#allocation2 + $0x10] sm:$0xff] }
 0x1c7   :  { %182 = vst.msk [vmem:[%s292_s3 + $0x10] sm:$0xff] %vm19_vm1, %v178_v30  ;;  %v176_v31 = vld [vmem:[#allocation2] sm:$0xff] }
 0x1c8   :  { %180 = vst.msk [vmem:[%s292_s3] sm:$0xff] %vm19_vm1, %v176_v31  ;;  %v179_v32 = vld [vmem:[#allocation2 + $0x18] sm:$0xff] }
 0x1c9   :  { %183 = vst.msk [vmem:[%s292_s3 + $0x18] sm:$0xff] %vm19_vm1, %v179_v32  ;;  %v177_v33 = vld [vmem:[#allocation2 + $0x8] sm:$0xff] }
 0x1ca   :  { %181 = vst.msk [vmem:[%s292_s3 + $0x8] sm:$0xff] %vm19_vm1, %v177_v33 }

// kernel: _lambda_.16
= control target key start
LH: loop header
LB: loop body
LE: loop exit
PB: predicated region body
PF: predicated region fallthrough
CT: control target
= control target key end

     0   :  { %vm42_vm0 = vcmask 130048   ;;  %vm104_vm1 = vcmask 261120   ;;  %v890_v22 = vmov 0   ;;  %v891_v49 = vmov 0.0   ;;  %s1247_s3 = inlined_call_operand.vmem [shape: f32[32,16], index: 3, kind: input, shape index: {}, may-alias: {0,3}]   ;;  %s1248_s0 = inlined_call_operand.vmem [shape: f32[32,16], index: 0, kind: input, shape index: {}, may-alias: {0,3}]   ;;  %s1249_s4 = inlined_call_operand.<no memory space> [shape: f32[1,1], index: 4, kind: input, shape index: {}]   ;;  %s1250_s5 = inlined_call_operand.vmem [shape: f32[8,16], index: 5, kind: input, shape index: {}]   ;;  %s1251_s1 = inlined_call_operand.vmem [shape: f32[32,16], index: 1, kind: input, shape index: {}]   ;;  %s1252_s2 = inlined_call_operand.vmem [shape: f32[32,16], index: 2, kind: input, shape index: {}]   ;;  %s1253_s6 = inlined_call_operand.vmem [shape: f32[32,16], index: 6, kind: output, shape index: {0}]   ;;  %s1254_s7 = inlined_call_operand.vmem [shape: f32[32,8], index: 7, kind: output, shape index: {1}]   ;;  %s1255_s8 = inlined_call_operand.vmem [shape: f32[32,8], index: 8, kind: output, shape index: {2}]   ;;  %s1256_s9 = inlined_call_operand.vmem [shape: f32[32,8], index: 9, kind: output, shape index: {3}]  }
   0x1   :  { %v36_v0 = vld [vmem:[%s1247_s3] sm:$0xff]  ;;  %v37_v1 = vld [vmem:[%s1247_s3 + $0x8] sm:$0xff]  ;;  %v38_v2 = vld [vmem:[%s1247_s3 + $0x10] sm:$0xff]  ;;  %817 = vset.pattern.permute.xlu0 %v890_v22  ;;  %v15_v23 = vstv %s1249_s4  ;;  %786 = vmatprep.subr.mxu1 %v891_v49  ;;  %vm892_vm2 = vmmov 0   ;;  %v893_v56 = vmov 1.0   ;;  %vm638_vm3 = vcmask 64512  }
   0x2   :  { %v40_v3 = vpack.c.bf16 %v37_v1, %v36_v0  ;;  %v39_v4 = vld [vmem:[%s1247_s3 + $0x18] sm:$0xff]  ;;  %v959_v5 = vld [vmem:[%s1248_s0] sm:$0xff]  ;;  %v964_v6 = vld [vmem:[%s1248_s0 + $0x8] sm:$0xff]  ;;  %16 = vst [vmem:[#allocation2] sm:$0x1] %v15_v23  ;;  %788 = vmatprep.mubr.msk.f32.mxu1 %vm892_vm2, %v891_v49 }
   0x3   :  { %v41_v7 = vpack.c.bf16 %v39_v4, %v38_v2  ;;  %v34_v8 = vpack.c.bf16 %v964_v6, %v959_v5  ;;  %v976_v11 = vld [vmem:[%s1248_s0 + $0x10] sm:$0xff]  ;;  %v981_v12 = vld [vmem:[%s1248_s0 + $0x18] sm:$0xff]  ;;  %v252_v47 = vld [vmem:[%s1250_s5] sm:$0xff] }
   0x4   :  { %811 = vmatprep.subr.msk.bf16.mxu0 %vm42_vm0, %v40_v3  ;;  %v50_v9 = vsel %vm42_vm0, %v40_v3, 0  ;;  %v35_v13 = vpack.c.bf16 %v981_v12, %v976_v11  ;;  %v309_v48 = vmul.f32 %v252_v47, %v252_v47  ;;  %v1017_v50 = vld [vmem:[%s1251_s1] sm:$0xff]  ;;  %v1022_v51 = vld [vmem:[%s1251_s1 + $0x8] sm:$0xff]  ;;  %v1032_v54 = vld [vmem:[%s1251_s1 + $0x10] sm:$0xff] }
   0x5   :  { %771 = vmatpush3.bf16.xpose.msra.mxu0 %v50_v9  ;;  %774 = vmatprep.mubr.msk.bf16.mxu0 %vm42_vm0, %v34_v8  ;;  %v53_v10 = vsel %vm42_vm0, %v41_v7, 0  ;;  %v265_v52 = vmul.f32 %v1017_v50, %v1017_v50  ;;  %v266_v53 = vmul.f32 %v1022_v51, %v1022_v51  ;;  %v267_v58 = vmul.f32 %v1032_v54, %v1032_v54  ;;  %v1045_v60 = vld [vmem:[%s1251_s1 + $0x18] sm:$0xff]  ;;  %v1053_v63 = vld [vmem:[%s1252_s2] sm:$0xff]  ;;  %v1061_v2 = vld [vmem:[%s1252_s2 + $0x8] sm:$0xff] }
   0x6   :  { %812 = vmatprep.subr.msk.bf16.mxu0 %vm42_vm0, %v41_v7  ;;  %787 = vmatpush3.xpose.msk.msra.mxu1 %vm42_vm0, %v309_v48  ;;  %v268_v61 = vmul.f32 %v1045_v60, %v1045_v60  ;;  %v269_v0 = vmul.f32 %v1053_v63, %v1053_v63 }
   0x7   :  { %791 = vmatprep.subr.msk.mxu1 %vm42_vm0, %v252_v47  ;;  %v285_v55 = vsel %vm42_vm0, %v265_v52, 0.0  ;;  %v288_v57 = vsel %vm42_vm0, %v266_v53, 0.0  ;;  %v291_v59 = vsel %vm42_vm0, %v267_v58, 0.0 }
   0x8   :  { %v294_v62 = vsel %vm42_vm0, %v268_v61, 0.0  ;;  %v297_v1 = vsel %vm42_vm0, %v269_v0, 0.0 }
   0x9   :  { %v731_v46 = vld [vmem:[#allocation2] ss:$0 sm:$0xff]  ;;  %789 = vmatmul.mubr.msk.f32.vlgmr.msra.gmra.mrb[0].mxu1 %vm42_vm0, %v893_v56 }
   0xa   :  { %792 = vmatpush3.xpose.msk.msra.mxu1 %vm42_vm0, %v252_v47 }
   0xd   :  { %773 = vmatpush3.bf16.xpose.msra.mxu0 %v53_v10 }
   0xe   :  { %778 = vmatprep.subr.bf16.mxu0 %v40_v3 }
  0x14   :  { %775 = vmatmul.mubr.msk.bf16.vlgmr.msra.gmra.mrb[0].mxu0 %vm42_vm0, %v35_v13 }
  0x15   :  { %779 = vmatpush3.bf16.msra.mxu0 %v40_v3  ;;  %v270_v3 = vmul.f32 %v1061_v2, %v1061_v2 }
  0x16   :  { %780 = vmatprep.subr.bf16.mxu0 %v41_v7 }
  0x17   :  { %v300_v4 = vsel %vm42_vm0, %v270_v3, 0.0 }
  0x19   :  { %781 = vmatpush3.bf16.msra.mxu0 %v41_v7  ;;  %v1069_v7 = vld [vmem:[%s1252_s2 + $0x18] sm:$0xff] }
  0x1a   :  { %v272_v8 = vmul.f32 %v1069_v7, %v1069_v7 }
  0x1c   :  { %v306_v9 = vsel %vm42_vm0, %v272_v8, 0.0 }
  0xe7   :  { %v776_v14 = vpop.f32.mrb[0].mxu0 }
  0xe8   :  { %v89_v15 = vpop.f32.mrb[1].mxu0  ;;  %v111_v16 = vsel %vm104_vm1, %v776_v14, -inf }
  0xe9   :  { %112 = vmax.xlane.f32.xlu1 %v111_v16  ;;  %v777_v17 = vpop.f32.mrb[2].mxu0  ;;  %v105_v18 = vsel %vm104_vm1, %v89_v15, -inf }
  0xea   :  { %106 = vmax.xlane.f32.xlu0 %v105_v18  ;;  %v92_v19 = vpop.f32.mrb[3].mxu0  ;;  %v114_v20 = vsel %vm104_vm1, %v777_v17, -inf }
  0xeb   :  { %v108_v21 = vsel %vm104_vm1, %v92_v19, -inf }
  0xed   :  { %115 = vmax.xlane.f32.xlu1 %v114_v20 }
  0xee   :  { %109 = vmax.xlane.f32.xlu0 %v108_v21 }
 0x176   :  { %v993_v24 = vpop.xlane.xlu1 %112 }
 0x177   :  { %v131_v25 = vsub.f32 %v776_v14, %v993_v24  ;;  %v996_v26 = vpop.xlane.xlu0 %106  ;;  %v119_v10 = vsub.f32 -inf, %v993_v24 }
 0x178   :  { %v129_v27 = vsub.f32 %v89_v15, %v996_v26  ;;  %v117_v13 = vsub.f32 -inf, %v996_v26 }
 0x179   :  { %v137_v28 = vmul.f32 1.442695, %v131_v25  ;;  %v125_v16 = vmul.f32 1.442695, %v119_v10 }
 0x17a   :  { %v133_v29 = vmul.f32 1.442695, %v129_v27  ;;  %v999_v30 = vpop.xlane.xlu1 %115 }
 0x17b   :  { %v132_v31 = vsub.f32 %v777_v17, %v999_v30  ;;  %v1002_v32 = vpop.xlane.xlu0 %109  ;;  %818 = vpow2.f32 %v137_v28  ;;  %v120_v14 = vsub.f32 -inf, %v999_v30  ;;  %v121_v17 = vmul.f32 1.442695, %v117_v13 }
 0x17c   :  { %v130_v33 = vsub.f32 %v92_v19, %v1002_v32  ;;  %820 = vpow2.f32 %v133_v29  ;;  %v118_v15 = vsub.f32 -inf, %v1002_v32 }
 0x17d   :  { %v139_v34 = vmul.f32 1.442695, %v132_v31  ;;  %v127_v18 = vmul.f32 1.442695, %v120_v14  ;;  %v382_v14 = vpop.f32.mrb[0].mxu1 }
 0x17e   :  { %v135_v35 = vmul.f32 1.442695, %v130_v33  ;;  %v123_v19 = vmul.f32 1.442695, %v118_v15 }
 0x17f   :  { %822 = vpow2.f32 %v139_v34 }
 0x180   :  { %824 = vpow2.f32 %v135_v35 }
 0x181   :  { %826 = vpow2.f32 %v125_v16 }
 0x182   :  { %828 = vpow2.f32 %v121_v17 }
 0x183   :  { %830 = vpow2.f32 %v127_v18 }
 0x184   :  { %832 = vpow2.f32 %v123_v19 }
 0x185   :  { %v819_v36 = vpop.eup %818 }
 0x186   :  { %v151_v37 = vsel %vm104_vm1, %v819_v36, 0.0  ;;  %v821_v38 = vpop.eup %820 }
 0x187   :  { %152 = vadd.xlane.f32.xlu0 %v151_v37  ;;  %v145_v40 = vsel %vm104_vm1, %v821_v38, 0.0 }
 0x189   :  { %v823_v39 = vpop.eup %822 }
 0x18a   :  { %v162_v41 = vpack.c.bf16 %v823_v39, %v819_v36  ;;  %v825_v42 = vpop.eup %824  ;;  %v154_v45 = vsel %vm104_vm1, %v823_v39, 0.0 }
 0x18b   :  { %146 = vadd.xlane.f32.xlu0 %v145_v40  ;;  %v148_v43 = vsel %vm104_vm1, %v825_v42, 0.0  ;;  %v161_v44 = vpack.c.bf16 %v825_v42, %v821_v38  ;;  %v827_v22 = vpop.eup %826 }
 0x18c   :  { %149 = vadd.xlane.f32.xlu1 %v148_v43  ;;  %v829_v23 = vpop.eup %828  ;;  %v143_v27 = vmul.f32 0.0, %v827_v22 }
 0x18d   :  { %782 = vmatprep.mubr.msk.bf16.mxu0 %vm104_vm1, %v161_v44  ;;  %v831_v25 = vpop.eup %830  ;;  %v141_v28 = vmul.f32 0.0, %v829_v23 }
 0x18e   :  { %783 = vmatmul.mubr.msk.bf16.vlgmr.msra.gmra.mrb[4].mxu0 %vm104_vm1, %v162_v41  ;;  %v833_v24 = vpop.eup %832  ;;  %v144_v31 = vmul.f32 0.0, %v831_v25 }
 0x18f   :  { %v142_v33 = vmul.f32 0.0, %v833_v24 }
 0x190   :  { %155 = vadd.xlane.f32.xlu1 %v154_v45 }
 0x194   :  { %286 = vadd.xlane.f32.xlu1 %v285_v55 }
 0x198   :  { %289 = vadd.xlane.f32.xlu1 %v288_v57 }
 0x19c   :  { %292 = vadd.xlane.f32.xlu1 %v291_v59 }
 0x1a0   :  { %295 = vadd.xlane.f32.xlu1 %v294_v62 }
 0x1a1   :  { %237 = vperm.xlu0 %817, %v731_v46  }
 0x1a4   :  { %298 = vadd.xlane.f32.xlu1 %v297_v1 }
 0x1a8   :  { %301 = vadd.xlane.f32.xlu1 %v300_v4 }
 0x1c0   :  { %307 = vadd.xlane.f32.xlu0 %v306_v9  ;;  %v259_v9 = vld [vmem:[%s1252_s2 + $0x10] sm:$0xff] }
 0x1c1   :  { %v271_v10 = vmul.f32 %v259_v9, %v259_v9 }
 0x214   :  { %v153_v20 = vpop.xlane.xlu0 %152 }
 0x215   :  { %v159_v30 = vadd.f32 %v153_v20, %v143_v27 }
 0x217   :  { %834 = vrcp.f32 %v159_v30 }
 0x218   :  { %v147_v26 = vpop.xlane.xlu0 %146 }
 0x219   :  { %v150_v21 = vpop.xlane.xlu1 %149  ;;  %v157_v32 = vadd.f32 %v147_v26, %v141_v28 }
 0x21a   :  { %v158_v35 = vadd.f32 %v150_v21, %v142_v33 }
 0x21b   :  { %836 = vrcp.f32 %v157_v32 }
 0x21d   :  { %v156_v29 = vpop.xlane.xlu1 %155 }
 0x21e   :  { %v160_v34 = vadd.f32 %v156_v29, %v144_v31 }
 0x220   :  { %838 = vrcp.f32 %v160_v34  ;;  %v238_v42 = vpop.permute.xlu0 %237 }
 0x221   :  { %840 = vrcp.f32 %v158_v35  ;;  %v835_v39 = vpop.eup %834 }
 0x225   :  { %v837_v43 = vpop.eup %836 }
 0x22a   :  { %v839_v47 = vpop.eup %838 }
 0x22b   :  { %v841_v52 = vpop.eup %840 }
 0x261   :  { %v784_v36 = vpop.f32.mrb[4].mxu0 }
 0x262   :  { %v220_v37 = vadd.f32 %v784_v36, %v143_v27  ;;  %v203_v38 = vpop.f32.mrb[5].mxu0 }
 0x263   :  { %v218_v40 = vadd.f32 %v203_v38, %v141_v28  ;;  %v785_v41 = vpop.f32.mrb[6].mxu0 }
 0x264   :  { %v228_v44 = vmul.f32 %v835_v39, %v220_v37  ;;  %v221_v45 = vadd.f32 %v785_v41, %v144_v31  ;;  %v206_v46 = vpop.f32.mrb[7].mxu0 }
 0x265   :  { %v224_v48 = vmul.f32 %v837_v43, %v218_v40  ;;  %v219_v49 = vadd.f32 %v206_v46, %v142_v33 }
 0x266   :  { %v230_v53 = vmul.f32 %v839_v47, %v221_v45  ;;  %v242_v55 = vmul.f32 %v238_v42, %v228_v44 }
 0x267   :  { %v226_v56 = vmul.f32 %v841_v52, %v219_v49  ;;  %v240_v57 = vmul.f32 %v238_v42, %v224_v48 }
 0x268   :  { %v243_v58 = vmul.f32 %v238_v42, %v230_v53  ;;  %v246_v59 = vadd.f32 %v242_v55, %v976_v11 }
 0x269   :  { %v241_v61 = vmul.f32 %v238_v42, %v226_v56  ;;  %v244_v62 = vadd.f32 %v240_v57, %v959_v5 }
 0x26a   :  { %v263_v0 = vmul.f32 %v246_v59, %v246_v59  ;;  %250 = vst.msk [vmem:[%s1253_s6 + $0x10] sm:$0xff] %vm42_vm0, %v246_v59  ;;  %v247_v1 = vadd.f32 %v243_v58, %v981_v12 }
 0x26b   :  { %v245_v3 = vadd.f32 %v241_v61, %v964_v6  ;;  %248 = vst.msk [vmem:[%s1253_s6] sm:$0xff] %vm42_vm0, %v244_v62  ;;  %793 = vmatprep.mubr.msk.f32.mxu1 %vm42_vm0, %v244_v62  ;;  %v261_v5 = vmul.f32 %v244_v62, %v244_v62 }
 0x26c   :  { %v279_v11 = vsel %vm42_vm0, %v263_v0, 0.0  ;;  %251 = vst.msk [vmem:[%s1253_s6 + $0x18] sm:$0xff] %vm42_vm0, %v247_v1  ;;  %v264_v12 = vmul.f32 %v247_v1, %v247_v1 }
 0x26d   :  { %249 = vst.msk [vmem:[%s1253_s6 + $0x8] sm:$0xff] %vm42_vm0, %v245_v3  ;;  %280 = vadd.xlane.f32.xlu1 %v279_v11  ;;  %794 = vmatmul.mubr.msk.f32.vlgmr.msra.gmra.mrb[2].mxu1 %vm42_vm0, %v245_v3  ;;  %v273_v6 = vsel %vm42_vm0, %v261_v5, 0.0  ;;  %v262_v8 = vmul.f32 %v245_v3, %v245_v3 }
 0x26e   :  { %796 = vmatprep.mubr.msk.f32.mxu1 %vm42_vm0, %v246_v59  ;;  %v282_v4 = vsel %vm42_vm0, %v264_v12, 0.0 }
 0x26f   :  { %v276_v13 = vsel %vm42_vm0, %v262_v8, 0.0 }
 0x271   :  { %797 = vmatmul.mubr.msk.f32.gmra.mrb[4].mxu1 %vm42_vm0, %v247_v1  ;;  %274 = vadd.xlane.f32.xlu1 %v273_v6 }
 0x272   :  { %799 = vmatprep.mubr.msk.f32.mxu1 %vm42_vm0, %v1017_v50  ;;  %v790_v50 = vpop.f32.mrb[1].mxu1 }
 0x275   :  { %800 = vmatmul.mubr.msk.f32.gmra.mrb[6].mxu1 %vm42_vm0, %v1022_v51  ;;  %283 = vadd.xlane.f32.xlu1 %v282_v4  ;;  %v303_v51 = vsel %vm42_vm0, %v271_v10, 0.0  ;;  %v308_v10 = vpop.xlane.xlu0 %307 }
 0x276   :  { %802 = vmatprep.mubr.msk.f32.mxu1 %vm42_vm0, %v1032_v54  ;;  %v287_v54 = vpop.xlane.xlu1 %286 }
 0x279   :  { %803 = vmatmul.mubr.msk.f32.gmra.mrb[8].mxu1 %vm42_vm0, %v1045_v60  ;;  %277 = vadd.xlane.f32.xlu1 %v276_v13 }
 0x27a   :  { %805 = vmatprep.mubr.msk.f32.mxu1 %vm42_vm0, %v1053_v63  ;;  %v290_v15 = vpop.xlane.xlu1 %289  ;;  %v550_v63 = vlaneseq }
 0x27c   :  { %v551_v21 = vshrl.u32 %v550_v63, 7 }
 0x27d   :  { %806 = vmatmul.mubr.msk.f32.gmra.mrb[10].mxu1 %vm42_vm0, %v1061_v2  ;;  %304 = vadd.xlane.f32.xlu1 %v303_v51 }
 0x27e   :  { %808 = vmatprep.mubr.msk.f32.mxu1 %vm42_vm0, %v259_v9  ;;  %v293_v16 = vpop.xlane.xlu1 %292  ;;  %v552_v23 = vsub.s32 0, %v551_v21 }
 0x280   :  { %v1125_v2 = vrot.slane %v382_v14, %v552_v23 }
 0x281   :  { %809 = vmatmul.mubr.msk.f32.gmra.mrb[12].mxu1 %vm42_vm0, %v1069_v7 }
 0x282   :  { %v296_v60 = vpop.xlane.xlu1 %295  ;;  %v559_v46 = vadd.f32 %v1125_v2, %v290_v15  ;;  %v558_v49 = vadd.f32 %v1125_v2, %v287_v54  ;;  %v560_v0 = vadd.f32 %v1125_v2, %v293_v16  ;;  %v565_v63 = vadd.f32 %v1125_v2, %v308_v10 }
 0x283   :  { %v561_v59 = vadd.f32 %v1125_v2, %v296_v60 }
 0x286   :  { %v299_v17 = vpop.xlane.xlu1 %298 }
 0x287   :  { %v562_v13 = vadd.f32 %v1125_v2, %v299_v17 }
 0x28a   :  { %v302_v18 = vpop.xlane.xlu1 %301 }
 0x28b   :  { %v563_v4 = vadd.f32 %v1125_v2, %v302_v18 }
 0x2fa   :  { %v281_v19 = vpop.xlane.xlu1 %280 }
 0x2fb   :  { %v556_v37 = vadd.f32 %v1125_v2, %v281_v19 }
 0x2fe   :  { %v275_v20 = vpop.xlane.xlu1 %274 }
 0x2ff   :  { %v554_v28 = vadd.f32 %v1125_v2, %v275_v20 }
 0x302   :  { %v284_v22 = vpop.xlane.xlu1 %283 }
 0x303   :  { %v557_v33 = vadd.f32 %v1125_v2, %v284_v22 }
 0x306   :  { %v278_v25 = vpop.xlane.xlu1 %277 }
 0x307   :  { %v555_v27 = vadd.f32 %v1125_v2, %v278_v25 }
 0x30a   :  { %v305_v51 = vpop.xlane.xlu1 %304 }
 0x30b   :  { %v564_v17 = vadd.f32 %v1125_v2, %v305_v51 }
 0x340   :  { %v795_v24 = vpop.f32.mrb[2].mxu1 }
 0x341   :  { %v567_v26 = vmul.f32 2.0, %v795_v24  ;;  %v491_v7 = vpop.f32.mrb[3].mxu1 }
 0x342   :  { %v566_v29 = vmul.f32 2.0, %v491_v7 }
 0x343   :  { %v579_v30 = vsub.f32 %v555_v27, %v567_v26 }
 0x344   :  { %v578_v31 = vsub.f32 %v554_v28, %v566_v29  ;;  %v798_v32 = vpop.f32.mrb[4].mxu1 }
 0x345   :  { %v591_v34 = vmax.f32 %v579_v30, 0.0  ;;  %v569_v35 = vmul.f32 2.0, %v798_v32  ;;  %v501_v36 = vpop.f32.mrb[5].mxu1 }
 0x346   :  { %v590_v38 = vmax.f32 %v578_v31, 0.0  ;;  %v568_v39 = vmul.f32 2.0, %v501_v36 }
 0x347   :  { %v603_v40 = vadd.f32 1.0, %v591_v34  ;;  %v581_v41 = vsub.f32 %v557_v33, %v569_v35 }
 0x348   :  { %v602_v42 = vadd.f32 1.0, %v590_v38  ;;  %v580_v43 = vsub.f32 %v556_v37, %v568_v39  ;;  %v801_v44 = vpop.f32.mrb[6].mxu1 }
 0x349   :  { %842 = vrcp.f32 %v603_v40  ;;  %v593_v45 = vmax.f32 %v581_v41, 0.0  ;;  %v571_v47 = vmul.f32 2.0, %v801_v44  ;;  %v511_v48 = vpop.f32.mrb[7].mxu1 }
 0x34a   :  { %v570_v52 = vmul.f32 2.0, %v511_v48  ;;  %844 = vrcp.f32 %v602_v42  ;;  %v592_v55 = vmax.f32 %v580_v43, 0.0 }
 0x34b   :  { %v605_v53 = vadd.f32 1.0, %v593_v45  ;;  %v583_v56 = vsub.f32 %v559_v46, %v571_v47 }
 0x34c   :  { %v582_v57 = vsub.f32 %v558_v49, %v570_v52  ;;  %v804_v58 = vpop.f32.mrb[8].mxu1  ;;  %v604_v3 = vadd.f32 1.0, %v592_v55 }
 0x34d   :  { %v573_v61 = vmul.f32 2.0, %v804_v58  ;;  %v521_v62 = vpop.f32.mrb[9].mxu1  ;;  %846 = vrcp.f32 %v605_v53  ;;  %v595_v11 = vmax.f32 %v583_v56, 0.0 }
 0x34e   :  { %v572_v1 = vmul.f32 2.0, %v521_v62  ;;  %848 = vrcp.f32 %v604_v3  ;;  %v594_v15 = vmax.f32 %v582_v57, 0.0 }
 0x34f   :  { %v585_v5 = vsub.f32 %v561_v59, %v573_v61  ;;  %v607_v54 = vadd.f32 1.0, %v595_v11 }
 0x350   :  { %v584_v6 = vsub.f32 %v560_v0, %v572_v1  ;;  %v807_v12 = vpop.f32.mrb[10].mxu1  ;;  %v606_v24 = vadd.f32 1.0, %v594_v15 }
 0x351   :  { %v575_v8 = vmul.f32 2.0, %v807_v12  ;;  %v531_v9 = vpop.f32.mrb[11].mxu1  ;;  %850 = vrcp.f32 %v607_v54  ;;  %v597_v27 = vmax.f32 %v585_v5, 0.0 }
 0x352   :  { %v574_v14 = vmul.f32 2.0, %v531_v9  ;;  %v596_v33 = vmax.f32 %v584_v6, 0.0 }
 0x353   :  { %v1137_v50 = vpop.eup %842  ;;  %v587_v16 = vsub.f32 %v563_v4, %v575_v8  ;;  %v609_v32 = vadd.f32 1.0, %v597_v27 }
 0x354   :  { %v586_v60 = vsub.f32 %v562_v13, %v574_v14  ;;  %v810_v19 = vpop.f32.mrb[12].mxu1  ;;  %v642_v20 = vsel %vm638_vm3, %v1137_v50, 0.0  ;;  %v1141_v18 = vpop.eup %844  ;;  %v608_v36 = vadd.f32 1.0, %v596_v33 }
 0x355   :  { %v577_v21 = vmul.f32 2.0, %v810_v19  ;;  %v541_v22 = vpop.f32.mrb[13].mxu1  ;;  %643 = vadd.xlane.f32.xlu1 %v642_v20  ;;  %v639_v29 = vsel %vm638_vm3, %v1141_v18, 0.0  ;;  %v599_v37 = vmax.f32 %v587_v16, 0.0 }
 0x356   :  { %v598_v23 = vmax.f32 %v586_v60, 0.0  ;;  %v576_v25 = vmul.f32 2.0, %v541_v22 }
 0x357   :  { %v589_v26 = vsub.f32 %v565_v63, %v577_v21  ;;  %v1147_v30 = vpop.eup %846  ;;  %v611_v40 = vadd.f32 1.0, %v599_v37 }
 0x358   :  { %v610_v7 = vadd.f32 1.0, %v598_v23  ;;  %v588_v28 = vsub.f32 %v564_v17, %v576_v25  ;;  %v648_v34 = vsel %vm638_vm3, %v1147_v30, 0.0  ;;  %v1151_v35 = vpop.eup %848 }
 0x359   :  { %640 = vadd.xlane.f32.xlu1 %v639_v29  ;;  %v645_v38 = vsel %vm638_vm3, %v1151_v35, 0.0  ;;  %v601_v41 = vmax.f32 %v589_v26, 0.0 }
 0x35a   :  { %852 = vrcp.f32 %v610_v7  ;;  %v600_v31 = vmax.f32 %v588_v28, 0.0 }
 0x35b   :  { %854 = vrcp.f32 %v606_v24  ;;  %v1155_v39 = vpop.eup %850  ;;  %v613_v46 = vadd.f32 1.0, %v601_v41 }
 0x35c   :  { %v612_v2 = vadd.f32 1.0, %v600_v31  ;;  %v654_v43 = vsel %vm638_vm3, %v1155_v39, 0.0 }
 0x35d   :  { %649 = vadd.xlane.f32.xlu1 %v648_v34 }
 0x35e   :  { %856 = vrcp.f32 %v612_v2 }
 0x35f   :  { %858 = vrcp.f32 %v609_v32 }
 0x360   :  { %860 = vrcp.f32 %v608_v36 }
 0x361   :  { %646 = vadd.xlane.f32.xlu1 %v645_v38  ;;  %862 = vrcp.f32 %v611_v40 }
 0x362   :  { %864 = vrcp.f32 %v613_v46 }
 0x364   :  { %v1157_v42 = vpop.eup %852 }
 0x365   :  { %v1161_v44 = vpop.eup %854  ;;  %655 = vadd.xlane.f32.xlu1 %v654_v43  ;;  %v663_v45 = vsel %vm638_vm3, %v1157_v42, 0.0 }
 0x366   :  { %664 = vadd.xlane.f32.xlu0 %v663_v45  ;;  %v651_v48 = vsel %vm638_vm3, %v1161_v44, 0.0 }
 0x368   :  { %v1165_v47 = vpop.eup %856 }
 0x369   :  { %v1169_v49 = vpop.eup %858  ;;  %652 = vadd.xlane.f32.xlu1 %v651_v48  ;;  %v669_v52 = vsel %vm638_vm3, %v1165_v47, 0.0 }
 0x36a   :  { %670 = vadd.xlane.f32.xlu0 %v669_v52  ;;  %v660_v53 = vsel %vm638_vm3, %v1169_v49, 0.0  ;;  %v1175_v55 = vpop.eup %860 }
 0x36b   :  { %v657_v56 = vsel %vm638_vm3, %v1175_v55, 0.0  ;;  %v1179_v57 = vpop.eup %862 }
 0x36c   :  { %v666_v58 = vsel %vm638_vm3, %v1179_v57, 0.0  ;;  %v1183_v59 = vpop.eup %864 }
 0x36d   :  { %661 = vadd.xlane.f32.xlu1 %v660_v53  ;;  %v672_v61 = vsel %vm638_vm3, %v1183_v59, 0.0 }
 0x371   :  { %658 = vadd.xlane.f32.xlu1 %v657_v56 }
 0x375   :  { %667 = vadd.xlane.f32.xlu1 %v666_v58 }
 0x379   :  { %673 = vadd.xlane.f32.xlu1 %v672_v61 }
 0x3e2   :  { %v644_v62 = vpop.xlane.xlu1 %643 }
 0x3e3   :  { %866 = vrcp.f32 %v644_v62 }
 0x3e6   :  { %v641_v0 = vpop.xlane.xlu1 %640 }
 0x3e7   :  { %868 = vrcp.f32 %v641_v0 }
 0x3ea   :  { %v650_v1 = vpop.xlane.xlu1 %649 }
 0x3eb   :  { %870 = vrcp.f32 %v650_v1 }
 0x3ed   :  { %v867_v3 = vpop.eup %866 }
 0x3ee   :  { %v678_v11 = vmul.f32 %v867_v3, %v1137_v50  ;;  %v647_v5 = vpop.xlane.xlu1 %646 }
 0x3ef   :  { %872 = vrcp.f32 %v647_v5 }
 0x3f0   :  { %700 = vst.msk [vmem:[%s1254_s7 + $0x8] sm:$0xff] %vm638_vm3, %v678_v11 }
 0x3f1   :  { %v869_v6 = vpop.eup %868 }
 0x3f2   :  { %v676_v12 = vmul.f32 %v869_v6, %v1141_v18  ;;  %v656_v4 = vpop.xlane.xlu1 %655 }
 0x3f3   :  { %874 = vrcp.f32 %v656_v4  ;;  %v665_v8 = vpop.xlane.xlu0 %664 }
 0x3f4   :  { %699 = vst.msk [vmem:[%s1254_s7] sm:$0xff] %vm638_vm3, %v676_v12  ;;  %876 = vrcp.f32 %v665_v8 }
 0x3f5   :  { %v871_v9 = vpop.eup %870 }
 0x3f6   :  { %v682_v10 = vmul.f32 %v871_v9, %v1147_v30  ;;  %v653_v13 = vpop.xlane.xlu1 %652 }
 0x3f7   :  { %878 = vrcp.f32 %v653_v13  ;;  %v671_v14 = vpop.xlane.xlu0 %670 }
 0x3f8   :  { %702 = vst.msk [vmem:[%s1254_s7 + $0x18] sm:$0xff] %vm638_vm3, %v682_v10  ;;  %880 = vrcp.f32 %v671_v14 }
 0x3f9   :  { %v873_v50 = vpop.eup %872 }
 0x3fa   :  { %v680_v51 = vmul.f32 %v873_v50, %v1151_v35  ;;  %v662_v54 = vpop.xlane.xlu1 %661 }
 0x3fb   :  { %882 = vrcp.f32 %v662_v54 }
 0x3fc   :  { %701 = vst.msk [vmem:[%s1254_s7 + $0x10] sm:$0xff] %vm638_vm3, %v680_v51 }
 0x3fd   :  { %v875_v15 = vpop.eup %874 }
 0x3fe   :  { %v877_v16 = vpop.eup %876  ;;  %v686_v60 = vmul.f32 %v875_v15, %v1155_v39  ;;  %v659_v19 = vpop.xlane.xlu1 %658 }
 0x3ff   :  { %v692_v20 = vmul.f32 %v877_v16, %v1157_v42  ;;  %884 = vrcp.f32 %v659_v19 }
 0x400   :  { %704 = vst.msk [vmem:[%s1255_s8 + $0x8] sm:$0xff] %vm638_vm3, %v686_v60 }
 0x401   :  { %v879_v18 = vpop.eup %878  ;;  %707 = vst.msk [vmem:[%s1256_s9] sm:$0xff] %vm638_vm3, %v692_v20 }
 0x402   :  { %v881_v63 = vpop.eup %880  ;;  %v684_v21 = vmul.f32 %v879_v18, %v1161_v44  ;;  %v668_v22 = vpop.xlane.xlu1 %667 }
 0x403   :  { %v696_v17 = vmul.f32 %v881_v63, %v1165_v47  ;;  %886 = vrcp.f32 %v668_v22 }
 0x404   :  { %703 = vst.msk [vmem:[%s1255_s8] sm:$0xff] %vm638_vm3, %v684_v21 }
 0x405   :  { %v883_v23 = vpop.eup %882  ;;  %709 = vst.msk [vmem:[%s1256_s9 + $0x10] sm:$0xff] %vm638_vm3, %v696_v17 }
 0x406   :  { %v690_v25 = vmul.f32 %v883_v23, %v1169_v49  ;;  %v674_v24 = vpop.xlane.xlu1 %673 }
 0x407   :  { %888 = vrcp.f32 %v674_v24 }
 0x408   :  { %706 = vst.msk [vmem:[%s1255_s8 + $0x18] sm:$0xff] %vm638_vm3, %v690_v25 }
 0x409   :  { %v885_v27 = vpop.eup %884 }
 0x40a   :  { %v688_v26 = vmul.f32 %v885_v27, %v1175_v55 }
 0x40c   :  { %705 = vst.msk [vmem:[%s1255_s8 + $0x10] sm:$0xff] %vm638_vm3, %v688_v26 }
 0x40d   :  { %v887_v7 = vpop.eup %886 }
 0x40e   :  { %v694_v28 = vmul.f32 %v887_v7, %v1179_v57 }
 0x410   :  { %708 = vst.msk [vmem:[%s1256_s9 + $0x8] sm:$0xff] %vm638_vm3, %v694_v28 }
 0x411   :  { %v889_v29 = vpop.eup %888 }
 0x412   :  { %v698_v30 = vmul.f32 %v889_v29, %v1183_v59 }
 0x414   :  { %710 = vst.msk [vmem:[%s1256_s9 + $0x18] sm:$0xff] %vm638_vm3, %v698_v30 }

// kernel: _lambda_.17
= control target key start
LH: loop header
LB: loop body
LE: loop exit
PB: predicated region body
PF: predicated region fallthrough
CT: control target
= control target key end

     0   :  { %vm50_vm0 = vcmask 130048   ;;  %s595_s0 = inlined_call_operand.vmem [shape: f32[32,16], index: 0, kind: input, shape index: {}]   ;;  %s596_s1 = inlined_call_operand.vmem [shape: f32[16,32], index: 1, kind: input, shape index: {}]   ;;  %s597_s2 = inlined_call_operand.vmem [shape: f32[1,32], index: 2, kind: input, shape index: {}]   ;;  %s598_s3 = inlined_call_operand.vmem [shape: f32[32,32], index: 3, kind: input, shape index: {}]   ;;  %s599_s4 = inlined_call_operand.vmem [shape: f32[1,32], index: 4, kind: input, shape index: {}]   ;;  %s600_s5 = inlined_call_operand.vmem [shape: f32[32,32], index: 5, kind: input, shape index: {}]   ;;  %s601_s6 = inlined_call_operand.vmem [shape: f32[1,32], index: 6, kind: input, shape index: {}]   ;;  %s602_s7 = inlined_call_operand.vmem [shape: f32[32,64], index: 7, kind: input, shape index: {}]   ;;  %s603_s8 = inlined_call_operand.vmem [shape: f32[1,64], index: 8, kind: input, shape index: {}]   ;;  %s604_s9 = inlined_call_operand.hbm [shape: f32[32,64], index: 9, kind: output, shape index: {}]  }
   0x1   :  { %v40_v0 = vld [vmem:[%s596_s1] sm:$0xff]  ;;  %v41_v1 = vld [vmem:[%s596_s1 + $0x8] sm:$0xff]  ;;  %v36_v5 = vld [vmem:[%s595_s0 + $0x10] sm:$0xff] }
   0x2   :  { %v34_v2 = vld [vmem:[%s595_s0] sm:$0xff]  ;;  %v42_v3 = vpack.c.bf16 %v41_v1, %v40_v0  ;;  %v35_v4 = vld [vmem:[%s595_s0 + $0x8] sm:$0xff]  ;;  %v37_v6 = vld [vmem:[%s595_s0 + $0x18] sm:$0xff] }
   0x3   :  { %v38_v7 = vpack.c.bf16 %v35_v4, %v34_v2 }
   0x4   :  { %14 = vsyncpa [#allocation3], 0  ;;  %401 = vmatprep.subr.bf16.mxu0 %v42_v3  ;;  %v39_v8 = vpack.c.bf16 %v37_v6, %v36_v5  ;;  %v120_v9 = vld [vmem:[%s598_s3] sm:$0xff]  ;;  %v121_v10 = vld [vmem:[%s598_s3 + $0x8] sm:$0xff]  ;;  %vm133_vm5 = vcmask 261120   ;;  %vm353_vm14 = vcmask 523264  }
   0x5   :  { %402 = vmatpush3.bf16.msra.mxu0 %v42_v3  ;;  %403 = vmatprep.mubr.msk.bf16.mxu0 %vm50_vm0, %v38_v7  ;;  %v124_v11 = vpack.c.bf16 %v121_v10, %v120_v9  ;;  %v122_v12 = vld [vmem:[%s598_s3 + $0x10] sm:$0xff]  ;;  %v123_v13 = vld [vmem:[%s598_s3 + $0x18] sm:$0xff]  ;;  %v374_v15 = vld [vmem:[%s597_s2] ss:$0 sm:$0xff]  ;;  %s458_s23 = smov [#allocation2]  }
   0x6   :  { %v125_v14 = vpack.c.bf16 %v123_v13, %v122_v12  ;;  %v203_v34 = vld [vmem:[%s600_s5] sm:$0xff]  ;;  %v204_v35 = vld [vmem:[%s600_s5 + $0x8] sm:$0xff]  ;;  %v205_v37 = vld [vmem:[%s600_s5 + $0x10] sm:$0xff]  ;;  %s363_s24 = sshll.u32 %s458_s23, 4  ;;  %s364_s24 = int_to_ptr.vmem [resolvable:$true] %s363_s24 }
   0x7   :  { %407 = vmatprep.subr.bf16.mxu1 %v124_v11  ;;  %v207_v36 = vpack.c.bf16 %v204_v35, %v203_v34  ;;  %v206_v38 = vld [vmem:[%s600_s5 + $0x18] sm:$0xff]  ;;  %v377_v40 = vld [vmem:[%s599_s4] ss:$0 sm:$0xff]  ;;  %v286_v60 = vld [vmem:[%s602_s7 + $0x8] sm:$0xff]  ;;  %s434_s0 = scalar_lea.vmem %s364_s24, 512  ;;  %p439_p1 = scmp.lt.s32.totalorder %s364_s24, %s364_s24 }
   0x8   :  { %404 = vmatmul.mubr.msk.bf16.vlgmr.msra.gmra.mrb[0].mxu0 %vm50_vm0, %v39_v8  ;;  %408 = vmatpush3.bf16.msra.mxu1 %v124_v11  ;;  %v208_v39 = vpack.c.bf16 %v206_v38, %v205_v37  ;;  %v285_v59 = vld [vmem:[%s602_s7] sm:$0xff]  ;;  %v287_v62 = vld [vmem:[%s602_s7 + $0x10] sm:$0xff]  ;;  %v288_v63 = vld [vmem:[%s602_s7 + $0x18] sm:$0xff]  ;;  %p435_p0 = scmp.ne.s32.totalorder %s364_s24, %s434_s0  ;;  %p440_p2 = scmp.lt.s32.totalorder %s434_s0, %s434_s0 }
   0x9   :  { %409 = vmatprep.subr.bf16.mxu1 %v125_v14  ;;  %415 = vmatprep.subr.bf16.mxu0 %v207_v36  ;;  %v289_v61 = vpack.c.bf16 %v286_v60, %v285_v59  ;;  %v290_v0 = vpack.c.bf16 %v288_v63, %v287_v62  ;;  %v380_v1 = vld [vmem:[%s601_s6] ss:$0 sm:$0xff] }
   0xa   :  { %416 = vmatpush3.bf16.msra.mxu0 %v207_v36  ;;  %p441_p3 = por %p440_p2, %p439_p1 }
   0xb   :  { %417 = vmatprep.subr.bf16.mxu0 %v208_v39 }
   0xc   :  { %410 = vmatpush3.bf16.msra.mxu1 %v125_v14  ;;  %p442_p4 = pnand %p441_p3, %p435_p0 }
   0xd   :  { %423 = vmatprep.subr.bf16.mxu1 %v289_v61 }
   0xe   :  { %418 = vmatpush3.bf16.msra.mxu0 %v208_v39 }
  0xdb   :  { %v405_v16 = vpop.f32.mrb[0].mxu0 }
  0xdc   :  { %v100_v17 = vadd.f32 %v405_v16, %v374_v15  ;;  %v91_v18 = vpop.f32.mrb[1].mxu0 }
  0xdd   :  { %v92_v19 = vadd.f32 %v374_v15, %v91_v18  ;;  %v406_v20 = vpop.f32.mrb[2].mxu0 }
  0xde   :  { %v112_v21 = vmul.f32 0.2, %v100_v17  ;;  %v103_v22 = vadd.f32 %v406_v20, %v374_v15  ;;  %v94_v23 = vpop.f32.mrb[3].mxu0  ;;  %vm108_vm1 = vcmp.ge.f32.partialorder %v100_v17, 0.0  ;;  %v383_v20 = vld [vmem:[%s603_s8] ss:$0 sm:$0xff] }
  0xdf   :  { %v110_v24 = vmul.f32 0.2, %v92_v19  ;;  %v95_v25 = vadd.f32 %v374_v15, %v94_v23  ;;  %vm106_vm3 = vcmp.ge.f32.partialorder %v92_v19, 0.0 }
  0xe0   :  { %vm109_vm2 = vcmp.ge.f32.partialorder %v103_v22, 0.0  ;;  %v113_v26 = vmul.f32 0.2, %v103_v22  ;;  %v116_v28 = vsel %vm108_vm1, %v100_v17, %v112_v21 }
  0xe1   :  { %v111_v27 = vmul.f32 0.2, %v95_v25  ;;  %vm107_vm4 = vcmp.ge.f32.partialorder %v95_v25, 0.0  ;;  %v114_v31 = vsel %vm106_vm3, %v92_v19, %v110_v24 }
  0xe2   :  { %v117_v29 = vsel %vm109_vm2, %v103_v22, %v113_v26 }
  0xe3   :  { %v119_v30 = vpack.c.bf16 %v117_v29, %v116_v28  ;;  %v115_v32 = vsel %vm107_vm4, %v95_v25, %v111_v27 }
  0xe4   :  { %v118_v33 = vpack.c.bf16 %v115_v32, %v114_v31 }
  0xe6   :  { %411 = vmatprep.mubr.msk.bf16.mxu1 %vm133_vm5, %v118_v33 }
  0xe7   :  { %412 = vmatmul.mubr.msk.bf16.vlgmr.msra.gmra.mrb[0].mxu1 %vm133_vm5, %v119_v30 }
  0xe8   :  { %424 = vmatpush3.bf16.msra.mxu1 %v289_v61 }
  0xe9   :  { %425 = vmatprep.subr.bf16.mxu1 %v290_v0 }
  0xec   :  { %426 = vmatpush3.bf16.msra.mxu1 %v290_v0 }
 0x1ba   :  { %v413_v41 = vpop.f32.mrb[0].mxu1 }
 0x1bb   :  { %v183_v42 = vadd.f32 %v413_v41, %v377_v40  ;;  %v174_v43 = vpop.f32.mrb[1].mxu1 }
 0x1bc   :  { %v175_v44 = vadd.f32 %v377_v40, %v174_v43  ;;  %v414_v45 = vpop.f32.mrb[2].mxu1 }
 0x1bd   :  { %v195_v46 = vmul.f32 0.2, %v183_v42  ;;  %v186_v47 = vadd.f32 %v414_v45, %v377_v40  ;;  %v177_v48 = vpop.f32.mrb[3].mxu1  ;;  %vm191_vm6 = vcmp.ge.f32.partialorder %v183_v42, 0.0 }
 0x1be   :  { %v193_v49 = vmul.f32 0.2, %v175_v44  ;;  %v178_v50 = vadd.f32 %v377_v40, %v177_v48  ;;  %vm189_vm7 = vcmp.ge.f32.partialorder %v175_v44, 0.0 }
 0x1bf   :  { %vm192_vm8 = vcmp.ge.f32.partialorder %v186_v47, 0.0  ;;  %v196_v51 = vmul.f32 0.2, %v186_v47  ;;  %v199_v53 = vsel %vm191_vm6, %v183_v42, %v195_v46 }
 0x1c0   :  { %vm190_vm9 = vcmp.ge.f32.partialorder %v178_v50, 0.0  ;;  %v194_v52 = vmul.f32 0.2, %v178_v50  ;;  %v197_v55 = vsel %vm189_vm7, %v175_v44, %v193_v49 }
 0x1c1   :  { %v200_v54 = vsel %vm192_vm8, %v186_v47, %v196_v51 }
 0x1c2   :  { %v202_v56 = vpack.c.bf16 %v200_v54, %v199_v53  ;;  %v198_v57 = vsel %vm190_vm9, %v178_v50, %v194_v52 }
 0x1c3   :  { %v201_v58 = vpack.c.bf16 %v198_v57, %v197_v55 }
 0x1c5   :  { %419 = vmatprep.mubr.msk.bf16.mxu0 %vm133_vm5, %v201_v58 }
 0x1c6   :  { %420 = vmatmul.mubr.msk.bf16.vlgmr.msra.gmra.mrb[4].mxu0 %vm133_vm5, %v202_v56 }
 0x299   :  { %v421_v2 = vpop.f32.mrb[4].mxu0 }
 0x29a   :  { %v265_v3 = vadd.f32 %v421_v2, %v380_v1  ;;  %v256_v4 = vpop.f32.mrb[5].mxu0 }
 0x29b   :  { %v257_v5 = vadd.f32 %v380_v1, %v256_v4  ;;  %v422_v6 = vpop.f32.mrb[6].mxu0 }
 0x29c   :  { %v277_v7 = vmul.f32 0.2, %v265_v3  ;;  %v268_v8 = vadd.f32 %v422_v6, %v380_v1  ;;  %v259_v9 = vpop.f32.mrb[7].mxu0  ;;  %vm273_vm10 = vcmp.ge.f32.partialorder %v265_v3, 0.0 }
 0x29d   :  { %v275_v10 = vmul.f32 0.2, %v257_v5  ;;  %v260_v11 = vadd.f32 %v380_v1, %v259_v9  ;;  %vm271_vm11 = vcmp.ge.f32.partialorder %v257_v5, 0.0 }
 0x29e   :  { %vm274_vm12 = vcmp.ge.f32.partialorder %v268_v8, 0.0  ;;  %v278_v12 = vmul.f32 0.2, %v268_v8  ;;  %v281_v14 = vsel %vm273_vm10, %v265_v3, %v277_v7 }
 0x29f   :  { %vm272_vm13 = vcmp.ge.f32.partialorder %v260_v11, 0.0  ;;  %v276_v13 = vmul.f32 0.2, %v260_v11  ;;  %v279_v16 = vsel %vm271_vm11, %v257_v5, %v275_v10 }
 0x2a0   :  { %v282_v15 = vsel %vm274_vm12, %v268_v8, %v278_v12 }
 0x2a1   :  { %v284_v17 = vpack.c.bf16 %v282_v15, %v281_v14  ;;  %v280_v18 = vsel %vm272_vm13, %v260_v11, %v276_v13 }
 0x2a2   :  { %v283_v19 = vpack.c.bf16 %v280_v18, %v279_v16 }
 0x2a4   :  { %427 = vmatprep.mubr.msk.bf16.mxu1 %vm133_vm5, %v283_v19 }
 0x2a5   :  { %428 = vmatmul.mubr.msk.bf16.vlgmr.msra.gmra.mrb[4].mxu1 %vm133_vm5, %v284_v17 }
 0x378   :  { %v429_v21 = vpop.f32.mrb[4].mxu1 }
 0x379   :  { %v347_v22 = vadd.f32 %v429_v21, %v383_v20  ;;  %v338_v23 = vpop.f32.mrb[5].mxu1 }
 0x37a   :  { %v339_v24 = vadd.f32 %v383_v20, %v338_v23  ;;  %v430_v25 = vpop.f32.mrb[6].mxu1 }
 0x37b   :  { %356 = vst.msk [vmem:[#allocation2 + $0x10] sm:$0xff] %vm353_vm14, %v347_v22  ;;  %v350_v26 = vadd.f32 %v430_v25, %v383_v20  ;;  %v341_v27 = vpop.f32.mrb[7].mxu1 }
 0x37c   :  { %354 = vst.msk [vmem:[#allocation2] sm:$0xff] %vm353_vm14, %v339_v24  ;;  %v342_v28 = vadd.f32 %v383_v20, %v341_v27 }
 0x37d   :  { %357 = vst.msk [vmem:[#allocation2 + $0x18] sm:$0xff] %vm353_vm14, %v350_v26 }
 0x37e   :  { %355 = vst.msk [vmem:[#allocation2 + $0x8] sm:$0xff] %vm353_vm14, %v342_v28 }
 0x37f   :  { %445 = shalt.err (!%p442_p4)
}
 0x380   :  { %s446_s26 = scalar_lea.hbm %s604_s9, 512 }
 0x381   :  { %p447_p5 = scmp.ne.s32.totalorder %s604_s9, %s446_s26  ;;  %p450_p6 = scmp.lt.u32.totalorder %s446_s26, %s604_s9 }
 0x383   :  { %p452_p7 = pnand %p450_p6, %p447_p5 }
 0x385   :  { %455 = shalt.err (!%p452_p7)
}
 0x386   :  { %s459_s29 = smov 128   ;;  %s460_s30 = smov 8  }
 0x387   :  { %369 = dma.vmem_to_hbm [thread:$0]  %s364_s24, 512, %s604_s9, [#allocation3], %s459_s29, %s459_s29, %s460_s30  }
 0x388   :  { %456 = dma.done.wait [#allocation3], 512  }
 0x389   :  { %457 = vsyncadd [#allocation3], 4294966784 }
 0x38a   :  { %373 = vsyncpa [#allocation3], 1 }

// kernel: _lambda_.20
= control target key start
LH: loop header
LB: loop body
LE: loop exit
PB: predicated region body
PF: predicated region fallthrough
CT: control target
= control target key end

     0   :  { %vm40_vm0 = vcmask 261120   ;;  %vm19_vm1 = vcmask 523264   ;;  %v224_v13 = vmov 0.0   ;;  %s303_s2 = inlined_call_operand.vmem [shape: f32[32,64], index: 2, kind: input, shape index: {}]   ;;  %s304_s1 = inlined_call_operand.vmem [shape: f32[32,32], index: 1, kind: input, shape index: {}]   ;;  %s305_s0 = inlined_call_operand.vmem [shape: bf16[32,32], index: 0, kind: input, shape index: {}]   ;;  %s306_s3 = inlined_call_operand.vmem [shape: f32[32,64], index: 3, kind: output, shape index: {}]  }
   0x1   :  { %v34_v0 = vld [vmem:[%s303_s2] sm:$0xff]  ;;  %v35_v1 = vld [vmem:[%s303_s2 + $0x8] sm:$0xff]  ;;  %v36_v2 = vld [vmem:[%s303_s2 + $0x10] sm:$0xff]  ;;  %22 = vst.msk [vmem:[#allocation2 + $0x10] sm:$0xff] %vm19_vm1, %v224_v13 }
   0x2   :  { %v38_v3 = vpack.c.bf16 %v35_v1, %v34_v0  ;;  %v37_v4 = vld [vmem:[%s303_s2 + $0x18] sm:$0xff]  ;;  %v28_v5 = vld [vmem:[%s304_s1] sm:$0xff]  ;;  %v29_v6 = vld [vmem:[%s304_s1 + $0x8] sm:$0xff]  ;;  %20 = vst.msk [vmem:[#allocation2] sm:$0xff] %vm19_vm1, %v224_v13 }
   0x3   :  { %v39_v7 = vpack.c.bf16 %v37_v4, %v36_v2  ;;  %v32_v8 = vpack.c.bf16 %v29_v6, %v28_v5  ;;  %v30_v9 = vld [vmem:[%s304_s1 + $0x10] sm:$0xff]  ;;  %v31_v10 = vld [vmem:[%s304_s1 + $0x18] sm:$0xff]  ;;  %v222_v12 = vld [vmem:[%s305_s0] sm:$0xff]   ;;  %21 = vst.msk [vmem:[#allocation2 + $0x8] sm:$0xff] %vm19_vm1, %v224_v13 }
   0x4   :  { %205 = vmatprep.subr.bf16.mxu0 %v38_v3  ;;  %v33_v11 = vpack.c.bf16 %v31_v10, %v30_v9  ;;  %217 = vmatprep.mubr.msk.bf16.mxu1 %vm40_vm0, %v222_v12  ;;  %23 = vst.msk [vmem:[#allocation2 + $0x18] sm:$0xff] %vm19_vm1, %v224_v13  ;;  %v223_v20 = vld [vmem:[%s305_s0 + $0x8] sm:$0xff]  }
   0x5   :  { %206 = vmatpush3.bf16.msra.mxu0 %v38_v3  ;;  %209 = vmatprep.mubr.msk.bf16.mxu0 %vm40_vm0, %v32_v8 }
   0x6   :  { %207 = vmatprep.subr.bf16.mxu0 %v39_v7 }
   0x8   :  { %v98_v21 = vld [vmem:[#allocation2 + $0x10] sm:$0xff] }
   0x9   :  { %208 = vmatpush3.bf16.msra.mxu0 %v39_v7  ;;  %v96_v22 = vld [vmem:[#allocation2] sm:$0xff] }
   0xa   :  { %v97_v27 = vld [vmem:[#allocation2 + $0x8] sm:$0xff] }
   0xb   :  { %v99_v24 = vld [vmem:[#allocation2 + $0x18] sm:$0xff] }
   0xc   :  { %210 = vmatmul.mubr.msk.bf16.vlgmr.msra.gmra.mrb[0].mxu0 %vm40_vm0, %v33_v11 }
  0xdf   :  { %v211_v14 = vpop.f32.mrb[0].mxu0 }
  0xe0   :  { %v81_v15 = vpop.f32.mrb[1].mxu0 }
  0xe1   :  { %v212_v16 = vpop.f32.mrb[2].mxu0 }
  0xe2   :  { %v101_v17 = vpack.c.bf16 %v212_v16, %v211_v14  ;;  %v84_v18 = vpop.f32.mrb[3].mxu0 }
  0xe3   :  { %v100_v19 = vpack.c.bf16 %v84_v18, %v81_v15 }
  0xe5   :  { %213 = vmatprep.subr.bf16.mxu1 %v100_v19 }
  0xe6   :  { %214 = vmatpush3.bf16.msra.mxu1 %v100_v19 }
  0xe7   :  { %215 = vmatprep.subr.bf16.mxu1 %v101_v17 }
  0xea   :  { %216 = vmatpush3.bf16.msra.mxu1 %v101_v17 }
  0xed   :  { %218 = vmatmul.mubr.msk.bf16.vlgmr.msra.gmra.mrb[0].mxu1 %vm40_vm0, %v223_v20 }
 0x1c0   :  { %v219_v23 = vpop.f32.mrb[0].mxu1 }
 0x1c1   :  { %v169_v25 = vadd.f32 %v219_v23, %v98_v21  ;;  %v152_v26 = vpop.f32.mrb[1].mxu1 }
 0x1c2   :  { %v167_v28 = vadd.f32 %v152_v26, %v96_v22  ;;  %v220_v29 = vpop.f32.mrb[2].mxu1 }
 0x1c3   :  { %174 = vst.msk [vmem:[#allocation2 + $0x10] sm:$0xff] %vm19_vm1, %v169_v25  ;;  %v170_v30 = vadd.f32 %v220_v29, %v99_v24  ;;  %v155_v31 = vpop.f32.mrb[3].mxu1 }
 0x1c4   :  { %172 = vst.msk [vmem:[#allocation2] sm:$0xff] %vm19_vm1, %v167_v28  ;;  %v168_v32 = vadd.f32 %v155_v31, %v97_v27 }
 0x1c5   :  { %175 = vst.msk [vmem:[#allocation2 + $0x18] sm:$0xff] %vm19_vm1, %v170_v30 }
 0x1c6   :  { %173 = vst.msk [vmem:[#allocation2 + $0x8] sm:$0xff] %vm19_vm1, %v168_v32 }
 0x1ca   :  { %v181_v33 = vld [vmem:[#allocation2 + $0x10] sm:$0xff] }
 0x1cb   :  { %185 = vst.msk [vmem:[%s306_s3 + $0x10] sm:$0xff] %vm19_vm1, %v181_v33  ;;  %v179_v34 = vld [vmem:[#allocation2] sm:$0xff] }
 0x1cc   :  { %183 = vst.msk [vmem:[%s306_s3] sm:$0xff] %vm19_vm1, %v179_v34  ;;  %v182_v35 = vld [vmem:[#allocation2 + $0x18] sm:$0xff] }
 0x1cd   :  { %186 = vst.msk [vmem:[%s306_s3 + $0x18] sm:$0xff] %vm19_vm1, %v182_v35  ;;  %v180_v36 = vld [vmem:[#allocation2 + $0x8] sm:$0xff] }
 0x1ce   :  { %184 = vst.msk [vmem:[%s306_s3 + $0x8] sm:$0xff] %vm19_vm1, %v180_v36 }

// kernel: _lambda_.21
= control target key start
LH: loop header
LB: loop body
LE: loop exit
PB: predicated region body
PF: predicated region fallthrough
CT: control target
= control target key end

     0   :  { %vm31_vm0 = vcmask 130048   ;;  %vm105_vm1 = vcmask 523264   ;;  %s443_s0 = inlined_call_operand.vmem [shape: f32[32,16], index: 0, kind: input, shape index: {}, may-alias: {0,2}]   ;;  %s444_s1 = inlined_call_operand.vmem [shape: f32[32,64], index: 1, kind: input, shape index: {}, may-alias: {1,3}]   ;;  %s445_s2 = inlined_call_operand.vmem [shape: f32[32,16], index: 2, kind: input, shape index: {}, may-alias: {0,2}]   ;;  %s446_s3 = inlined_call_operand.vmem [shape: f32[32,64], index: 3, kind: input, shape index: {}, may-alias: {1,3}]   ;;  %s447_s4 = inlined_call_operand.hbm [shape: f32[32,32], index: 4, kind: output, shape index: {}]  }
   0x1   :  { %v25_v0 = vld [vmem:[%s445_s2] sm:$0xff]  ;;  %v26_v1 = vld [vmem:[%s445_s2 + $0x8] sm:$0xff]  ;;  %v27_v5 = vld [vmem:[%s445_s2 + $0x10] sm:$0xff] }
   0x2   :  { %v99_v2 = vld [vmem:[%s446_s3] sm:$0xff]  ;;  %v29_v3 = vpack.c.bf16 %v26_v1, %v25_v0  ;;  %v100_v4 = vld [vmem:[%s446_s3 + $0x8] sm:$0xff]  ;;  %v28_v6 = vld [vmem:[%s445_s2 + $0x18] sm:$0xff] }
   0x3   :  { %v103_v7 = vpack.c.bf16 %v100_v4, %v99_v2  ;;  %v30_v8 = vpack.c.bf16 %v28_v6, %v27_v5  ;;  %v101_v9 = vld [vmem:[%s446_s3 + $0x10] sm:$0xff]  ;;  %v102_v10 = vld [vmem:[%s446_s3 + $0x18] sm:$0xff]  ;;  %v19_v11 = vld [vmem:[%s443_s0] sm:$0xff] }
   0x4   :  { %276 = vmatprep.subr.msk.bf16.mxu0 %vm31_vm0, %v29_v3  ;;  %v39_v12 = vsel %vm31_vm0, %v29_v3, 0  ;;  %v104_v13 = vpack.c.bf16 %v102_v10, %v101_v9  ;;  %v20_v14 = vld [vmem:[%s443_s0 + $0x8] sm:$0xff]  ;;  %v93_v15 = vld [vmem:[%s444_s1] sm:$0xff] }
   0x5   :  { %v94_v16 = vld [vmem:[%s444_s1 + $0x8] sm:$0xff]  ;;  %278 = vmatprep.subr.msk.bf16.mxu1 %vm105_vm1, %v103_v7  ;;  %261 = vmatpush3.bf16.xpose.msra.mxu0 %v39_v12  ;;  %v113_v17 = vsel %vm105_vm1, %v103_v7, 0  ;;  %v23_v18 = vpack.c.bf16 %v20_v14, %v19_v11 }
   0x6   :  { %v97_v19 = vpack.c.bf16 %v94_v16, %v93_v15  ;;  %269 = vmatpush3.bf16.xpose.msra.mxu1 %v113_v17  ;;  %277 = vmatprep.subr.msk.bf16.mxu0 %vm31_vm0, %v30_v8 }
   0x7   :  { %9 = vsyncpa [#allocation3], 0  ;;  %279 = vmatprep.subr.msk.bf16.mxu1 %vm105_vm1, %v104_v13  ;;  %264 = vmatprep.mubr.msk.bf16.mxu0 %vm31_vm0, %v23_v18  ;;  %v42_v20 = vsel %vm31_vm0, %v30_v8, 0  ;;  %v116_v21 = vsel %vm105_vm1, %v104_v13, 0  ;;  %v21_v22 = vld [vmem:[%s443_s0 + $0x10] sm:$0xff]  ;;  %v22_v23 = vld [vmem:[%s443_s0 + $0x18] sm:$0xff] }
   0x8   :  { %272 = vmatprep.mubr.msk.bf16.mxu1 %vm105_vm1, %v97_v19  ;;  %v95_v24 = vld [vmem:[%s444_s1 + $0x10] sm:$0xff]  ;;  %v96_v25 = vld [vmem:[%s444_s1 + $0x18] sm:$0xff]  ;;  %v24_v26 = vpack.c.bf16 %v22_v23, %v21_v22  ;;  %vm219_vm2 = vcmask 261120   ;;  %s339_s0 = smov [#allocation2]  }
   0x9   :  { %v98_v27 = vpack.c.bf16 %v96_v25, %v95_v24  ;;  %s229_s1 = sshll.u32 %s339_s0, 4  ;;  %s230_s1 = int_to_ptr.vmem [resolvable:$true] %s229_s1 }
   0xa   :  { %s315_s19 = scalar_lea.vmem %s230_s1, 512  ;;  %p320_p1 = scmp.lt.s32.totalorder %s230_s1, %s230_s1 }
   0xb   :  { %p316_p0 = scmp.ne.s32.totalorder %s230_s1, %s315_s19  ;;  %p321_p2 = scmp.lt.s32.totalorder %s315_s19, %s315_s19 }
   0xd   :  { %263 = vmatpush3.bf16.xpose.msra.mxu0 %v42_v20  ;;  %p322_p3 = por %p321_p2, %p320_p1 }
   0xe   :  { %271 = vmatpush3.bf16.xpose.msra.mxu1 %v116_v21 }
   0xf   :  { %p323_p4 = pnand %p322_p3, %p316_p0 }
  0x14   :  { %265 = vmatmul.mubr.msk.bf16.vlgmr.msra.gmra.mrb[0].mxu0 %vm31_vm0, %v24_v26 }
  0x15   :  { %273 = vmatmul.mubr.msk.bf16.vlgmr.msra.gmra.mrb[0].mxu1 %vm105_vm1, %v98_v27 }
  0xe7   :  { %v266_v28 = vpop.f32.mrb[0].mxu0 }
  0xe8   :  { %v246_v29 = vmul.f32 -1.442695, %v266_v28  ;;  %v274_v30 = vpop.f32.mrb[0].mxu1  ;;  %v78_v31 = vpop.f32.mrb[1].mxu0 }
  0xe9   :  { %v250_v32 = vmul.f32 -1.442695, %v274_v30  ;;  %v244_v33 = vmul.f32 -1.442695, %v78_v31  ;;  %v152_v34 = vpop.f32.mrb[1].mxu1  ;;  %v267_v35 = vpop.f32.mrb[2].mxu0 }
  0xea   :  { %283 = vpow2.f32 %v246_v29  ;;  %v248_v36 = vmul.f32 -1.442695, %v152_v34  ;;  %v247_v37 = vmul.f32 -1.442695, %v267_v35  ;;  %v275_v38 = vpop.f32.mrb[2].mxu1  ;;  %v81_v39 = vpop.f32.mrb[3].mxu0 }
  0xeb   :  { %285 = vpow2.f32 %v250_v32  ;;  %v251_v40 = vmul.f32 -1.442695, %v275_v38  ;;  %v155_v41 = vpop.f32.mrb[3].mxu1  ;;  %v245_v42 = vmul.f32 -1.442695, %v81_v39 }
  0xec   :  { %287 = vpow2.f32 %v244_v33  ;;  %v249_v43 = vmul.f32 -1.442695, %v155_v41 }
  0xed   :  { %289 = vpow2.f32 %v248_v36 }
  0xee   :  { %291 = vpow2.f32 %v247_v37 }
  0xef   :  { %293 = vpow2.f32 %v251_v40 }
  0xf0   :  { %295 = vpow2.f32 %v245_v42 }
  0xf1   :  { %297 = vpow2.f32 %v249_v43 }
  0xf4   :  { %v284_v44 = vpop.eup %283 }
  0xf5   :  { %v286_v45 = vpop.eup %285  ;;  %v181_v46 = vadd.f32 1.0, %v284_v44 }
  0xf6   :  { %v288_v47 = vpop.eup %287  ;;  %v205_v48 = vadd.f32 1.0, %v286_v45 }
  0xf7   :  { %v290_v49 = vpop.eup %289  ;;  %299 = vrcp.f32 %v181_v46  ;;  %v179_v50 = vadd.f32 1.0, %v288_v47 }
  0xf8   :  { %v292_v51 = vpop.eup %291  ;;  %301 = vrcp.f32 %v205_v48  ;;  %v203_v52 = vadd.f32 1.0, %v290_v49 }
  0xf9   :  { %v294_v53 = vpop.eup %293  ;;  %303 = vrcp.f32 %v179_v50  ;;  %v182_v54 = vadd.f32 1.0, %v292_v51 }
  0xfa   :  { %v296_v55 = vpop.eup %295  ;;  %305 = vrcp.f32 %v203_v52  ;;  %v206_v56 = vadd.f32 1.0, %v294_v53 }
  0xfb   :  { %v298_v57 = vpop.eup %297  ;;  %307 = vrcp.f32 %v182_v54  ;;  %v180_v58 = vadd.f32 1.0, %v296_v55 }
  0xfc   :  { %309 = vrcp.f32 %v206_v56  ;;  %v204_v59 = vadd.f32 1.0, %v298_v57 }
  0xfd   :  { %311 = vrcp.f32 %v180_v58 }
  0xfe   :  { %313 = vrcp.f32 %v204_v59 }
 0x101   :  { %v300_v60 = vpop.eup %299 }
 0x102   :  { %v302_v61 = vpop.eup %301 }
 0x103   :  { %v304_v62 = vpop.eup %303  ;;  %v217_v63 = vadd.f32 %v302_v61, %v300_v60 }
 0x104   :  { %v306_v0 = vpop.eup %305 }
 0x105   :  { %v308_v1 = vpop.eup %307  ;;  %v215_v2 = vadd.f32 %v306_v0, %v304_v62  ;;  %222 = vst.msk [vmem:[#allocation2 + $0x10] sm:$0xff] %vm219_vm2, %v217_v63 }
 0x106   :  { %v310_v3 = vpop.eup %309 }
 0x107   :  { %v312_v4 = vpop.eup %311  ;;  %v218_v5 = vadd.f32 %v310_v3, %v308_v1  ;;  %220 = vst.msk [vmem:[#allocation2] sm:$0xff] %vm219_vm2, %v215_v2 }
 0x108   :  { %v314_v6 = vpop.eup %313 }
 0x109   :  { %v216_v7 = vadd.f32 %v314_v6, %v312_v4  ;;  %223 = vst.msk [vmem:[#allocation2 + $0x18] sm:$0xff] %vm219_vm2, %v218_v5 }
 0x10b   :  { %221 = vst.msk [vmem:[#allocation2 + $0x8] sm:$0xff] %vm219_vm2, %v216_v7 }
 0x10c   :  { %326 = shalt.err (!%p323_p4)
}
 0x10d   :  { %s327_s22 = scalar_lea.hbm %s447_s4, 512 }
 0x10e   :  { %p328_p5 = scmp.ne.s32.totalorder %s447_s4, %s327_s22  ;;  %p331_p6 = scmp.lt.u32.totalorder %s327_s22, %s447_s4 }
 0x110   :  { %p333_p7 = pnand %p331_p6, %p328_p5 }
 0x112   :  { %336 = shalt.err (!%p333_p7)
}
 0x113   :  { %s340_s27 = smov 128   ;;  %s341_s28 = smov 8  }
 0x114   :  { %235 = dma.vmem_to_hbm [thread:$0]  %s230_s1, 512, %s447_s4, [#allocation3], %s340_s27, %s340_s27, %s341_s28  }
 0x115   :  { %337 = dma.done.wait [#allocation3], 512  }
 0x116   :  { %338 = vsyncadd [#allocation3], 4294966784 }
 0x117   :  { %239 = vsyncpa [#allocation3], 1 }

</bundles_post_ra>
